<compile_context>
chip_gen: v7x
topology: tpu7x:2x2x1
jax: 0.10.0
libtpu: 0.0.40
codegen_flags: <defaults>
</compile_context>

<pallas_src>
import jax
import jax.numpy as jnp
import numpy as np
from jax import lax
from jax.experimental import pallas as pl
from jax.experimental.pallas import tpu as pltpu


# ---------------------------------------------------------------------------
# The fused kernel (one grid step == one image)
# ---------------------------------------------------------------------------
def _lenet_fused_kernel(
    x_ref,                      # (1, 96, 32)   input image, rows = c*32 + h
    t1_ref, cb1_ref,            # (480, 168), (1, 168)   conv1 Toeplitz + bias
    sr1e_ref, sr1o_ref,         # (14, 28) x2            pool1 row selectors
    sc1e_ref, sc1o_ref,         # (168, 84) x2           pool1 col selectors
    t2_ref, cb2_ref,            # (424, 160), (1, 160)   conv2 Toeplitz + bias
    sr2e_ref, sr2o_ref,         # (5, 10) x2             pool2 row selectors
    sc2e_ref, sc2o_ref,         # (160, 80) x2           pool2 col selectors
    w1_ref, b1_ref,             # (400, 128), (1, 128)   fc1 (perm + padded)
    w2_ref, b2_ref,             # (128, 128), (1, 128)   fc2 (padded)
    w3_ref, b3_ref,             # (128, 128), (1, 128)   fc3 (padded)
    o_ref,                      # (1, 8, 128)            lane-dense output slab
):
    f32 = jnp.float32
    x = x_ref[0]                                            # (96, 32)

    # ---- conv1 (3->6, 5x5, valid) as ONE matmul ---------------------------
    # In-kernel im2col: X1[i, (c*5+kh)*32 + col] = x[c, i+kh, col].
    # T1 is the host-prepared Toeplitz weight so that
    #   Y1[i, co*28 + j] = conv1(x)[co, i, j].
    cols = []
    for c in range(3):
        for kh in range(5):
            r = c * 32 + kh
            cols.append(x[r:r + 28, :])                     # (28, 32)
    x1 = jnp.concatenate(cols, axis=1)                      # (28, 480)  K 8-aligned
    y1 = jnp.dot(x1, t1_ref[...], preferred_element_type=f32) + cb1_ref[...]
    y1 = jnp.maximum(y1, 0.0)                               # (28, 168)

    # ---- fused 2x2/2 max-pool (even/odd selection matmuls + VPU max) ------
    yv = jnp.maximum(jnp.dot(sr1e_ref[...], y1, preferred_element_type=f32),
                     jnp.dot(sr1o_ref[...], y1, preferred_element_type=f32))
    p1 = jnp.maximum(jnp.dot(yv, sc1e_ref[...], preferred_element_type=f32),
                     jnp.dot(yv, sc1o_ref[...], preferred_element_type=f32))
    # p1: (14, 84) with p1[i, c*14 + j] = pool1[c, i, j]

    # ---- conv2 (6->16, 5x5, valid), same single-matmul scheme -------------
    cols2 = []
    for c in range(6):
        for kh in range(5):
            cols2.append(p1[kh:kh + 10, c * 14:(c + 1) * 14])   # (10, 14)
    cols2.append(jnp.zeros((10, 4), f32))                   # pad K 420 -> 424
    x2 = jnp.concatenate(cols2, axis=1)                     # (10, 424)
    y2 = jnp.dot(x2, t2_ref[...], preferred_element_type=f32) + cb2_ref[...]
    y2 = jnp.maximum(y2, 0.0)                               # (10, 160)

    yv2 = jnp.maximum(jnp.dot(sr2e_ref[...], y2, preferred_element_type=f32),
                      jnp.dot(sr2o_ref[...], y2, preferred_element_type=f32))
    p2 = jnp.maximum(jnp.dot(yv2, sc2e_ref[...], preferred_element_type=f32),
                     jnp.dot(yv2, sc2o_ref[...], preferred_element_type=f32))
    # p2: (5, 80) with p2[i, co*5 + j] = pool2[co, i, j]

    # ---- flatten + chained FC layers (all VMEM-resident, N padded to 128) --
    # xf[0, i*80 + co*5 + j] = pool2[co, i, j]; the PyTorch flatten order
    # (co*25 + i*5 + j) is baked into the host-side fc1 weight permutation.
    xf = jnp.concatenate([p2[i:i + 1, :] for i in range(5)], axis=1)  # (1, 400)
    h1 = jnp.maximum(
        jnp.dot(xf, w1_ref[...], preferred_element_type=f32) + b1_ref[...], 0.0)
    h2 = jnp.maximum(
        jnp.dot(h1, w2_ref[...], preferred_element_type=f32) + b2_ref[...], 0.0)
    out = jnp.dot(h2, w3_ref[...], preferred_element_type=f32) + b3_ref[...]  # (1, 128)

    # Lane-dense, tile-aligned (8, 128) store; valid logits live in row 0[:10].
    o_ref[0] = jnp.broadcast_to(out, (8, 128))


# ---------------------------------------------------------------------------
# Host-side (one-time) weight preparation -- hoisted out of the hot path
# ---------------------------------------------------------------------------
def _conv_toeplitz(w, w_in):
    """Toeplitz-expand a conv weight so a 'valid' 2-D conv becomes one matmul:
    with X[i, (c*KH+kh)*w_in + col] = x[c, i+kh, col],
    (X @ T)[i, co*Wo + j] == conv2d_valid(x, w)[co, i, j]."""
    w = np.asarray(w, np.float32)
    cout, cin, khs, kws = w.shape
    wo = w_in - kws + 1
    t = np.zeros((cin * khs * w_in, cout * wo), np.float32)
    j = np.arange(wo)
    for co in range(cout):
        for c in range(cin):
            for kh in range(khs):
                base = (c * khs + kh) * w_in
                for kw in range(kws):
                    t[base + kw + j, co * wo + j] = w[co, c, kh, kw]
    return t


def _pool_row_sel(h):
    e = np.zeros((h // 2, h), np.float32)
    o = np.zeros((h // 2, h), np.float32)
    r = np.arange(h // 2)
    e[r, 2 * r] = 1.0
    o[r, 2 * r + 1] = 1.0
    return e, o


def _pool_col_sel(cout, wo):
    e = np.zeros((cout * wo, cout * (wo // 2)), np.float32)
    o = np.zeros((cout * wo, cout * (wo // 2)), np.float32)
    r = np.arange(wo // 2)
    for c in range(cout):
        e[c * wo + 2 * r, c * (wo // 2) + r] = 1.0
        o[c * wo + 2 * r + 1, c * (wo // 2) + r] = 1.0
    return e, o


def _pad2(a, rows, cols):
    out = np.zeros((rows, cols), np.float32)
    a = np.asarray(a, np.float32)
    out[: a.shape[0], : a.shape[1]] = a
    return out


def prepare_params(params):
    """Toeplitz conv matrices, repeated conv biases, pool selection matrices,
    and permuted / zero-padded lane-dense FC weights (done once, on host)."""
    t1 = _conv_toeplitz(params["conv1_w"], 32)                         # (480, 168)
    cb1 = np.repeat(np.asarray(params["conv1_b"], np.float32), 28)[None, :]
    sr1e, sr1o = _pool_row_sel(28)
    sc1e, sc1o = _pool_col_sel(6, 28)

    t2 = _conv_toeplitz(params["conv2_w"], 14)                         # (420, 160)
    t2 = np.concatenate([t2, np.zeros((4, t2.shape[1]), np.float32)], axis=0)  # K->424
    cb2 = np.repeat(np.asarray(params["conv2_b"], np.float32), 10)[None, :]
    sr2e, sr2o = _pool_row_sel(10)
    sc2e, sc2o = _pool_col_sel(16, 10)

    # fc1: fold the PyTorch flatten order (co*25 + i*5 + j) into the weight
    # permutation so the kernel consumes its (i, co*5+j) layout directly.
    i_idx, c_idx, j_idx = np.meshgrid(np.arange(5), np.arange(16), np.arange(5),
                                      indexing="ij")
    perm = (c_idx * 25 + i_idx * 5 + j_idx).reshape(-1)                # row i*80+co*5+j
    fc1_w = np.asarray(params["fc1_w"], np.float32)                    # (120, 400)
    w1 = _pad2(fc1_w.T[perm, :], 400, 128)
    b1 = _pad2(np.asarray(params["fc1_b"], np.float32)[None, :], 1, 128)
    w2 = _pad2(np.asarray(params["fc2_w"], np.float32).T, 128, 128)
    b2 = _pad2(np.asarray(params["fc2_b"], np.float32)[None, :], 1, 128)
    w3 = _pad2(np.asarray(params["fc3_w"], np.float32).T, 128, 128)
    b3 = _pad2(np.asarray(params["fc3_b"], np.float32)[None, :], 1, 128)

    prep = {"t1": t1, "cb1": cb1, "sr1e": sr1e, "sr1o": sr1o,
            "sc1e": sc1e, "sc1o": sc1o,
            "t2": t2, "cb2": cb2, "sr2e": sr2e, "sr2o": sr2o,
            "sc2e": sc2e, "sc2o": sc2o,
            "w1": w1, "b1": b1, "w2": w2, "b2": b2, "w3": w3, "b3": b3}
    return {k: jnp.asarray(v) for k, v in prep.items()}


# ---------------------------------------------------------------------------
# Wrapper: one fused pallas_call for the whole network
# ---------------------------------------------------------------------------
_WEIGHT_ORDER = ["t1", "cb1", "sr1e", "sr1o", "sc1e", "sc1o",
                 "t2", "cb2", "sr2e", "sr2o", "sc2e", "sc2o",
                 "w1", "b1", "w2", "b2", "w3", "b3"]


def _w_spec(shape):
    return pl.BlockSpec(shape, lambda b: (0,) * len(shape))   # resident weight


def fused_forward(x_nchw, prep):
    B, C, H, W = x_nchw.shape
    assert (C, H, W) == (3, 32, 32)
    x2d = x_nchw.reshape(B, C * H, W)          # contiguity-preserving, free

    in_specs = [pl.BlockSpec((1, C * H, W), lambda b: (b, 0, 0))]
    operands = [x2d]
    for name in _WEIGHT_ORDER:
        arr = prep[name]
        in_specs.append(_w_spec(arr.shape))
        operands.append(arr)

    out = pl.pallas_call(
        _lenet_fused_kernel,
        out_shape=jax.ShapeDtypeStruct((B, 8, 128), jnp.float32),
        grid=(B,),
        in_specs=in_specs,
        out_specs=pl.BlockSpec((1, 8, 128), lambda b: (b, 0, 0)),
        compiler_params=pltpu.CompilerParams(
            dimension_semantics=("parallel",)),   # v7x: one image per TC
    )(*operands)
    return out[:, 0, :10]


# ---------------------------------------------------------------------------
# Parameters (deterministic, synthetic, PyTorch layout) + plain-JAX reference
# ---------------------------------------------------------------------------
def init_params(key):
    ks = jax.random.split(key, 10)

    def w(k, shape, fan_in):
        return jax.random.normal(k, shape, jnp.float32) / jnp.sqrt(fan_in)

    return {
        "conv1_w": w(ks[0], (6, 3, 5, 5), 3 * 5 * 5),
        "conv1_b": w(ks[1], (6,), 3 * 5 * 5),
        "conv2_w": w(ks[2], (16, 6, 5, 5), 6 * 5 * 5),
        "conv2_b": w(ks[3], (16,), 6 * 5 * 5),
        "fc1_w": w(ks[4], (120, 16 * 5 * 5), 16 * 5 * 5),
        "fc1_b": w(ks[5], (120,), 16 * 5 * 5),
        "fc2_w": w(ks[6], (84, 120), 120),
        "fc2_b": w(ks[7], (84,), 120),
        "fc3_w": w(ks[8], (10, 84), 84),
        "fc3_b": w(ks[9], (10,), 84),
    }


def reference_forward(x, params):
    hp = lax.Precision.HIGHEST

    def conv(z, w, b):
        y = lax.conv_general_dilated(z, w, (1, 1), "VALID",
                                     dimension_numbers=("NCHW", "OIHW", "NCHW"),
                                     precision=hp)
        return jnp.maximum(y + b[None, :, None, None], 0.0)

    def pool(z):
        return lax.reduce_window(z, -jnp.inf, lax.max,
                                 (1, 1, 2, 2), (1, 1, 2, 2), "VALID")

    z = pool(conv(x, params["conv1_w"], params["conv1_b"]))
    z = pool(conv(z, params["conv2_w"], params["conv2_b"]))
    z = z.reshape(z.shape[0], -1)
    z = jnp.maximum(jnp.dot(z, params["fc1_w"].T, precision=hp) + params["fc1_b"], 0.0)
    z = jnp.maximum(jnp.dot(z, params["fc2_w"].T, precision=hp) + params["fc2_b"], 0.0)
    return jnp.dot(z, params["fc3_w"].T, precision=hp) + params["fc3_b"]


if __name__ == "__main__":
    key = jax.random.PRNGKey(0)
    k_x, k_p = jax.random.split(key)
    # Net.forward implies 32x32 spatial input (CIFAR-10): 16*5*5 flatten.
    x = jax.random.normal(k_x, (2, 3, 32, 32), jnp.float32)
    params = init_params(k_p)
    prep = prepare_params(params)            # one-time host-side weight prep

    fwd = jax.jit(fused_forward)
    out = jax.block_until_ready(fwd(x, prep))
    assert out.shape == (2, 10) and out.dtype == jnp.float32

    ref = jax.block_until_ready(reference_forward(x, params))
    assert jnp.allclose(out, ref, rtol=2e-2, atol=2e-2), (
        "max abs err = %g" % float(jnp.max(jnp.abs(out - ref))))

    print("KERNEL_OK")
</pallas_src>

<mosaic_0001>
module attributes {stable_mosaic.version = 11 : i64} {
  func.func @_lenet_fused_kernel(%arg0: i32, %arg1: memref<1x96x32xf32, #tpu.memory_space<vmem>>, %arg2: memref<480x168xf32, #tpu.memory_space<vmem>>, %arg3: memref<1x168xf32, #tpu.memory_space<vmem>>, %arg4: memref<14x28xf32, #tpu.memory_space<vmem>>, %arg5: memref<14x28xf32, #tpu.memory_space<vmem>>, %arg6: memref<168x84xf32, #tpu.memory_space<vmem>>, %arg7: memref<168x84xf32, #tpu.memory_space<vmem>>, %arg8: memref<424x160xf32, #tpu.memory_space<vmem>>, %arg9: memref<1x160xf32, #tpu.memory_space<vmem>>, %arg10: memref<5x10xf32, #tpu.memory_space<vmem>>, %arg11: memref<5x10xf32, #tpu.memory_space<vmem>>, %arg12: memref<160x80xf32, #tpu.memory_space<vmem>>, %arg13: memref<160x80xf32, #tpu.memory_space<vmem>>, %arg14: memref<400x128xf32, #tpu.memory_space<vmem>>, %arg15: memref<1x128xf32, #tpu.memory_space<vmem>>, %arg16: memref<128x128xf32, #tpu.memory_space<vmem>>, %arg17: memref<1x128xf32, #tpu.memory_space<vmem>>, %arg18: memref<128x128xf32, #tpu.memory_space<vmem>>, %arg19: memref<1x128xf32, #tpu.memory_space<vmem>>, %arg20: memref<1x8x128xf32, #tpu.memory_space<vmem>>) attributes {dimension_semantics = [#tpu.dimension_semantics<parallel>], iteration_bounds = array<i64: 2>, scalar_prefetch = 0 : i64, scratch_operands = 0 : i64, tpu.core_type = #tpu.core_type<tc>, window_params = [{transform_indices = @transform_0, window_bounds = array<i64: 1, 96, 32>}, {pipeline_mode = #tpu.pipeline_mode<synchronous>, transform_indices = @transform_1, window_bounds = array<i64: 480, 168>}, {pipeline_mode = #tpu.pipeline_mode<synchronous>, transform_indices = @transform_2, window_bounds = array<i64: 1, 168>}, {pipeline_mode = #tpu.pipeline_mode<synchronous>, transform_indices = @transform_3, window_bounds = array<i64: 14, 28>}, {pipeline_mode = #tpu.pipeline_mode<synchronous>, transform_indices = @transform_4, window_bounds = array<i64: 14, 28>}, {pipeline_mode = #tpu.pipeline_mode<synchronous>, transform_indices = @transform_5, window_bounds = array<i64: 168, 84>}, {pipeline_mode = #tpu.pipeline_mode<synchronous>, transform_indices = @transform_6, window_bounds = array<i64: 168, 84>}, {pipeline_mode = #tpu.pipeline_mode<synchronous>, transform_indices = @transform_7, window_bounds = array<i64: 424, 160>}, {pipeline_mode = #tpu.pipeline_mode<synchronous>, transform_indices = @transform_8, window_bounds = array<i64: 1, 160>}, {pipeline_mode = #tpu.pipeline_mode<synchronous>, transform_indices = @transform_9, window_bounds = array<i64: 5, 10>}, {pipeline_mode = #tpu.pipeline_mode<synchronous>, transform_indices = @transform_10, window_bounds = array<i64: 5, 10>}, {pipeline_mode = #tpu.pipeline_mode<synchronous>, transform_indices = @transform_11, window_bounds = array<i64: 160, 80>}, {pipeline_mode = #tpu.pipeline_mode<synchronous>, transform_indices = @transform_12, window_bounds = array<i64: 160, 80>}, {pipeline_mode = #tpu.pipeline_mode<synchronous>, transform_indices = @transform_13, window_bounds = array<i64: 400, 128>}, {pipeline_mode = #tpu.pipeline_mode<synchronous>, transform_indices = @transform_14, window_bounds = array<i64: 1, 128>}, {pipeline_mode = #tpu.pipeline_mode<synchronous>, transform_indices = @transform_15, window_bounds = array<i64: 128, 128>}, {pipeline_mode = #tpu.pipeline_mode<synchronous>, transform_indices = @transform_16, window_bounds = array<i64: 1, 128>}, {pipeline_mode = #tpu.pipeline_mode<synchronous>, transform_indices = @transform_17, window_bounds = array<i64: 128, 128>}, {pipeline_mode = #tpu.pipeline_mode<synchronous>, transform_indices = @transform_18, window_bounds = array<i64: 1, 128>}, {transform_indices = @transform_19, window_bounds = array<i64: 1, 8, 128>}]} {
    %c0 = arith.constant 0 : index
    %c0_0 = arith.constant 0 : index
    %c0_1 = arith.constant 0 : index
    %0 = vector.load %arg1[%c0, %c0_0, %c0_1] : memref<1x96x32xf32, #tpu.memory_space<vmem>>, vector<1x96x32xf32>
    %1 = vector.shape_cast %0 : vector<1x96x32xf32> to vector<96x32xf32>
    %2 = vector.extract_strided_slice %1 {offsets = [0, 0], sizes = [28, 32], strides = [1, 1]} : vector<96x32xf32> to vector<28x32xf32>
    %3 = vector.extract_strided_slice %1 {offsets = [1, 0], sizes = [28, 32], strides = [1, 1]} : vector<96x32xf32> to vector<28x32xf32>
    %4 = vector.extract_strided_slice %1 {offsets = [2, 0], sizes = [28, 32], strides = [1, 1]} : vector<96x32xf32> to vector<28x32xf32>
    %5 = vector.extract_strided_slice %1 {offsets = [3, 0], sizes = [28, 32], strides = [1, 1]} : vector<96x32xf32> to vector<28x32xf32>
    %6 = vector.extract_strided_slice %1 {offsets = [4, 0], sizes = [28, 32], strides = [1, 1]} : vector<96x32xf32> to vector<28x32xf32>
    %7 = vector.extract_strided_slice %1 {offsets = [32, 0], sizes = [28, 32], strides = [1, 1]} : vector<96x32xf32> to vector<28x32xf32>
    %8 = vector.extract_strided_slice %1 {offsets = [33, 0], sizes = [28, 32], strides = [1, 1]} : vector<96x32xf32> to vector<28x32xf32>
    %9 = vector.extract_strided_slice %1 {offsets = [34, 0], sizes = [28, 32], strides = [1, 1]} : vector<96x32xf32> to vector<28x32xf32>
    %10 = vector.extract_strided_slice %1 {offsets = [35, 0], sizes = [28, 32], strides = [1, 1]} : vector<96x32xf32> to vector<28x32xf32>
    %11 = vector.extract_strided_slice %1 {offsets = [36, 0], sizes = [28, 32], strides = [1, 1]} : vector<96x32xf32> to vector<28x32xf32>
    %12 = vector.extract_strided_slice %1 {offsets = [64, 0], sizes = [28, 32], strides = [1, 1]} : vector<96x32xf32> to vector<28x32xf32>
    %13 = vector.extract_strided_slice %1 {offsets = [65, 0], sizes = [28, 32], strides = [1, 1]} : vector<96x32xf32> to vector<28x32xf32>
    %14 = vector.extract_strided_slice %1 {offsets = [66, 0], sizes = [28, 32], strides = [1, 1]} : vector<96x32xf32> to vector<28x32xf32>
    %15 = vector.extract_strided_slice %1 {offsets = [67, 0], sizes = [28, 32], strides = [1, 1]} : vector<96x32xf32> to vector<28x32xf32>
    %16 = vector.extract_strided_slice %1 {offsets = [68, 0], sizes = [28, 32], strides = [1, 1]} : vector<96x32xf32> to vector<28x32xf32>
    %17 = tpu.concatenate %2, %3, %4, %5, %6, %7, %8, %9, %10, %11, %12, %13, %14, %15, %16 in 1 : vector<28x32xf32>, vector<28x32xf32>, vector<28x32xf32>, vector<28x32xf32>, vector<28x32xf32>, vector<28x32xf32>, vector<28x32xf32>, vector<28x32xf32>, vector<28x32xf32>, vector<28x32xf32>, vector<28x32xf32>, vector<28x32xf32>, vector<28x32xf32>, vector<28x32xf32>, vector<28x32xf32> -> vector<28x480xf32>
    %c0_2 = arith.constant 0 : index
    %c0_3 = arith.constant 0 : index
    %18 = vector.load %arg2[%c0_2, %c0_3] : memref<480x168xf32, #tpu.memory_space<vmem>>, vector<480x168xf32>
    %cst = arith.constant dense<0.000000e+00> : vector<28x168xf32>
    %19 = tpu.matmul %17, %18, %cst {dimension_numbers = #tpu.dot_dimension_numbers<[1], [0], [0], [1], [0, 0, 1, 1], [], []>} : vector<28x480xf32>, vector<480x168xf32>, vector<28x168xf32> -> vector<28x168xf32>
    %c0_4 = arith.constant 0 : index
    %c0_5 = arith.constant 0 : index
    %20 = vector.load %arg3[%c0_4, %c0_5] : memref<1x168xf32, #tpu.memory_space<vmem>>, vector<1x168xf32>
    %21 = vector.broadcast %20 : vector<1x168xf32> to vector<28x168xf32>
    %22 = arith.addf %19, %21 : vector<28x168xf32>
    %cst_6 = arith.constant 0.000000e+00 : f32
    %23 = vector.broadcast %cst_6 : f32 to vector<28x168xf32>
    %24 = arith.maximumf %22, %23 : vector<28x168xf32>
    %c0_7 = arith.constant 0 : index
    %c0_8 = arith.constant 0 : index
    %25 = vector.load %arg4[%c0_7, %c0_8] : memref<14x28xf32, #tpu.memory_space<vmem>>, vector<14x28xf32>
    %cst_9 = arith.constant dense<0.000000e+00> : vector<14x168xf32>
    %26 = tpu.matmul %25, %24, %cst_9 {dimension_numbers = #tpu.dot_dimension_numbers<[1], [0], [0], [1], [0, 0, 1, 1], [], []>} : vector<14x28xf32>, vector<28x168xf32>, vector<14x168xf32> -> vector<14x168xf32>
    %c0_10 = arith.constant 0 : index
    %c0_11 = arith.constant 0 : index
    %27 = vector.load %arg5[%c0_10, %c0_11] : memref<14x28xf32, #tpu.memory_space<vmem>>, vector<14x28xf32>
    %cst_12 = arith.constant dense<0.000000e+00> : vector<14x168xf32>
    %28 = tpu.matmul %27, %24, %cst_12 {dimension_numbers = #tpu.dot_dimension_numbers<[1], [0], [0], [1], [0, 0, 1, 1], [], []>} : vector<14x28xf32>, vector<28x168xf32>, vector<14x168xf32> -> vector<14x168xf32>
    %29 = arith.maximumf %26, %28 : vector<14x168xf32>
    %c0_13 = arith.constant 0 : index
    %c0_14 = arith.constant 0 : index
    %30 = vector.load %arg6[%c0_13, %c0_14] : memref<168x84xf32, #tpu.memory_space<vmem>>, vector<168x84xf32>
    %cst_15 = arith.constant dense<0.000000e+00> : vector<14x84xf32>
    %31 = tpu.matmul %29, %30, %cst_15 {dimension_numbers = #tpu.dot_dimension_numbers<[1], [0], [0], [1], [0, 0, 1, 1], [], []>} : vector<14x168xf32>, vector<168x84xf32>, vector<14x84xf32> -> vector<14x84xf32>
    %c0_16 = arith.constant 0 : index
    %c0_17 = arith.constant 0 : index
    %32 = vector.load %arg7[%c0_16, %c0_17] : memref<168x84xf32, #tpu.memory_space<vmem>>, vector<168x84xf32>
    %cst_18 = arith.constant dense<0.000000e+00> : vector<14x84xf32>
    %33 = tpu.matmul %29, %32, %cst_18 {dimension_numbers = #tpu.dot_dimension_numbers<[1], [0], [0], [1], [0, 0, 1, 1], [], []>} : vector<14x168xf32>, vector<168x84xf32>, vector<14x84xf32> -> vector<14x84xf32>
    %34 = arith.maximumf %31, %33 : vector<14x84xf32>
    %35 = vector.extract_strided_slice %34 {offsets = [0, 0], sizes = [10, 14], strides = [1, 1]} : vector<14x84xf32> to vector<10x14xf32>
    %36 = vector.extract_strided_slice %34 {offsets = [1, 0], sizes = [10, 14], strides = [1, 1]} : vector<14x84xf32> to vector<10x14xf32>
    %37 = vector.extract_strided_slice %34 {offsets = [2, 0], sizes = [10, 14], strides = [1, 1]} : vector<14x84xf32> to vector<10x14xf32>
    %38 = vector.extract_strided_slice %34 {offsets = [3, 0], sizes = [10, 14], strides = [1, 1]} : vector<14x84xf32> to vector<10x14xf32>
    %39 = vector.extract_strided_slice %34 {offsets = [4, 0], sizes = [10, 14], strides = [1, 1]} : vector<14x84xf32> to vector<10x14xf32>
    %40 = vector.extract_strided_slice %34 {offsets = [0, 14], sizes = [10, 14], strides = [1, 1]} : vector<14x84xf32> to vector<10x14xf32>
    %41 = vector.extract_strided_slice %34 {offsets = [1, 14], sizes = [10, 14], strides = [1, 1]} : vector<14x84xf32> to vector<10x14xf32>
    %42 = vector.extract_strided_slice %34 {offsets = [2, 14], sizes = [10, 14], strides = [1, 1]} : vector<14x84xf32> to vector<10x14xf32>
    %43 = vector.extract_strided_slice %34 {offsets = [3, 14], sizes = [10, 14], strides = [1, 1]} : vector<14x84xf32> to vector<10x14xf32>
    %44 = vector.extract_strided_slice %34 {offsets = [4, 14], sizes = [10, 14], strides = [1, 1]} : vector<14x84xf32> to vector<10x14xf32>
    %45 = vector.extract_strided_slice %34 {offsets = [0, 28], sizes = [10, 14], strides = [1, 1]} : vector<14x84xf32> to vector<10x14xf32>
    %46 = vector.extract_strided_slice %34 {offsets = [1, 28], sizes = [10, 14], strides = [1, 1]} : vector<14x84xf32> to vector<10x14xf32>
    %47 = vector.extract_strided_slice %34 {offsets = [2, 28], sizes = [10, 14], strides = [1, 1]} : vector<14x84xf32> to vector<10x14xf32>
    %48 = vector.extract_strided_slice %34 {offsets = [3, 28], sizes = [10, 14], strides = [1, 1]} : vector<14x84xf32> to vector<10x14xf32>
    %49 = vector.extract_strided_slice %34 {offsets = [4, 28], sizes = [10, 14], strides = [1, 1]} : vector<14x84xf32> to vector<10x14xf32>
    %50 = vector.extract_strided_slice %34 {offsets = [0, 42], sizes = [10, 14], strides = [1, 1]} : vector<14x84xf32> to vector<10x14xf32>
    %51 = vector.extract_strided_slice %34 {offsets = [1, 42], sizes = [10, 14], strides = [1, 1]} : vector<14x84xf32> to vector<10x14xf32>
    %52 = vector.extract_strided_slice %34 {offsets = [2, 42], sizes = [10, 14], strides = [1, 1]} : vector<14x84xf32> to vector<10x14xf32>
    %53 = vector.extract_strided_slice %34 {offsets = [3, 42], sizes = [10, 14], strides = [1, 1]} : vector<14x84xf32> to vector<10x14xf32>
    %54 = vector.extract_strided_slice %34 {offsets = [4, 42], sizes = [10, 14], strides = [1, 1]} : vector<14x84xf32> to vector<10x14xf32>
    %55 = vector.extract_strided_slice %34 {offsets = [0, 56], sizes = [10, 14], strides = [1, 1]} : vector<14x84xf32> to vector<10x14xf32>
    %56 = vector.extract_strided_slice %34 {offsets = [1, 56], sizes = [10, 14], strides = [1, 1]} : vector<14x84xf32> to vector<10x14xf32>
    %57 = vector.extract_strided_slice %34 {offsets = [2, 56], sizes = [10, 14], strides = [1, 1]} : vector<14x84xf32> to vector<10x14xf32>
    %58 = vector.extract_strided_slice %34 {offsets = [3, 56], sizes = [10, 14], strides = [1, 1]} : vector<14x84xf32> to vector<10x14xf32>
    %59 = vector.extract_strided_slice %34 {offsets = [4, 56], sizes = [10, 14], strides = [1, 1]} : vector<14x84xf32> to vector<10x14xf32>
    %60 = vector.extract_strided_slice %34 {offsets = [0, 70], sizes = [10, 14], strides = [1, 1]} : vector<14x84xf32> to vector<10x14xf32>
    %61 = vector.extract_strided_slice %34 {offsets = [1, 70], sizes = [10, 14], strides = [1, 1]} : vector<14x84xf32> to vector<10x14xf32>
    %62 = vector.extract_strided_slice %34 {offsets = [2, 70], sizes = [10, 14], strides = [1, 1]} : vector<14x84xf32> to vector<10x14xf32>
    %63 = vector.extract_strided_slice %34 {offsets = [3, 70], sizes = [10, 14], strides = [1, 1]} : vector<14x84xf32> to vector<10x14xf32>
    %64 = vector.extract_strided_slice %34 {offsets = [4, 70], sizes = [10, 14], strides = [1, 1]} : vector<14x84xf32> to vector<10x14xf32>
    %cst_19 = arith.constant 0.000000e+00 : f32
    %65 = vector.broadcast %cst_19 : f32 to vector<10x4xf32>
    %66 = tpu.concatenate %35, %36, %37, %38, %39, %40, %41, %42, %43, %44, %45, %46, %47, %48, %49, %50 in 1 : vector<10x14xf32>, vector<10x14xf32>, vector<10x14xf32>, vector<10x14xf32>, vector<10x14xf32>, vector<10x14xf32>, vector<10x14xf32>, vector<10x14xf32>, vector<10x14xf32>, vector<10x14xf32>, vector<10x14xf32>, vector<10x14xf32>, vector<10x14xf32>, vector<10x14xf32>, vector<10x14xf32>, vector<10x14xf32> -> vector<10x224xf32>
    %67 = tpu.concatenate %51, %52, %53, %54, %55, %56, %57, %58, %59, %60, %61, %62, %63, %64, %65 in 1 : vector<10x14xf32>, vector<10x14xf32>, vector<10x14xf32>, vector<10x14xf32>, vector<10x14xf32>, vector<10x14xf32>, vector<10x14xf32>, vector<10x14xf32>, vector<10x14xf32>, vector<10x14xf32>, vector<10x14xf32>, vector<10x14xf32>, vector<10x14xf32>, vector<10x14xf32>, vector<10x4xf32> -> vector<10x200xf32>
    %68 = tpu.concatenate %66, %67 in 1 : vector<10x224xf32>, vector<10x200xf32> -> vector<10x424xf32>
    %c0_20 = arith.constant 0 : index
    %c0_21 = arith.constant 0 : index
    %69 = vector.load %arg8[%c0_20, %c0_21] : memref<424x160xf32, #tpu.memory_space<vmem>>, vector<424x160xf32>
    %cst_22 = arith.constant dense<0.000000e+00> : vector<10x160xf32>
    %70 = tpu.matmul %68, %69, %cst_22 {dimension_numbers = #tpu.dot_dimension_numbers<[1], [0], [0], [1], [0, 0, 1, 1], [], []>} : vector<10x424xf32>, vector<424x160xf32>, vector<10x160xf32> -> vector<10x160xf32>
    %c0_23 = arith.constant 0 : index
    %c0_24 = arith.constant 0 : index
    %71 = vector.load %arg9[%c0_23, %c0_24] : memref<1x160xf32, #tpu.memory_space<vmem>>, vector<1x160xf32>
    %72 = vector.broadcast %71 : vector<1x160xf32> to vector<10x160xf32>
    %73 = arith.addf %70, %72 : vector<10x160xf32>
    %cst_25 = arith.constant 0.000000e+00 : f32
    %74 = vector.broadcast %cst_25 : f32 to vector<10x160xf32>
    %75 = arith.maximumf %73, %74 : vector<10x160xf32>
    %c0_26 = arith.constant 0 : index
    %c0_27 = arith.constant 0 : index
    %76 = vector.load %arg10[%c0_26, %c0_27] : memref<5x10xf32, #tpu.memory_space<vmem>>, vector<5x10xf32>
    %cst_28 = arith.constant dense<0.000000e+00> : vector<5x160xf32>
    %77 = tpu.matmul %76, %75, %cst_28 {dimension_numbers = #tpu.dot_dimension_numbers<[1], [0], [0], [1], [0, 0, 1, 1], [], []>} : vector<5x10xf32>, vector<10x160xf32>, vector<5x160xf32> -> vector<5x160xf32>
    %c0_29 = arith.constant 0 : index
    %c0_30 = arith.constant 0 : index
    %78 = vector.load %arg11[%c0_29, %c0_30] : memref<5x10xf32, #tpu.memory_space<vmem>>, vector<5x10xf32>
    %cst_31 = arith.constant dense<0.000000e+00> : vector<5x160xf32>
    %79 = tpu.matmul %78, %75, %cst_31 {dimension_numbers = #tpu.dot_dimension_numbers<[1], [0], [0], [1], [0, 0, 1, 1], [], []>} : vector<5x10xf32>, vector<10x160xf32>, vector<5x160xf32> -> vector<5x160xf32>
    %80 = arith.maximumf %77, %79 : vector<5x160xf32>
    %c0_32 = arith.constant 0 : index
    %c0_33 = arith.constant 0 : index
    %81 = vector.load %arg12[%c0_32, %c0_33] : memref<160x80xf32, #tpu.memory_space<vmem>>, vector<160x80xf32>
    %cst_34 = arith.constant dense<0.000000e+00> : vector<5x80xf32>
    %82 = tpu.matmul %80, %81, %cst_34 {dimension_numbers = #tpu.dot_dimension_numbers<[1], [0], [0], [1], [0, 0, 1, 1], [], []>} : vector<5x160xf32>, vector<160x80xf32>, vector<5x80xf32> -> vector<5x80xf32>
    %c0_35 = arith.constant 0 : index
    %c0_36 = arith.constant 0 : index
    %83 = vector.load %arg13[%c0_35, %c0_36] : memref<160x80xf32, #tpu.memory_space<vmem>>, vector<160x80xf32>
    %cst_37 = arith.constant dense<0.000000e+00> : vector<5x80xf32>
    %84 = tpu.matmul %80, %83, %cst_37 {dimension_numbers = #tpu.dot_dimension_numbers<[1], [0], [0], [1], [0, 0, 1, 1], [], []>} : vector<5x160xf32>, vector<160x80xf32>, vector<5x80xf32> -> vector<5x80xf32>
    %85 = arith.maximumf %82, %84 : vector<5x80xf32>
    %86 = vector.extract_strided_slice %85 {offsets = [0, 0], sizes = [1, 80], strides = [1, 1]} : vector<5x80xf32> to vector<1x80xf32>
    %87 = vector.extract_strided_slice %85 {offsets = [1, 0], sizes = [1, 80], strides = [1, 1]} : vector<5x80xf32> to vector<1x80xf32>
    %88 = vector.extract_strided_slice %85 {offsets = [2, 0], sizes = [1, 80], strides = [1, 1]} : vector<5x80xf32> to vector<1x80xf32>
    %89 = vector.extract_strided_slice %85 {offsets = [3, 0], sizes = [1, 80], strides = [1, 1]} : vector<5x80xf32> to vector<1x80xf32>
    %90 = vector.extract_strided_slice %85 {offsets = [4, 0], sizes = [1, 80], strides = [1, 1]} : vector<5x80xf32> to vector<1x80xf32>
    %91 = tpu.concatenate %86, %87, %88, %89, %90 in 1 : vector<1x80xf32>, vector<1x80xf32>, vector<1x80xf32>, vector<1x80xf32>, vector<1x80xf32> -> vector<1x400xf32>
    %c0_38 = arith.constant 0 : index
    %c0_39 = arith.constant 0 : index
    %92 = vector.load %arg14[%c0_38, %c0_39] : memref<400x128xf32, #tpu.memory_space<vmem>>, vector<400x128xf32>
    %cst_40 = arith.constant dense<0.000000e+00> : vector<1x128xf32>
    %93 = tpu.matmul %91, %92, %cst_40 {dimension_numbers = #tpu.dot_dimension_numbers<[1], [0], [0], [1], [0, 0, 1, 1], [], []>} : vector<1x400xf32>, vector<400x128xf32>, vector<1x128xf32> -> vector<1x128xf32>
    %c0_41 = arith.constant 0 : index
    %c0_42 = arith.constant 0 : index
    %94 = vector.load %arg15[%c0_41, %c0_42] : memref<1x128xf32, #tpu.memory_space<vmem>>, vector<1x128xf32>
    %95 = arith.addf %93, %94 : vector<1x128xf32>
    %cst_43 = arith.constant 0.000000e+00 : f32
    %96 = vector.broadcast %cst_43 : f32 to vector<1x128xf32>
    %97 = arith.maximumf %95, %96 : vector<1x128xf32>
    %c0_44 = arith.constant 0 : index
    %c0_45 = arith.constant 0 : index
    %98 = vector.load %arg16[%c0_44, %c0_45] : memref<128x128xf32, #tpu.memory_space<vmem>>, vector<128x128xf32>
    %cst_46 = arith.constant dense<0.000000e+00> : vector<1x128xf32>
    %99 = tpu.matmul %97, %98, %cst_46 {dimension_numbers = #tpu.dot_dimension_numbers<[1], [0], [0], [1], [0, 0, 1, 1], [], []>} : vector<1x128xf32>, vector<128x128xf32>, vector<1x128xf32> -> vector<1x128xf32>
    %c0_47 = arith.constant 0 : index
    %c0_48 = arith.constant 0 : index
    %100 = vector.load %arg17[%c0_47, %c0_48] : memref<1x128xf32, #tpu.memory_space<vmem>>, vector<1x128xf32>
    %101 = arith.addf %99, %100 : vector<1x128xf32>
    %cst_49 = arith.constant 0.000000e+00 : f32
    %102 = vector.broadcast %cst_49 : f32 to vector<1x128xf32>
    %103 = arith.maximumf %101, %102 : vector<1x128xf32>
    %c0_50 = arith.constant 0 : index
    %c0_51 = arith.constant 0 : index
    %104 = vector.load %arg18[%c0_50, %c0_51] : memref<128x128xf32, #tpu.memory_space<vmem>>, vector<128x128xf32>
    %cst_52 = arith.constant dense<0.000000e+00> : vector<1x128xf32>
    %105 = tpu.matmul %103, %104, %cst_52 {dimension_numbers = #tpu.dot_dimension_numbers<[1], [0], [0], [1], [0, 0, 1, 1], [], []>} : vector<1x128xf32>, vector<128x128xf32>, vector<1x128xf32> -> vector<1x128xf32>
    %c0_53 = arith.constant 0 : index
    %c0_54 = arith.constant 0 : index
    %106 = vector.load %arg19[%c0_53, %c0_54] : memref<1x128xf32, #tpu.memory_space<vmem>>, vector<1x128xf32>
    %107 = arith.addf %105, %106 : vector<1x128xf32>
    %108 = vector.shape_cast %107 : vector<1x128xf32> to vector<1x128xf32>
    %109 = vector.broadcast %108 : vector<1x128xf32> to vector<8x128xf32>
    %c0_55 = arith.constant 0 : index
    %c0_56 = arith.constant 0 : index
    %c0_57 = arith.constant 0 : index
    %110 = vector.load %arg20[%c0_55, %c0_56, %c0_57] : memref<1x8x128xf32, #tpu.memory_space<vmem>>, vector<1x8x128xf32>
    %111 = vector.shape_cast %110 : vector<1x8x128xf32> to vector<8x128xf32>
    %112 = vector.shape_cast %109 : vector<8x128xf32> to vector<1x8x128xf32>
    tpu.vector_store %arg20[%c0_55, %c0_56, %c0_57], %112 {strides = array<i32>} : memref<1x8x128xf32, #tpu.memory_space<vmem>>, vector<1x8x128xf32>,
    return
  }
  func.func @transform_0(%arg0: i32) -> (i32, i32, i32) {
    %c0_i32 = arith.constant 0 : i32
    %c0_i32_0 = arith.constant 0 : i32
    %c0_i32_1 = arith.constant 0 : i32
    return %arg0, %c0_i32, %c0_i32_0 : i32, i32, i32
  }
  func.func @transform_1(%arg0: i32) -> (i32, i32) {
    %c0_i32 = arith.constant 0 : i32
    %c0_i32_0 = arith.constant 0 : i32
    %c0_i32_1 = arith.constant 0 : i32
    return %c0_i32, %c0_i32_0 : i32, i32
  }
  func.func @transform_2(%arg0: i32) -> (i32, i32) {
    %c0_i32 = arith.constant 0 : i32
    %c0_i32_0 = arith.constant 0 : i32
    %c0_i32_1 = arith.constant 0 : i32
    return %c0_i32, %c0_i32_0 : i32, i32
  }
  func.func @transform_3(%arg0: i32) -> (i32, i32) {
    %c0_i32 = arith.constant 0 : i32
    %c0_i32_0 = arith.constant 0 : i32
    %c0_i32_1 = arith.constant 0 : i32
    return %c0_i32, %c0_i32_0 : i32, i32
  }
  func.func @transform_4(%arg0: i32) -> (i32, i32) {
    %c0_i32 = arith.constant 0 : i32
    %c0_i32_0 = arith.constant 0 : i32
    %c0_i32_1 = arith.constant 0 : i32
    return %c0_i32, %c0_i32_0 : i32, i32
  }
  func.func @transform_5(%arg0: i32) -> (i32, i32) {
    %c0_i32 = arith.constant 0 : i32
    %c0_i32_0 = arith.constant 0 : i32
    %c0_i32_1 = arith.constant 0 : i32
    return %c0_i32, %c0_i32_0 : i32, i32
  }
  func.func @transform_6(%arg0: i32) -> (i32, i32) {
    %c0_i32 = arith.constant 0 : i32
    %c0_i32_0 = arith.constant 0 : i32
    %c0_i32_1 = arith.constant 0 : i32
    return %c0_i32, %c0_i32_0 : i32, i32
  }
  func.func @transform_7(%arg0: i32) -> (i32, i32) {
    %c0_i32 = arith.constant 0 : i32
    %c0_i32_0 = arith.constant 0 : i32
    %c0_i32_1 = arith.constant 0 : i32
    return %c0_i32, %c0_i32_0 : i32, i32
  }
  func.func @transform_8(%arg0: i32) -> (i32, i32) {
    %c0_i32 = arith.constant 0 : i32
    %c0_i32_0 = arith.constant 0 : i32
    %c0_i32_1 = arith.constant 0 : i32
    return %c0_i32, %c0_i32_0 : i32, i32
  }
  func.func @transform_9(%arg0: i32) -> (i32, i32) {
    %c0_i32 = arith.constant 0 : i32
    %c0_i32_0 = arith.constant 0 : i32
    %c0_i32_1 = arith.constant 0 : i32
    return %c0_i32, %c0_i32_0 : i32, i32
  }
  func.func @transform_10(%arg0: i32) -> (i32, i32) {
    %c0_i32 = arith.constant 0 : i32
    %c0_i32_0 = arith.constant 0 : i32
    %c0_i32_1 = arith.constant 0 : i32
    return %c0_i32, %c0_i32_0 : i32, i32
  }
  func.func @transform_11(%arg0: i32) -> (i32, i32) {
    %c0_i32 = arith.constant 0 : i32
    %c0_i32_0 = arith.constant 0 : i32
    %c0_i32_1 = arith.constant 0 : i32
    return %c0_i32, %c0_i32_0 : i32, i32
  }
  func.func @transform_12(%arg0: i32) -> (i32, i32) {
    %c0_i32 = arith.constant 0 : i32
    %c0_i32_0 = arith.constant 0 : i32
    %c0_i32_1 = arith.constant 0 : i32
    return %c0_i32, %c0_i32_0 : i32, i32
  }
  func.func @transform_13(%arg0: i32) -> (i32, i32) {
    %c0_i32 = arith.constant 0 : i32
    %c0_i32_0 = arith.constant 0 : i32
    %c0_i32_1 = arith.constant 0 : i32
    return %c0_i32, %c0_i32_0 : i32, i32
  }
  func.func @transform_14(%arg0: i32) -> (i32, i32) {
    %c0_i32 = arith.constant 0 : i32
    %c0_i32_0 = arith.constant 0 : i32
    %c0_i32_1 = arith.constant 0 : i32
    return %c0_i32, %c0_i32_0 : i32, i32
  }
  func.func @transform_15(%arg0: i32) -> (i32, i32) {
    %c0_i32 = arith.constant 0 : i32
    %c0_i32_0 = arith.constant 0 : i32
    %c0_i32_1 = arith.constant 0 : i32
    return %c0_i32, %c0_i32_0 : i32, i32
  }
  func.func @transform_16(%arg0: i32) -> (i32, i32) {
    %c0_i32 = arith.constant 0 : i32
    %c0_i32_0 = arith.constant 0 : i32
    %c0_i32_1 = arith.constant 0 : i32
    return %c0_i32, %c0_i32_0 : i32, i32
  }
  func.func @transform_17(%arg0: i32) -> (i32, i32) {
    %c0_i32 = arith.constant 0 : i32
    %c0_i32_0 = arith.constant 0 : i32
    %c0_i32_1 = arith.constant 0 : i32
    return %c0_i32, %c0_i32_0 : i32, i32
  }
  func.func @transform_18(%arg0: i32) -> (i32, i32) {
    %c0_i32 = arith.constant 0 : i32
    %c0_i32_0 = arith.constant 0 : i32
    %c0_i32_1 = arith.constant 0 : i32
    return %c0_i32, %c0_i32_0 : i32, i32
  }
  func.func @transform_19(%arg0: i32) -> (i32, i32, i32) {
    %c0_i32 = arith.constant 0 : i32
    %c0_i32_0 = arith.constant 0 : i32
    %c0_i32_1 = arith.constant 0 : i32
    return %arg0, %c0_i32, %c0_i32_0 : i32, i32, i32
  }
}

</mosaic_0001>

<bundles_post_ra>
// kernel: fused_forward.1
= control target key start
LH: loop header
LB: loop body
LE: loop exit
PB: predicated region body
PF: predicated region fallthrough
CT: control target
= control target key end

     0   :  { %s5755_s0 = inlined_call_operand.vmem [shape: f32[2,96,32], index: 0, kind: input, shape index: {}]   ;;  %s5756_s1 = inlined_call_operand.vmem [shape: f32[480,168], index: 1, kind: input, shape index: {}]   ;;  %s5757_s2 = inlined_call_operand.vmem [shape: f32[1,168], index: 2, kind: input, shape index: {}]   ;;  %s5758_s3 = inlined_call_operand.vmem [shape: f32[14,28], index: 3, kind: input, shape index: {}]   ;;  %s5759_s4 = inlined_call_operand.vmem [shape: f32[14,28], index: 4, kind: input, shape index: {}]   ;;  %s5760_s5 = inlined_call_operand.vmem [shape: f32[168,84], index: 5, kind: input, shape index: {}]   ;;  %s5761_s6 = inlined_call_operand.vmem [shape: f32[168,84], index: 6, kind: input, shape index: {}]   ;;  %s5762_s7 = inlined_call_operand.vmem [shape: f32[424,160], index: 7, kind: input, shape index: {}]   ;;  %s5763_s8 = inlined_call_operand.vmem [shape: f32[1,160], index: 8, kind: input, shape index: {}]   ;;  %s5764_s9 = inlined_call_operand.vmem [shape: f32[5,10], index: 9, kind: input, shape index: {}]   ;;  %s5765_s10 = inlined_call_operand.vmem [shape: f32[5,10], index: 10, kind: input, shape index: {}]   ;;  %s5766_s11 = inlined_call_operand.vmem [shape: f32[160,80], index: 11, kind: input, shape index: {}]   ;;  %s5767_s12 = inlined_call_operand.vmem [shape: f32[160,80], index: 12, kind: input, shape index: {}]   ;;  %s5768_s13 = inlined_call_operand.vmem [shape: f32[400,128], index: 13, kind: input, shape index: {}]   ;;  %s5769_s14 = inlined_call_operand.vmem [shape: f32[1,128], index: 14, kind: input, shape index: {}]   ;;  %s5770_s15 = inlined_call_operand.vmem [shape: f32[128,128], index: 15, kind: input, shape index: {}]   ;;  %s5771_s16 = inlined_call_operand.vmem [shape: f32[1,128], index: 16, kind: input, shape index: {}]   ;;  %s5772_s17 = inlined_call_operand.vmem [shape: f32[128,128], index: 17, kind: input, shape index: {}]   ;;  %s5773_s18 = inlined_call_operand.vmem [shape: f32[1,128], index: 18, kind: input, shape index: {}]   ;;  %s5774_s19 = inlined_call_operand.vmem [shape: f32[2,8,128], index: 19, kind: output, shape index: {}]  }
   0x1   :  { %5797 = sst [smem:[#allocation2_spill]] %s5755_s0  ;;  %s3966_s0 = smov 0  }
   0x2   :  { %5798 = sst [smem:[#allocation3_spill]] %s5756_s1 }
   0x3   :  { %5799 = sst [smem:[#allocation4_spill]] %s5757_s2 }
   0x4   :  { %5800 = sst [smem:[#allocation5_spill]] %s5758_s3 }
   0x5 LB: > { %s2971_s30 = sadd.s32 4294967295, %s3841_s0   ;;  %p2975_p0 = scmp.ge.s32.totalorder %s3841_s0, 1  ;;  %s3841_s0 = sphi %s3966_s0, %s29_s0  }
   0x6   : > { %p537_p1 = scmp.lt.s32.totalorder %s3841_s0, 3 }
   0x8   : > { %p538_p2 = pnand %p2975_p0, %p537_p1 }
   0x9   : > { %p592_p3 = scmp.lt.s32.totalorder (!%p538_p2), %s2971_s30, 1  ;;  %s5801_s1 = sld [smem:[#allocation3_spill]] (!%p538_p2)  ;;  %vm617_vm0 = vcmask (!%p538_p2), 1046528   ;;  %vm637_vm1 = vcmask (!%p538_p2), 1045504   ;;  %vm657_vm2 = vcmask (!%p538_p2), 1044480   ;;  %vm677_vm3 = vcmask (!%p538_p2), 1043456  }
   0xa   : > { %541 = sbr.rel (%p538_p2) target bundleno = 2700 (0xa8c), region = 96  ;;  %s5802_s28 = sld [smem:[#allocation2_spill]] (!%p538_p2)  ;;  %vm5794_vm4 = vcmask (!%p538_p2), 261120   ;;  %vm5793_vm5 = vcmask (!%p538_p2), 523264   ;;  %vm867_vm6 = vcmask (!%p538_p2), 785408   ;;  %vm5795_vm7 = vmmov (!%p538_p2), 1  }
   0xb   : > { %s5778_s24 = smov (!%p538_p2), 32   ;;  %s5779_s3 = smov (!%p538_p2), 96   ;;  %vm3271_vm8 = vmpackc.low (!%p538_p2), %vm677_vm3, %vm5795_vm7  ;;  %vm1236_vm9 = vcmask (!%p538_p2), 228352   ;;  %vm1436_vm10 = vcmask (!%p538_p2), 326656   ;;  %vm1783_vm11 = vcmask (!%p538_p2), 1040384   ;;  %vm1720_vm12 = vcmask (!%p538_p2), 113664  }
   0xc   : > { %s5777_s26 = smov (!%p538_p2), 64   ;;  %s5804_s20 = sld [smem:[#allocation5_spill]] (!%p538_p2)  ;;  %vm1725_vm13 = vcmask (!%p538_p2), 343040   ;;  %vm1728_vm14 = vcmask (!%p538_p2), 457728   ;;  %vm1731_vm15 = vcmask (!%p538_p2), 572416   ;;  %vm1757_vm7 = vcmask (!%p538_p2), 556032  }
   0xd   : > { %s3849_s21 = smov (!%p538_p2), 14   ;;  %s3852_s22 = smov (!%p538_p2), 100  }
   0xe   : > { %s5781_s2 = smov (!%p538_p2), 28   ;;  %s5782_s23 = smov (!%p538_p2), 42  }
   0xf   : > { %v905_v0 = vld [vmem:[%s5801_s1 + $0x8] sm:$0xff] (!%p538_p2)  ;;  %v907_v1 = vld [vmem:[%s5801_s1 + $0x18] sm:$0xff] (!%p538_p2)  ;;  %v904_v2 = vld [vmem:[%s5801_s1] sm:$0xff] (!%p538_p2)  ;;  %s5792_s27 = smov (!%p538_p2), 70  }
  0x10   : > { %v3146_v3 = vpack.c.bf16 (!%p538_p2), %v907_v1, %v905_v0  ;;  %v906_v4 = vld [vmem:[%s5801_s1 + $0x10] sm:$0xff] (!%p538_p2)  ;;  %v909_v5 = vld [vmem:[%s5801_s1 + $0x28] sm:$0xff] (!%p538_p2)  ;;  %v911_v6 = vld [vmem:[%s5801_s1 + $0x38] sm:$0xff] (!%p538_p2) }
  0x11   : > { %s5825_s30 = smov (!%p592_p3, %s2971_s30), 1  ;;  %v3148_v7 = vpack.c.bf16 %v906_v4, %v904_v2  ;;  %v3150_v8 = vpack.c.bf16 %v911_v6, %v909_v5  ;;  %v908_v9 = vld [vmem:[%s5801_s1 + $0x20] sm:$0xff]  ;;  %v910_v10 = vld [vmem:[%s5801_s1 + $0x30] sm:$0xff]  ;;  %v913_v11 = vld [vmem:[%s5801_s1 + $0x48] sm:$0xff] }
  0x12   : > { %s3653_s25 = smul.u32 96, %s5825_s30  ;;  %3147 = vmatprep.subr.bf16.mxu0 %v3146_v3  ;;  %v915_v12 = vld [vmem:[%s5801_s1 + $0x58] sm:$0xff]  ;;  %v912_v13 = vld [vmem:[%s5801_s1 + $0x40] sm:$0xff]  ;;  %v914_v14 = vld [vmem:[%s5801_s1 + $0x50] sm:$0xff]  ;;  %v3152_v15 = vpack.c.bf16 %v910_v10, %v908_v9 }
  0x13   : > { %3149 = vmatpush1.bf16.msra.mxu0 %v3148_v7  ;;  %v917_v16 = vld [vmem:[%s5801_s1 + $0x68] sm:$0xff]  ;;  %v919_v17 = vld [vmem:[%s5801_s1 + $0x78] sm:$0xff]  ;;  %v4022_v18 = vld [vmem:[%s5801_s1 + $0x60] sm:$0xff]  ;;  %v3154_v19 = vpack.c.bf16 %v915_v12, %v913_v11  ;;  %v3156_v24 = vpack.c.bf16 %v914_v14, %v912_v13 }
  0x14   : > { %s4027_s29 = scalar_lea.vmem %s5802_s28, %s3653_s25  ;;  %3151 = vmatprep.subr.bf16.mxu0 %v3150_v8  ;;  %v918_v20 = vld [vmem:[%s5801_s1 + $0x70] sm:$0xff]  ;;  %v3158_v25 = vpack.c.bf16 %v919_v17, %v917_v16  ;;  %v921_v27 = vld [vmem:[%s5801_s1 + $0x88] sm:$0xff]  ;;  %v923_v39 = vld [vmem:[%s5801_s1 + $0x98] sm:$0xff]  ;;  %s3850_s25 = smov 86  }
  0x15   : > { %v4033_v21 = vld [vmem:[%s4027_s29] sm:$0xff]  ;;  %v4036_v22 = vld [vmem:[%s4027_s29 + $0x8] sm:$0xff]  ;;  %v3160_v26 = vpack.c.bf16 %v918_v20, %v4022_v18  ;;  %v4053_v33 = vld [vmem:[%s4027_s29 + $0x10] sm:$0xff]  ;;  %v3162_v52 = vpack.c.bf16 %v923_v39, %v921_v27  ;;  %s5790_s28 = smov 84  }
  0x16   : > { %v4039_v23 = vld [vmem:[%s4027_s29 + $0x20] sm:$0xff]  ;;  %v618_v28 = vrot.slane %v4033_v21, 1  ;;  %v619_v29 = vrot.slane %v4036_v22, 1  ;;  %v4048_v30 = vld [vmem:[%s4027_s29 + $0x28] sm:$0xff]  ;;  %v638_v31 = vrot.slane %v4033_v21, 2  ;;  %v639_v32 = vrot.slane %v4036_v22, 2 }
  0x17   : > { %v705_v34 = vrot.slane %v4039_v23, 1  ;;  %v706_v35 = vrot.slane %v4048_v30, 1  ;;  %v658_v36 = vrot.slane %v4033_v21, 3  ;;  %v659_v37 = vrot.slane %v4036_v22, 3  ;;  %v4060_v38 = vld [vmem:[%s4027_s29 + $0x30] sm:$0xff]  ;;  %3153 = vmatpush1.bf16.msra.mxu0 %v3152_v15  ;;  %v4074_v48 = vld [vmem:[%s4027_s29 + $0x18] sm:$0xff] }
  0x18   : > { %v620_v40 = vsel %vm617_vm0, %v618_v28, %v619_v29  ;;  %v640_v41 = vsel %vm637_vm1, %v638_v31, %v639_v32  ;;  %v724_v42 = vrot.slane %v4039_v23, 2  ;;  %v725_v43 = vrot.slane %v4048_v30, 2  ;;  %3155 = vmatprep.subr.bf16.mxu0 %v3154_v19  ;;  %v4089_v62 = vld [vmem:[%s4027_s29 + $0x38] sm:$0xff]  ;;  %v920_v14 = vld [vmem:[%s5801_s1 + $0x80] sm:$0xff]  ;;  %v922_v15 = vld [vmem:[%s5801_s1 + $0x90] sm:$0xff] }
  0x19   : > { %v3685_v44 = vpack.i.bf16 %v620_v40, %v4039_v23  ;;  %v707_v45 = vsel %vm617_vm0, %v705_v34, %v706_v35  ;;  %v660_v46 = vsel %vm657_vm2, %v658_v36, %v659_v37  ;;  %v641_v47 = vrot.slane %v4053_v33, 2  ;;  %v925_v16 = vld [vmem:[%s5801_s1 + $0xa8] sm:$0xff]  ;;  %v927_v17 = vld [vmem:[%s5801_s1 + $0xb8] sm:$0xff] }
  0x1a   : > { %v726_v49 = vsel %vm637_vm1, %v724_v42, %v725_v43  ;;  %v708_v50 = vrot.slane %v4060_v38, 1  ;;  %v621_v51 = vrot.slane %v4053_v33, 1  ;;  %v3690_v53 = vpack.i.bf16 %v640_v41, %v707_v45  ;;  %v929_v31 = vld [vmem:[%s5801_s1 + $0xc8] sm:$0xff]  ;;  %v928_v42 = vld [vmem:[%s5801_s1 + $0xc0] sm:$0xff]  ;;  %v4156_v45 = vld [vmem:[%s4027_s29 + $0x50] sm:$0xff] }
  0x1b   : > { %3686 = vrot.lane.b32.xlu0 %v3685_v44, %s5778_s24  ;;  %v3695_v54 = vpack.i.bf16 %v660_v46, %v726_v49  ;;  %v642_v55 = vsel %vm637_vm1, %v639_v32, %v641_v47  ;;  %v661_v56 = vrot.slane %v4053_v33, 3  ;;  %3157 = vmatpush1.bf16.msra.mxu0 %v3156_v24  ;;  %v623_v59 = vrot.slane %v4074_v48, 1  ;;  %v931_v32 = vld [vmem:[%s5801_s1 + $0xd8] sm:$0xff]  ;;  %v4146_v40 = vld [vmem:[%s4027_s29 + $0x48] sm:$0xff] }
  0x1c   : > { %v709_v57 = vsel %vm617_vm0, %v706_v35, %v708_v50  ;;  %v622_v58 = vsel %vm617_vm0, %v619_v29, %v621_v51  ;;  %v727_v60 = vrot.slane %v4060_v38, 2  ;;  %3159 = vmatprep.subr.bf16.mxu0 %v3158_v25  ;;  %v643_v2 = vrot.slane %v4074_v48, 2  ;;  %v924_v25 = vld [vmem:[%s5801_s1 + $0xa0] sm:$0xff]  ;;  %v933_v46 = vld [vmem:[%s5801_s1 + $0xe8] sm:$0xff] }
  0x1d   : > { %3696 = vrot.lane.b32.xlu1 %v3695_v54, %s5779_s3  ;;  %v3700_v61 = vpack.i.bf16 %v622_v58, %v4048_v30  ;;  %v662_v63 = vsel %vm657_vm2, %v659_v37, %v661_v56  ;;  %v3705_v1 = vpack.i.bf16 %v642_v55, %v709_v57  ;;  %v710_v3 = vrot.slane %v4089_v62, 1  ;;  %v4139_v35 = vld [vmem:[%s4027_s29 + $0x40] sm:$0xff]  ;;  %v934_v58 = vld [vmem:[%s5801_s1 + $0xf0] sm:$0xff] }
  0x1e   : > { %v728_v0 = vsel %vm637_vm1, %v725_v43, %v727_v60  ;;  %v624_v4 = vsel %vm617_vm0, %v621_v51, %v623_v59  ;;  %v663_v5 = vrot.slane %v4074_v48, 3  ;;  %v729_v6 = vrot.slane %v4089_v62, 2  ;;  %v930_v43 = vld [vmem:[%s5801_s1 + $0xd0] sm:$0xff]  ;;  %v932_v57 = vld [vmem:[%s5801_s1 + $0xe0] sm:$0xff] }
  0x1f   : > { %3691 = vrot.lane.b32.xlu0 %v3690_v53, %s5777_s26  ;;  %3161 = vmatpush1.bf16.msra.mxu0 %v3160_v26  ;;  %v3710_v7 = vpack.i.bf16 %v662_v63, %v728_v0  ;;  %v644_v8 = vsel %vm637_vm1, %v641_v47, %v643_v2  ;;  %v711_v9 = vsel %vm617_vm0, %v708_v50, %v710_v3  ;;  %v754_v19 = vrot.slane %v4039_v23, 4  ;;  %v926_v26 = vld [vmem:[%s5801_s1 + $0xb0] sm:$0xff]  ;;  %v935_v47 = vld [vmem:[%s5801_s1 + $0xf8] sm:$0xff] }
  0x20   : > { %3163 = vmatprep.subr.bf16.mxu0 %v3162_v52  ;;  %v3715_v10 = vpack.i.bf16 %v624_v4, %v4060_v38  ;;  %v664_v11 = vsel %vm657_vm2, %v661_v56, %v663_v5  ;;  %v730_v12 = vsel %vm637_vm1, %v727_v60, %v729_v6  ;;  %v3720_v13 = vpack.i.bf16 %v644_v8, %v711_v9  ;;  %v939_v60 = vld [vmem:[%s5801_s1 + $0x118] sm:$0xff] }
  0x21   : > { %3701 = vrot.lane.b32.xlu1 %v3700_v61, %s5778_s24  ;;  %v3725_v18 = vpack.i.bf16 %v664_v11, %v730_v12  ;;  %v755_v20 = vrot.slane %v4048_v30, 4  ;;  %v757_v24 = vrot.slane %v4060_v38, 4  ;;  %v3730_v27 = vpack.i.bf16 %v623_v59, %v4089_v62  ;;  %v937_v59 = vld [vmem:[%s5801_s1 + $0x108] sm:$0xff]  ;;  %v943_v11 = vld [vmem:[%s5801_s1 + $0x138] sm:$0xff] }
  0x22   : > { %v3164_v28 = vpack.c.bf16 %v922_v15, %v920_v14  ;;  %v3166_v29 = vpack.c.bf16 %v927_v17, %v925_v16  ;;  %v3735_v34 = vpack.i.bf16 %v643_v2, %v710_v3  ;;  %v3168_v36 = vpack.c.bf16 %v926_v26, %v924_v25  ;;  %v945_v25 = vld [vmem:[%s5801_s1 + $0x148] sm:$0xff]  ;;  %v947_v26 = vld [vmem:[%s5801_s1 + $0x158] sm:$0xff] }
  0x23   : > { %3706 = vrot.lane.b32.xlu0 %v3705_v1, %s5777_s26  ;;  %v756_v37 = vsel %vm677_vm3, %v754_v19, %v755_v20  ;;  %v758_v39 = vsel %vm677_vm3, %v755_v20, %v757_v24  ;;  %v3170_v41 = vpack.c.bf16 %v931_v32, %v929_v31  ;;  %v3740_v44 = vpack.i.bf16 %v663_v5, %v729_v6  ;;  %v936_v6 = vld [vmem:[%s5801_s1 + $0x100] sm:$0xff]  ;;  %v942_v19 = vld [vmem:[%s5801_s1 + $0x130] sm:$0xff]  ;;  %v4224_v20 = vld [vmem:[%s4027_s29 + $0x58] sm:$0xff]  ;;  %s5803_s29 = sld [smem:[#allocation4_spill]] }
  0x24   : > { %3165 = vmatpush1.bf16.msra.mxu0 %v3164_v28  ;;  %v819_v49 = vrot.slane %v4139_v35, 3  ;;  %v820_v50 = vrot.slane %v4146_v40, 3  ;;  %v3745_v51 = vpack.i.bf16 %v758_v39, %v756_v37  ;;  %v789_v52 = vrot.slane %v4139_v35, 1  ;;  %v944_v39 = vld [vmem:[%s5801_s1 + $0x140] sm:$0xff] }
  0x25   : > { %3711 = vrot.lane.b32.xlu1 %v3710_v7, %s5779_s3  ;;  %3167 = vmatprep.subr.bf16.mxu0 %v3166_v29  ;;  %v790_v53 = vrot.slane %v4146_v40, 1  ;;  %v3172_v54 = vpack.c.bf16 %v930_v43, %v928_v42  ;;  %v792_v55 = vrot.slane %v4156_v45, 1  ;;  %v3174_v56 = vpack.c.bf16 %v935_v47, %v933_v46  ;;  %v938_v7 = vld [vmem:[%s5801_s1 + $0x110] sm:$0xff]  ;;  %v951_v42 = vld [vmem:[%s5801_s1 + $0x178] sm:$0xff] }
  0x26   : > { %v821_v61 = vsel %vm657_vm2, %v819_v49, %v820_v50  ;;  %v838_v63 = vrot.slane %v4139_v35, 4  ;;  %v839_v0 = vrot.slane %v4146_v40, 4  ;;  %v3750_v1 = vpack.i.bf16 %v4146_v40, %v4139_v35 }
  0x27   : > { %3716 = vrot.lane.b32.xlu0 %v3715_v10, %s5778_s24  ;;  %v791_v2 = vsel %vm617_vm0, %v789_v52, %v790_v53  ;;  %v3176_v3 = vpack.c.bf16 %v934_v58, %v932_v57  ;;  %v793_v4 = vsel %vm617_vm0, %v790_v53, %v792_v55  ;;  %v3178_v5 = vpack.c.bf16 %v939_v60, %v937_v59  ;;  %v941_v10 = vld [vmem:[%s5801_s1 + $0x128] sm:$0xff] }
  0x28   : > { %3169 = vmatpush1.bf16.msra.mxu0 %v3168_v36  ;;  %v743_v8 = vrot.slane %v4039_v23, 3  ;;  %v744_v9 = vrot.slane %v4048_v30, 3  ;;  %v840_v12 = vsel %vm677_vm3, %v838_v63, %v839_v0  ;;  %v759_v14 = vrot.slane %v4089_v62, 4  ;;  %v953_v53 = vld [vmem:[%s5801_s1 + $0x188] sm:$0xff] }
  0x29   : > { %3721 = vrot.lane.b32.xlu1 %v3720_v13, %s5777_s26  ;;  %3171 = vmatprep.subr.bf16.mxu0 %v3170_v41  ;;  %v822_v13 = vrot.slane %v4156_v45, 3  ;;  %v3755_v30 = vpack.i.bf16 %v793_v4, %v791_v2  ;;  %v3180_v15 = vpack.c.bf16 %v938_v7, %v936_v6  ;;  %v841_v16 = vrot.slane %v4156_v45, 4  ;;  %v949_v41 = vld [vmem:[%s5801_s1 + $0x168] sm:$0xff]  ;;  %v954_v2 = vld [vmem:[%s5801_s1 + $0x190] sm:$0xff]  ;;  %v959_v4 = vld [vmem:[%s5801_s1 + $0x1b8] sm:$0xff] }
  0x2a   : > { %v4212_v23 = vsel %vm657_vm2, %v743_v8, %v744_v9  ;;  %v3182_v17 = vpack.c.bf16 %v943_v11, %v941_v10  ;;  %v809_v28 = vrot.slane %v4146_v40, 2  ;;  %v760_v31 = vsel %vm677_vm3, %v757_v24, %v759_v14  ;;  %v946_v24 = vld [vmem:[%s5801_s1 + $0x150] sm:$0xff]  ;;  %v956_v8 = vld [vmem:[%s5801_s1 + $0x1a0] sm:$0xff] }
  0x2b   : > { %3726 = vrot.lane.b32.xlu0 %v3725_v18, %s5779_s3  ;;  %v940_v18 = vld [vmem:[%s5801_s1 + $0x120] sm:$0xff]  ;;  %v823_v29 = vsel %vm657_vm2, %v820_v50, %v822_v13  ;;  %v842_v36 = vsel %vm677_vm3, %v839_v0, %v841_v16  ;;  %v824_v37 = vrot.slane %v4224_v20, 3  ;;  %v3760_v40 = vpack.i.bf16 %v759_v14, %v760_v31 }
  0x2c   : > { %3173 = vmatpush1.bf16.msra.mxu0 %v3172_v54  ;;  %v3184_v32 = vpack.c.bf16 %v942_v19, %v940_v18  ;;  %v746_v43 = vrot.slane %v4060_v38, 3  ;;  %v843_v49 = vrot.slane %v4224_v20, 4  ;;  %v3190_v50 = vpack.c.bf16 %v951_v42, %v949_v41  ;;  %v950_v38 = vld [vmem:[%s5801_s1 + $0x170] sm:$0xff]  ;;  %v955_v54 = vld [vmem:[%s5801_s1 + $0x198] sm:$0xff]  ;;  %v964_v19 = vld [vmem:[%s5801_s1 + $0x1e0] sm:$0xff] }
  0x2d   : > { %3731 = vrot.lane.b32.xlu1 %v3730_v27, %s5778_s24  ;;  %3175 = vmatprep.subr.bf16.mxu0 %v3174_v56  ;;  %v808_v27 = vrot.slane %v4139_v35, 2  ;;  %v3186_v35 = vpack.c.bf16 %v947_v26, %v945_v25  ;;  %v825_v47 = vsel %vm657_vm2, %v822_v13, %v824_v37  ;;  %v3765_v52 = vpack.i.bf16 %v4224_v20, %v4156_v45  ;;  %v962_v13 = vld [vmem:[%s5801_s1 + $0x1d0] sm:$0xff]  ;;  %v969_v26 = vld [vmem:[%s5801_s1 + $0x208] sm:$0xff]  ;;  %v968_v41 = vld [vmem:[%s5801_s1 + $0x200] sm:$0xff] }
  0x2e   : > { %v4260_v46 = vsel %vm657_vm2, %v744_v9, %v746_v43  ;;  %v811_v56 = vrot.slane %v4156_v45, 2  ;;  %v813_v57 = vrot.slane %v4224_v20, 2  ;;  %v794_v58 = vrot.slane %v4224_v20, 1  ;;  %v958_v9 = vld [vmem:[%s5801_s1 + $0x1b0] sm:$0xff]  ;;  %v961_v45 = vld [vmem:[%s5801_s1 + $0x1c8] sm:$0xff] }
  0x2f   : > { %3736 = vrot.lane.b32.xlu0 %v3735_v34, %s5777_s26  ;;  %v4240_v34 = vsel %vm637_vm1, %v808_v27, %v809_v28  ;;  %v844_v63 = vsel %vm677_vm3, %v841_v16, %v843_v49  ;;  %v3194_v0 = vpack.c.bf16 %v955_v54, %v953_v53  ;;  %v3200_v10 = vpack.c.bf16 %v958_v9, %v956_v8  ;;  %v966_v25 = vld [vmem:[%s5801_s1 + $0x1f0] sm:$0xff]  ;;  %v971_v27 = vld [vmem:[%s5801_s1 + $0x218] sm:$0xff]  ;;  %v977_v8 = vld [vmem:[%s5801_s1 + $0x248] sm:$0xff] }
  0x30   : > { %3177 = vmatpush1.bf16.msra.mxu0 %v3176_v3  ;;  %v4284_v60 = vsel %vm637_vm1, %v809_v28, %v811_v56  ;;  %v957_v3 = vld [vmem:[%s5801_s1 + $0x1a8] sm:$0xff]  ;;  %v748_v14 = vrot.slane %v4089_v62, 3  ;;  %v3208_v28 = vpack.c.bf16 %v966_v25, %v964_v19  ;;  %v678_v31 = vrot.slane %v4033_v21, 4  ;;  %v970_v42 = vld [vmem:[%s5801_s1 + $0x210] sm:$0xff]  ;;  %v979_v9 = vld [vmem:[%s5801_s1 + $0x258] sm:$0xff] }
  0x31   : > { %3741 = vrot.lane.b32.xlu1 %v3740_v44, %s5779_s3  ;;  %3179 = vmatprep.subr.bf16.mxu0 %v3178_v5  ;;  %v3188_v44 = vpack.c.bf16 %v946_v24, %v944_v39  ;;  %v795_v5 = vsel %vm617_vm0, %v792_v55, %v794_v58  ;;  %v3198_v7 = vpack.c.bf16 %v959_v4, %v957_v3  ;;  %v963_v55 = vld [vmem:[%s5801_s1 + $0x1d8] sm:$0xff]  ;;  %v681_v24 = vrot.slane %v4053_v33, 4 }
  0x32   : > { %v3202_v11 = vpack.c.bf16 %v963_v55, %v961_v45  ;;  %v4340_v16 = vsel %vm657_vm2, %v746_v43, %v748_v14  ;;  %v3212_v54 = vpack.c.bf16 %v970_v42, %v968_v41  ;;  %v1026_v62 = vlaneseq }
  0x33   : > { %3746 = vrot.lane.b32.xlu0 %v3745_v51, %s5778_s24  ;;  %v948_v51 = vld [vmem:[%s5801_s1 + $0x160] sm:$0xff] }
  0x34   : > { %3181 = vmatpush1.bf16.msra.mxu0 %v3180_v15  ;;  %v3192_v59 = vpack.c.bf16 %v950_v38, %v948_v51  ;;  %v967_v15 = vld [vmem:[%s5801_s1 + $0x1f8] sm:$0xff]  ;;  %v973_v51 = vld [vmem:[%s5801_s1 + $0x228] sm:$0xff] }
  0x35   : > { %826 = vrot.lane.b32.xlu1 %v821_v61, %s5778_s24  ;;  %3183 = vmatprep.subr.bf16.mxu0 %v3182_v17  ;;  %v4289_v61 = vsel %vm637_vm1, %v811_v56, %v813_v57  ;;  %v975_v38 = vld [vmem:[%s5801_s1 + $0x238] sm:$0xff] }
  0x37   : > { %3751 = vrot.lane.b32.xlu0 %v3750_v1, %s5777_s26  ;;  %v952_v1 = vld [vmem:[%s5801_s1 + $0x180] sm:$0xff] }
  0x38   : > { %3185 = vmatpush1.bf16.msra.mxu0 %v3184_v32  ;;  %v3196_v6 = vpack.c.bf16 %v954_v2, %v952_v1  ;;  %v679_v32 = vrot.slane %v4036_v22, 4  ;;  %v974_v1 = vld [vmem:[%s5801_s1 + $0x230] sm:$0xff] }
  0x39   : > { %845 = vrot.lane.b32.xlu1 %v840_v12, %s5777_s26  ;;  %3187 = vmatprep.subr.bf16.mxu0 %v3186_v35  ;;  %v960_v12 = vld [vmem:[%s5801_s1 + $0x1c0] sm:$0xff] }
  0x3a   : > { %v3204_v17 = vpack.c.bf16 %v962_v13, %v960_v12 }
  0x3b   : > { %3756 = vrot.lane.b32.xlu0 %v3755_v30, %s5779_s3  ;;  %v965_v30 = vld [vmem:[%s5801_s1 + $0x1e8] sm:$0xff] }
  0x3c   : > { %3189 = vmatpush1.bf16.msra.mxu0 %v3188_v44  ;;  %v3206_v18 = vpack.c.bf16 %v967_v15, %v965_v30  ;;  %v976_v30 = vld [vmem:[%s5801_s1 + $0x240] sm:$0xff]  ;;  %v978_v15 = vld [vmem:[%s5801_s1 + $0x250] sm:$0xff] }
  0x3d   : > { %828 = vrot.lane.b32.xlu1 %v823_v29, %s5778_s24  ;;  %3191 = vmatprep.subr.bf16.mxu0 %v3190_v50  ;;  %v3210_v29 = vpack.c.bf16 %v971_v27, %v969_v26 }
  0x3f   : > { %847 = vrot.lane.b32.xlu0 %v842_v36, %s5777_s26 }
  0x40   : > { %3193 = vmatpush1.bf16.msra.mxu0 %v3192_v59 }
  0x41   : > { %3761 = vrot.lane.b32.xlu1 %v3760_v40, %s5778_s24  ;;  %3195 = vmatprep.subr.bf16.mxu0 %v3194_v0  ;;  %v680_v40 = vsel %vm677_vm3, %v678_v31, %v679_v32  ;;  %v972_v0 = vld [vmem:[%s5801_s1 + $0x220] sm:$0xff] }
  0x42   : > { %v3216_v12 = vpack.c.bf16 %v974_v1, %v972_v0 }
  0x43   : > { %830 = vrot.lane.b32.xlu0 %v825_v47, %s5778_s24 }
  0x44   : > { %3197 = vmatpush1.bf16.msra.mxu0 %v3196_v6 }
  0x45   : > { %3766 = vrot.lane.b32.xlu1 %v3765_v52, %s5777_s26  ;;  %3199 = vmatprep.subr.bf16.mxu0 %v3198_v7  ;;  %v683_v7 = vrot.slane %v4074_v48, 4 }
  0x47   : > { %849 = vrot.lane.b32.xlu0 %v844_v63, %s5777_s26  ;;  %v684_v27 = vsel %vm677_vm3, %v681_v24, %v683_v7 }
  0x48   : > { %3201 = vmatpush1.bf16.msra.mxu0 %v3200_v10 }
  0x49   : > { %800 = vrot.lane.b32.xlu1 %v795_v5, %s5779_s3  ;;  %3203 = vmatprep.subr.bf16.mxu0 %v3202_v11  ;;  %v3214_v5 = vpack.c.bf16 %v975_v38, %v973_v51  ;;  %v987_v51 = vld [vmem:[%s5801_s1 + $0x298] sm:$0xff] }
  0x4b   : > { %832 = vrot.lane.b32.xlu0 %v824_v37, %s5778_s24  ;;  %s5785_s24 = smov 12  }
  0x4c   : > { %3205 = vmatpush1.bf16.msra.mxu0 %v3204_v17 }
  0x4d   : > { %851 = vrot.lane.b32.xlu1 %v843_v49, %s5777_s26  ;;  %3207 = vmatprep.subr.bf16.mxu0 %v3206_v18  ;;  %s3851_s26 = smov 114  }
  0x4f   : > { %802 = vrot.lane.b32.xlu0 %v794_v58, %s5779_s3  ;;  %v682_v58 = vsel %vm677_vm3, %v679_v32, %v681_v24  ;;  %v980_v24 = vld [vmem:[%s5801_s1 + $0x260] sm:$0xff]  ;;  %s5788_s3 = smov 26  }
  0x50   : > { %3209 = vmatpush1.bf16.msra.mxu0 %v3208_v28  ;;  %v981_v28 = vld [vmem:[%s5801_s1 + $0x268] sm:$0xff] }
  0x51   : > { %3211 = vmatprep.subr.bf16.mxu0 %v3210_v29  ;;  %v983_v29 = vld [vmem:[%s5801_s1 + $0x278] sm:$0xff] }
  0x8d   : > { %v3687_v36 = vpop.permute.xlu0 %3686 }
  0x8e   : > { %v3689_v37 = vunpack.i.h.bf16 %v3687_v36  ;;  %v3688_v35 = vunpack.i.l.bf16 %v3687_v36 }
  0x8f   : > { %v3697_v39 = vpop.permute.xlu1 %3696 }
  0x90   : > { %v3699_v44 = vunpack.i.h.bf16 %v3697_v39  ;;  %v3698_v47 = vunpack.i.l.bf16 %v3697_v39  ;;  %v872_v52 = vsel %vm5794_vm4, %v680_v40, %v3688_v35  ;;  %v858_v53 = vsel %vm5794_vm4, %v4033_v21, %v3689_v37  ;;  %v982_v40 = vld [vmem:[%s5801_s1 + $0x270] sm:$0xff] }
  0x91   : > { %v3692_v43 = vpop.permute.xlu0 %3691  ;;  %v3220_v35 = vpack.c.bf16 %v978_v15, %v976_v30 }
  0x92   : > { %v3694_v49 = vunpack.i.h.bf16 %v3692_v43  ;;  %v3693_v50 = vunpack.i.l.bf16 %v3692_v43 }
  0x93   : > { %v3702_v56 = vpop.permute.xlu1 %3701 }
  0x94   : > { %v876_v59 = vsel %vm5793_vm5, %v872_v52, %v3693_v50  ;;  %v863_v63 = vsel %vm5793_vm5, %v858_v53, %v3694_v49  ;;  %v3704_v2 = vunpack.i.h.bf16 %v3702_v56  ;;  %v3703_v3 = vunpack.i.l.bf16 %v3702_v56  ;;  %v985_v50 = vld [vmem:[%s5801_s1 + $0x288] sm:$0xff] }
  0x95   : > { %v880_v21 = vsel %vm867_vm6, %v876_v59, %v3698_v47  ;;  %v868_v4 = vsel %vm867_vm6, %v863_v63, %v3699_v44  ;;  %v3707_v6 = vpop.permute.xlu0 %3706  ;;  %v3222_v47 = vpack.c.bf16 %v983_v29, %v981_v28  ;;  %v3224_v56 = vpack.c.bf16 %v982_v40, %v980_v24  ;;  %v986_v59 = vld [vmem:[%s5801_s1 + $0x290] sm:$0xff]  ;;  %v992_v28 = vld [vmem:[%s5801_s1 + $0x2c0] sm:$0xff] }
  0x96   : > { %1112 = vmatprep.mubr.f32.mxu0 %v880_v21  ;;  %v3709_v45 = vunpack.i.h.bf16 %v3707_v6  ;;  %v3708_v55 = vunpack.i.l.bf16 %v3707_v6  ;;  %v873_v10 = vsel %vm5794_vm4, %v682_v58, %v3703_v3  ;;  %v859_v11 = vsel %vm5794_vm4, %v4036_v22, %v3704_v2  ;;  %v984_v58 = vld [vmem:[%s5801_s1 + $0x280] sm:$0xff]  ;;  %v994_v29 = vld [vmem:[%s5801_s1 + $0x2d0] sm:$0xff] }
  0x97   : > { %1113 = vmatmul.mubr.f32.vlgmr.msra.gmra.mrb[0].mxu0 %v868_v4  ;;  %v3712_v13 = vpop.permute.xlu1 %3711  ;;  %v3218_v22 = vpack.c.bf16 %v979_v9, %v977_v8  ;;  %v3226_v3 = vpack.c.bf16 %v987_v51, %v985_v50  ;;  %v989_v4 = vld [vmem:[%s5801_s1 + $0x2a8] sm:$0xff]  ;;  %v1002_v50 = vld [vmem:[%s5801_s1 + $0x310] sm:$0xff] }
  0x98   : > { %3213 = vmatpush1.bf16.msra.mxu0 %v3212_v54  ;;  %v3714_v17 = vunpack.i.h.bf16 %v3712_v13  ;;  %v3713_v18 = vunpack.i.l.bf16 %v3712_v13  ;;  %v877_v19 = vsel %vm5793_vm5, %v873_v10, %v3708_v55  ;;  %v864_v25 = vsel %vm5793_vm5, %v859_v11, %v3709_v45  ;;  %v1005_v51 = vld [vmem:[%s5801_s1 + $0x328] sm:$0xff] }
  0x99   : > { %3215 = vmatprep.subr.bf16.mxu0 %v3214_v5  ;;  %v3717_v26 = vpop.permute.xlu0 %3716  ;;  %v991_v5 = vld [vmem:[%s5801_s1 + $0x2b8] sm:$0xff]  ;;  %v3228_v55 = vpack.c.bf16 %v986_v59, %v984_v58  ;;  %v1009_v58 = vld [vmem:[%s5801_s1 + $0x348] sm:$0xff] }
  0x9a   : > { %v3719_v31 = vunpack.i.h.bf16 %v3717_v26  ;;  %v3718_v32 = vunpack.i.l.bf16 %v3717_v26  ;;  %v881_v36 = vsel %vm867_vm6, %v877_v19, %v3713_v18  ;;  %v869_v37 = vsel %vm867_vm6, %v864_v25, %v3714_v17  ;;  %v988_v17 = vld [vmem:[%s5801_s1 + $0x2a0] sm:$0xff]  ;;  %v995_v18 = vld [vmem:[%s5801_s1 + $0x2d8] sm:$0xff] }
  0x9b   : > { %v3722_v39 = vpop.permute.xlu1 %3721  ;;  %1118 = vmatprep.mubr.f32.mxu0 %v881_v36  ;;  %v3230_v15 = vpack.c.bf16 %v991_v5, %v989_v4  ;;  %v999_v36 = vld [vmem:[%s5801_s1 + $0x2f8] sm:$0xff] }
  0x9c   : > { %3217 = vmatpush1.bf16.msra.mxu0 %v3216_v12  ;;  %v3724_v41 = vunpack.i.h.bf16 %v3722_v39  ;;  %v3723_v42 = vunpack.i.l.bf16 %v3722_v39  ;;  %v874_v43 = vsel %vm5794_vm4, %v684_v27, %v3718_v32  ;;  %v860_v44 = vsel %vm5794_vm4, %v4053_v33, %v3719_v31  ;;  %v997_v32 = vld [vmem:[%s5801_s1 + $0x2e8] sm:$0xff]  ;;  %v1011_v59 = vld [vmem:[%s5801_s1 + $0x358] sm:$0xff] }
  0x9d   : > { %3219 = vmatprep.subr.bf16.mxu0 %v3218_v22  ;;  %v3727_v49 = vpop.permute.xlu0 %3726  ;;  %1119 = vmatmul.mubr.f32.gmra.mrb[2].mxu0 %v869_v37  ;;  %v3238_v24 = vpack.c.bf16 %v999_v36, %v997_v32  ;;  %v1015_v4 = vld [vmem:[%s5801_s1 + $0x378] sm:$0xff] }
  0x9e   : > { %v3729_v38 = vunpack.i.h.bf16 %v3727_v49  ;;  %v3728_v52 = vunpack.i.l.bf16 %v3727_v49  ;;  %v878_v53 = vsel %vm5793_vm5, %v874_v43, %v3723_v42  ;;  %v865_v54 = vsel %vm5793_vm5, %v860_v44, %v3724_v41  ;;  %v998_v41 = vld [vmem:[%s5801_s1 + $0x2f0] sm:$0xff]  ;;  %v1001_v42 = vld [vmem:[%s5801_s1 + $0x308] sm:$0xff]  ;;  %v1003_v43 = vld [vmem:[%s5801_s1 + $0x318] sm:$0xff] }
  0x9f   : > { %v3732_v33 = vpop.permute.xlu1 %3731  ;;  %v1000_v49 = vld [vmem:[%s5801_s1 + $0x300] sm:$0xff] }
  0xa0   : > { %3221 = vmatpush1.bf16.msra.mxu0 %v3220_v35  ;;  %v3734_v63 = vunpack.i.h.bf16 %v3732_v33  ;;  %v3733_v0 = vunpack.i.l.bf16 %v3732_v33  ;;  %v882_v1 = vsel %vm867_vm6, %v878_v53, %v3728_v52  ;;  %v870_v2 = vsel %vm867_vm6, %v865_v54, %v3729_v38  ;;  %v1007_v38 = vld [vmem:[%s5801_s1 + $0x338] sm:$0xff]  ;;  %v1006_v33 = vld [vmem:[%s5801_s1 + $0x330] sm:$0xff] }
  0xa1   : > { %3223 = vmatprep.subr.bf16.mxu0 %v3222_v47  ;;  %v3737_v21 = vpop.permute.xlu0 %3736  ;;  %1124 = vmatprep.mubr.f32.mxu0 %v882_v1  ;;  %v3236_v35 = vpack.c.bf16 %v994_v29, %v992_v28  ;;  %v3242_v47 = vpack.c.bf16 %v1003_v43, %v1001_v42  ;;  %v3244_v53 = vpack.c.bf16 %v1002_v50, %v1000_v49 }
  0xa2   : > { %v3739_v6 = vunpack.i.h.bf16 %v3737_v21  ;;  %v3738_v8 = vunpack.i.l.bf16 %v3737_v21  ;;  %1125 = vmatmul.mubr.f32.gmra.mrb[4].mxu0 %v870_v2  ;;  %v875_v9 = vsel %vm5794_vm4, %v683_v7, %v3733_v0  ;;  %v861_v45 = vsel %vm5794_vm4, %v4074_v48, %v3734_v63  ;;  %v990_v7 = vld [vmem:[%s5801_s1 + $0x2b0] sm:$0xff]  ;;  %v993_v48 = vld [vmem:[%s5801_s1 + $0x2c8] sm:$0xff]  ;;  %v1008_v2 = vld [vmem:[%s5801_s1 + $0x340] sm:$0xff] }
  0xa3   : > { %v3742_v10 = vpop.permute.xlu1 %3741  ;;  %v3232_v26 = vpack.c.bf16 %v990_v7, %v988_v17  ;;  %v3234_v27 = vpack.c.bf16 %v995_v18, %v993_v48  ;;  %v3246_v54 = vpack.c.bf16 %v1007_v38, %v1005_v51  ;;  %v3250_v1 = vpack.c.bf16 %v1011_v59, %v1009_v58  ;;  %v1013_v21 = vld [vmem:[%s5801_s1 + $0x368] sm:$0xff]  ;;  %v1023_v48 = vld [vmem:[%s5801_s1 + $0x3b8] sm:$0xff] }
  0xa4   : > { %3225 = vmatpush1.bf16.msra.mxu0 %v3224_v56  ;;  %v3744_v11 = vunpack.i.h.bf16 %v3742_v10  ;;  %v3743_v12 = vunpack.i.l.bf16 %v3742_v10  ;;  %v879_v13 = vsel %vm5793_vm5, %v875_v9, %v3738_v8  ;;  %v866_v30 = vsel %vm5793_vm5, %v861_v45, %v3739_v6  ;;  %v1004_v56 = vld [vmem:[%s5801_s1 + $0x320] sm:$0xff]  ;;  %v1014_v45 = vld [vmem:[%s5801_s1 + $0x370] sm:$0xff]  ;;  %v1019_v10 = vld [vmem:[%s5801_s1 + $0x398] sm:$0xff] }
  0xa5   : > { %3227 = vmatprep.subr.bf16.mxu0 %v3226_v3  ;;  %v4481_v40 = vpop.permute.xlu0 %3746  ;;  %v3248_v63 = vpack.c.bf16 %v1006_v33, %v1004_v56  ;;  %v1010_v3 = vld [vmem:[%s5801_s1 + $0x350] sm:$0xff]  ;;  %v3254_v8 = vpack.c.bf16 %v1015_v4, %v1013_v21  ;;  %v1012_v9 = vld [vmem:[%s5801_s1 + $0x360] sm:$0xff]  ;;  %v1021_v7 = vld [vmem:[%s5801_s1 + $0x3a8] sm:$0xff] }
  0xa6   : > { %v883_v19 = vsel %vm867_vm6, %v879_v13, %v3743_v12  ;;  %v871_v25 = vsel %vm867_vm6, %v866_v30, %v3744_v11  ;;  %v3252_v5 = vpack.c.bf16 %v1010_v3, %v1008_v2  ;;  %v3256_v12 = vpack.c.bf16 %v1014_v45, %v1012_v9  ;;  %v1016_v30 = vld [vmem:[%s5801_s1 + $0x380] sm:$0xff] }
  0xa7   : > { %v827_v22 = vpop.permute.xlu1 %826  ;;  %1130 = vmatprep.mubr.f32.mxu0 %v883_v19  ;;  %v3748_v18 = vunpack.i.l.bf16 %v4481_v40  ;;  %v3749_v29 = vunpack.i.h.bf16 %v4481_v40  ;;  %v1024_v2 = vld [vmem:[%s5803_s29] sm:$0x3]  ;;  %s5784_s29 = smov 56  }
  0xa8   : > { %3229 = vmatpush1.bf16.msra.mxu0 %v3228_v55  ;;  %v896_v31 = vsel %vm5794_vm4, %v4240_v34, %v827_v22  ;;  %v996_v34 = vld [vmem:[%s5801_s1 + $0x2e0] sm:$0xff]  ;;  %v1017_v55 = vld [vmem:[%s5801_s1 + $0x388] sm:$0xff]  ;;  %v3262_v22 = vpack.c.bf16 %v1023_v48, %v1021_v7 }
  0xa9   : > { %3231 = vmatprep.subr.bf16.mxu0 %v3230_v15  ;;  %1131 = vmatmul.mubr.f32.gmra.mrb[6].mxu0 %v871_v25  ;;  %v3240_v44 = vpack.c.bf16 %v998_v41, %v996_v34  ;;  %v4508_v52 = vpop.permute.xlu0 %3751  ;;  %v3258_v13 = vpack.c.bf16 %v1019_v10, %v1017_v55  ;;  %v1018_v15 = vld [vmem:[%s5801_s1 + $0x390] sm:$0xff]  ;;  %v885_v40 = vsel %vm5794_vm4, %v4260_v46, %v3749_v29 }
  0xaa   : > { %v3260_v19 = vpack.c.bf16 %v1018_v15, %v1016_v30  ;;  %v3753_v28 = vunpack.i.l.bf16 %v4508_v52 }
  0xab   : > { %v846_v37 = vpop.permute.xlu1 %845 }
  0xac   : > { %3233 = vmatpush1.bf16.msra.mxu0 %v3232_v26  ;;  %v900_v39 = vsel %vm5793_vm5, %v896_v31, %v846_v37  ;;  %v1020_v26 = vld [vmem:[%s5801_s1 + $0x3a0] sm:$0xff]  ;;  %v884_v31 = vsel %vm5794_vm4, %v4212_v23, %v3748_v18 }
  0xad   : > { %3235 = vmatprep.subr.bf16.mxu0 %v3234_v27  ;;  %2978 = vmatprep.mubr.msk.f32.mxu0 %vm867_vm6, %v900_v39  ;;  %v4522_v0 = vpop.permute.xlu0 %3756  ;;  %v1022_v27 = vld [vmem:[%s5801_s1 + $0x3b0] sm:$0xff]  ;;  %v888_v39 = vsel %vm5793_vm5, %v884_v31, %v3753_v28 }
  0xae   : > { %v3264_v36 = vpack.c.bf16 %v1022_v27, %v1020_v26  ;;  %v3758_v37 = vunpack.i.l.bf16 %v4522_v0  ;;  %v3759_v23 = vunpack.i.h.bf16 %v4522_v0  ;;  %v3847_v0 = vmov 0.0|0.0  }
  0xaf   : > { %v829_v6 = vpop.permute.xlu1 %828 }
  0xb0   : > { %3237 = vmatpush1.bf16.msra.mxu0 %v3236_v35  ;;  %v3754_v35 = vunpack.i.h.bf16 %v4508_v52  ;;  %v897_v34 = vsel %vm5794_vm4, %v4284_v60, %v829_v6  ;;  %v892_v42 = vsel %vm867_vm6, %v888_v39, %v3758_v37  ;;  %v1234_v39 = vld [vmem:[%s5804_s20] sm:$0xff] }
  0xb1   : > { %3239 = vmatprep.subr.bf16.mxu0 %v3238_v24  ;;  %v848_v11 = vpop.permute.xlu0 %847 }
  0xb2   : > { %v889_v49 = vsel %vm5793_vm5, %v885_v40, %v3754_v35  ;;  %v1326_v40 = vld [vmem:[%s5759_s4] sm:$0xff] }
  0xb3   : > { %v3762_v17 = vpop.permute.xlu1 %3761  ;;  %v893_v52 = vsel %vm867_vm6, %v889_v49, %v3759_v23  ;;  %v1419_v49 = vld [vmem:[%s5760_s5 + $0x20] sm:$0xff] }
  0xb4   : > { %3241 = vmatpush1.bf16.msra.mxu0 %v3240_v44  ;;  %v3763_v41 = vunpack.i.l.bf16 %v3762_v17  ;;  %v3764_v60 = vunpack.i.h.bf16 %v3762_v17 }
  0xb5   : > { %3243 = vmatprep.subr.bf16.mxu0 %v3242_v47  ;;  %v831_v25 = vpop.permute.xlu0 %830  ;;  %v901_v47 = vsel %vm5793_vm5, %v897_v34, %v848_v11  ;;  %v1415_v34 = vld [vmem:[%s5760_s5] sm:$0xff] }
  0xb6   : > { %v898_v50 = vsel %vm5794_vm4, %v4289_v61, %v831_v25  ;;  %v886_v46 = vsel %vm5794_vm4, %v4340_v16, %v3763_v41  ;;  %v887_v16 = vsel %vm5794_vm4, %v748_v14, %v3764_v60  ;;  %v4604_v14 = vshrl.u32 %v1026_v62, 7  ;;  %v1416_v41 = vld [vmem:[%s5760_s5 + $0x8] sm:$0xff] }
  0xb7   : > { %v3767_v32 = vpop.permute.xlu1 %3766  ;;  %v3287_v23 = vpack.c.bf16 %v1416_v41, %v1415_v34  ;;  %v1528_v41 = vld [vmem:[%s5761_s6 + $0x50] sm:$0xff] }
  0xb8   : > { %3245 = vmatpush1.bf16.msra.mxu0 %v3244_v53  ;;  %v3768_v44 = vunpack.i.l.bf16 %v3767_v32  ;;  %v3769_v56 = vunpack.i.h.bf16 %v3767_v32  ;;  %v1032_v3 = vsub.s32 1, %v4604_v14 }
  0xb9   : > { %3247 = vmatprep.subr.bf16.mxu0 %v3246_v54  ;;  %v850_v24 = vpop.permute.xlu0 %849 }
  0xba   : > { %v902_v54 = vsel %vm5793_vm5, %v898_v50, %v850_v24  ;;  %v890_v61 = vsel %vm5793_vm5, %v886_v46, %v3768_v44  ;;  %v891_v58 = vsel %vm5793_vm5, %v887_v16, %v3769_v56  ;;  %v1235_v24 = vld [vmem:[%s5804_s20 + $0x8] sm:$0x3f]  ;;  %v1421_v46 = vld [vmem:[%s5760_s5 + $0x30] sm:$0xff] }
  0xbb   : > { %v801_v43 = vpop.permute.xlu1 %800  ;;  %v1327_v44 = vld [vmem:[%s5759_s4 + $0x8] sm:$0x3f]  ;;  %v1425_v56 = vld [vmem:[%s5760_s5 + $0x50] sm:$0xff] }
  0xbc   : > { %3249 = vmatpush1.bf16.msra.mxu0 %v3248_v63  ;;  %v894_v20 = vsel %vm867_vm6, %v890_v61, %v801_v43  ;;  %v3846_v63 = vmov 0.0   ;;  %v1418_v43 = vld [vmem:[%s5760_s5 + $0x18] sm:$0xff]  ;;  %v1420_v50 = vld [vmem:[%s5760_s5 + $0x28] sm:$0xff] }
  0xbd   : > { %3251 = vmatprep.subr.bf16.mxu0 %v3250_v1  ;;  %v833_v51 = vpop.permute.xlu0 %832  ;;  %1313 = vmatprep.mubr.f32.mxu1 %v3846_v63  ;;  %v4607_v1 = vsub.s32 0, %v4604_v14  ;;  %v3293_v60 = vpack.c.bf16 %v1420_v50, %v1419_v49  ;;  %v1426_v61 = vld [vmem:[%s5760_s5 + $0x58] sm:$0xff]  ;;  %v2177_v14 = vld [vmem:[%s5764_s9] sm:$0x1f] }
  0xbe   : > { %v899_v38 = vsel %vm5794_vm4, %v813_v57, %v833_v51  ;;  %v1422_v51 = vld [vmem:[%s5760_s5 + $0x38] sm:$0xff]  ;;  %v3302_v16 = vpack.c.bf16 %v1426_v61, %v1425_v56  ;;  %vm1754_vm4 = vcmask 441344  }
  0xbf   : > { %v852_v53 = vpop.permute.xlu1 %851  ;;  %v1029_v21 = vrot.slane %v1024_v2, %v4607_v1  ;;  %v1533_v49 = vld [vmem:[%s5761_s6 + $0x78] sm:$0xff] }
  0xc0   : > { %3253 = vmatpush1.bf16.msra.mxu0 %v3252_v5  ;;  %v903_v33 = vsel %vm5793_vm5, %v899_v38, %v852_v53  ;;  %v1033_v5 = vrot.slane %v1024_v2, %v1032_v3  ;;  %v3296_v38 = vpack.c.bf16 %v1422_v51, %v1421_v46  ;;  %v1424_v53 = vld [vmem:[%s5760_s5 + $0x48] sm:$0xff]  ;;  %v1431_v2 = vld [vmem:[%s5760_s5 + $0x80] sm:$0xff]  ;;  %vm1749_vm5 = vcmask 211968  }
  0xc1   : > { %3255 = vmatprep.subr.bf16.mxu0 %v3254_v8  ;;  %v803_v57 = vpop.permute.xlu0 %802  ;;  %v1535_v46 = vld [vmem:[%s5761_s6 + $0x88] sm:$0xff] }
  0xc2   : > { %v895_v59 = vsel %vm867_vm6, %v891_v58, %v803_v57  ;;  %v1429_v58 = vld [vmem:[%s5760_s5 + $0x70] sm:$0xff] }
  0xc4   : > { %3257 = vmatpush1.bf16.msra.mxu0 %v3256_v12 }
  0xc5   : > { %3259 = vmatprep.subr.bf16.mxu0 %v3258_v13 }
  0xc8   : > { %3261 = vmatpush1.bf16.msra.mxu0 %v3260_v19 }
  0xc9   : > { %3263 = vmatprep.subr.bf16.mxu0 %v3262_v22 }
  0xcc   : > { %3265 = vmatpush1.bf16.msra.mxu0 %v3264_v36 }
  0xcd   : > { %3462 = vmatprep.subr.bf16.mxu0 %v3847_v0 }
  0xcf   : > { %1202 = vmatmul.mubr.f32.vlgmr.msra.gmra.mrb[0].mxu0 %v892_v42  ;;  %v1417_v42 = vld [vmem:[%s5760_s5 + $0x10] sm:$0xff] }
  0xd0   : > { %2979 = vmatprep.mubr.msk.f32.mxu0 %vm867_vm6, %v901_v47  ;;  %v3290_v47 = vpack.c.bf16 %v1418_v43, %v1417_v42  ;;  %v1530_v42 = vld [vmem:[%s5761_s6 + $0x60] sm:$0xff]  ;;  %v1531_v43 = vld [vmem:[%s5761_s6 + $0x68] sm:$0xff] }
  0xd3   : > { %1208 = vmatmul.mubr.f32.gmra.mrb[2].mxu0 %v893_v52  ;;  %v1423_v52 = vld [vmem:[%s5760_s5 + $0x40] sm:$0xff] }
  0xd4   : > { %2980 = vmatprep.mubr.msk.f32.mxu0 %vm867_vm6, %v902_v54  ;;  %v3299_v54 = vpack.c.bf16 %v1424_v53, %v1423_v52  ;;  %v1537_v52 = vld [vmem:[%s5761_s6 + $0x98] sm:$0xff] }
  0xd7   : > { %1214 = vmatmul.mubr.f32.gmra.mrb[4].mxu0 %v894_v20  ;;  %v1428_v20 = vld [vmem:[%s5760_s5 + $0x68] sm:$0xff] }
  0xd8   : > { %2981 = vmatprep.mubr.msk.f32.mxu0 %vm867_vm6, %v903_v33  ;;  %v1427_v33 = vld [vmem:[%s5760_s5 + $0x60] sm:$0xff] }
  0xd9   : > { %v3305_v57 = vpack.c.bf16 %v1428_v20, %v1427_v33 }
  0xdb   : > { %1220 = vmatmul.mubr.f32.gmra.mrb[6].mxu0 %v895_v59  ;;  %v1430_v59 = vld [vmem:[%s5760_s5 + $0x78] sm:$0xff] }
  0xdc   : > { %v3308_v62 = vpack.c.bf16 %v1430_v59, %v1429_v58 }
 0x1a2   : > { %v1203_v4 = vpop.f32.mrb[0].mxu0 }
 0x1a3   : > { %v1205_v6 = vpop.f32.mrb[1].mxu0  ;;  %v3629_v8 = vadd.f32 %v1203_v4, %v1029_v21 }
 0x1a4   : > { %v3630_v9 = vadd.f32 %v1205_v6, %v1033_v5  ;;  %v1434_v6 = vld [vmem:[%s5760_s5 + $0x98] sm:$0xff] }
 0x1a5   : > { %v1226_v12 = vmax.f32 %v3629_v8, 0.0 }
 0x1a6   : > { %v1209_v45 = vpop.f32.mrb[2].mxu0  ;;  %v1227_v30 = vmax.f32 %v3630_v9, 0.0  ;;  %v1435_v9 = vld [vmem:[%s5760_s5 + $0xa0] sm:$0xff] }
 0x1a7   : > { %v3631_v55 = vadd.f32 %v1209_v45, %v1029_v21  ;;  %v1211_v10 = vpop.f32.mrb[3].mxu0 }
 0x1a8   : > { %v3632_v11 = vadd.f32 %v1211_v10, %v1033_v5 }
 0x1a9   : > { %v1228_v13 = vmax.f32 %v3631_v55, 0.0 }
 0x1aa   : > { %v1229_v15 = vmax.f32 %v3632_v11, 0.0  ;;  %v1215_v17 = vpop.f32.mrb[4].mxu0 }
 0x1ab   : > { %v1217_v7 = vpop.f32.mrb[5].mxu0  ;;  %v3268_v48 = vpack.c.bf16 %v1228_v13, %v1226_v12  ;;  %v3633_v19 = vadd.f32 %v1215_v17, %v1029_v21  ;;  %v1518_v12 = vld [vmem:[%s5761_s6] sm:$0xff]  ;;  %v1519_v13 = vld [vmem:[%s5761_s6 + $0x8] sm:$0xff] }
 0x1ac   : > { %v3266_v18 = vpack.c.bf16 %v1229_v15, %v1227_v30  ;;  %v3634_v25 = vadd.f32 %v1217_v7, %v1033_v5 }
 0x1ad   : > { %v1230_v29 = vmax.f32 %v3633_v19, 0.0  ;;  %v1521_v19 = vld [vmem:[%s5761_s6 + $0x18] sm:$0xff] }
 0x1ae   : > { %v1221_v22 = vpop.f32.mrb[6].mxu0  ;;  %3267 = vmatprep.subr.bf16.mxu1 %v3266_v18  ;;  %v1231_v32 = vmax.f32 %v3634_v25, 0.0 }
 0x1af   : > { %v3635_v26 = vadd.f32 %v1221_v22, %v1029_v21  ;;  %v1223_v27 = vpop.f32.mrb[7].mxu0  ;;  %3269 = vmatpush1.bf16.msra.mxu1 %v3268_v48  ;;  %v1432_v21 = vld [vmem:[%s5760_s5 + $0x88] sm:$0xff] }
 0x1b0   : > { %v3636_v28 = vadd.f32 %v1223_v27, %v1033_v5  ;;  %v3311_v4 = vpack.c.bf16 %v1432_v21, %v1431_v2  ;;  %v1433_v5 = vld [vmem:[%s5760_s5 + $0x90] sm:$0xff] }
 0x1b1   : > { %v1232_v31 = vmax.f32 %v3635_v26, 0.0  ;;  %v3314_v8 = vpack.c.bf16 %v1434_v6, %v1433_v5 }
 0x1b2   : > { %v1233_v36 = vmax.f32 %v3636_v28, 0.0 }
 0x1b3   : > { %v3273_v37 = vpack.c.bf16 %v1232_v31, %v1230_v29  ;;  %v1522_v29 = vld [vmem:[%s5761_s6 + $0x20] sm:$0xff]  ;;  %v1523_v31 = vld [vmem:[%s5761_s6 + $0x28] sm:$0xff] }
 0x1b4   : > { %v3270_v35 = vpack.c.bf16 %v1233_v36, %v1231_v32  ;;  %v3323_v32 = vpack.c.bf16 %v1523_v31, %v1522_v29  ;;  %v1524_v36 = vld [vmem:[%s5761_s6 + $0x30] sm:$0xff] }
 0x1b5   : > { %v1899_v29 = vld [vmem:[%s5762_s7 + $0x10] sm:$0xff] }
 0x1b6   : > { %3272 = vmatprep.subr.msk.bf16.mxu1 %vm3271_vm8, %v3270_v35 }
 0x1b7   : > { %3275 = vmatpush1.bf16.msk.msra.mxu1 %vm3271_vm8, %v3273_v37 }
 0x1b8   : > { %3277 = vmatprep.subr.bf16.mxu1 %v3266_v18  ;;  %v1520_v18 = vld [vmem:[%s5761_s6 + $0x10] sm:$0xff] }
 0x1b9   : > { %v3320_v28 = vpack.c.bf16 %v1521_v19, %v1520_v18 }
 0x1ba   : > { %2984 = vmatmul.mubr.msk.f32.vlgmr.msra.gmra.mrb[0].mxu1 %vm1236_vm9, %v1234_v39  ;;  %v1526_v39 = vld [vmem:[%s5761_s6 + $0x40] sm:$0xff] }
 0x1bb   : > { %3279 = vmatpush1.bf16.msra.mxu1 %v3268_v48  ;;  %1319 = vmatprep.mubr.f32.mxu1 %v3846_v63  ;;  %v3317_v48 = vpack.c.bf16 %v1519_v13, %v1518_v12 }
 0x1bc   : > { %3282 = vmatprep.subr.msk.bf16.mxu1 %vm3271_vm8, %v3270_v35 }
 0x1be   : > { %2985 = vmatmul.mubr.msk.f32.gmra.mrb[2].mxu1 %vm1236_vm9, %v1235_v24  ;;  %v1527_v24 = vld [vmem:[%s5761_s6 + $0x48] sm:$0xff] }
 0x1bf   : > { %3285 = vmatpush1.bf16.msk.msra.mxu1 %vm3271_vm8, %v3273_v37  ;;  %1398 = vmatprep.mubr.f32.mxu1 %v3846_v63  ;;  %v1525_v37 = vld [vmem:[%s5761_s6 + $0x38] sm:$0xff]  ;;  %v3329_v34 = vpack.c.bf16 %v1527_v24, %v1526_v39  ;;  %v1903_v24 = vld [vmem:[%s5762_s7 + $0x30] sm:$0xff]  ;;  %vm1743_vm8 = vcmask 1031168  }
 0x1c0   : > { %3286 = vmatprep.subr.bf16.mxu1 %v3847_v0  ;;  %v3326_v35 = vpack.c.bf16 %v1525_v37, %v1524_v36  ;;  %v1902_v36 = vld [vmem:[%s5762_s7 + $0x28] sm:$0xff]  ;;  %v1904_v37 = vld [vmem:[%s5762_s7 + $0x38] sm:$0xff] }
 0x1c1   : > { %v3350_v39 = vpack.c.bf16 %v1904_v37, %v1902_v36  ;;  %v1933_v36 = vld [vmem:[%s5762_s7 + $0x120] sm:$0xff]  ;;  %v1935_v37 = vld [vmem:[%s5762_s7 + $0x130] sm:$0xff] }
 0x1c2   : > { %2988 = vmatmul.mubr.msk.f32.vlgmr.msra.gmra.mrb[4].mxu1 %vm1236_vm9, %v1326_v40  ;;  %v1529_v40 = vld [vmem:[%s5761_s6 + $0x58] sm:$0xff] }
 0x1c3   : > { %1404 = vmatprep.mubr.f32.mxu1 %v3846_v63  ;;  %3288 = vmatpush1.bf16.msra.mxu1 %v3287_v23  ;;  %v3332_v23 = vpack.c.bf16 %v1529_v40, %v1528_v41  ;;  %v1906_v41 = vld [vmem:[%s5762_s7 + $0x48] sm:$0xff]  ;;  %v1908_v40 = vld [vmem:[%s5762_s7 + $0x58] sm:$0xff] }
 0x1c4   : > { %3289 = vmatprep.subr.bf16.mxu1 %v3847_v0 }
 0x1c6   : > { %2989 = vmatmul.mubr.msk.f32.gmra.mrb[6].mxu1 %vm1236_vm9, %v1327_v44  ;;  %v3335_v44 = vpack.c.bf16 %v1531_v43, %v1530_v42  ;;  %v3354_v42 = vpack.c.bf16 %v1908_v40, %v1906_v41  ;;  %v1907_v43 = vld [vmem:[%s5762_s7 + $0x50] sm:$0xff]  ;;  %v1937_v41 = vld [vmem:[%s5762_s7 + $0x140] sm:$0xff] }
 0x1c7   : > { %3291 = vmatpush1.bf16.msra.mxu1 %v3290_v47  ;;  %v1532_v47 = vld [vmem:[%s5761_s6 + $0x70] sm:$0xff] }
 0x1c8   : > { %3292 = vmatprep.subr.bf16.mxu1 %v3847_v0  ;;  %v3338_v50 = vpack.c.bf16 %v1533_v49, %v1532_v47  ;;  %v1912_v47 = vld [vmem:[%s5762_s7 + $0x78] sm:$0xff]  ;;  %v1939_v40 = vld [vmem:[%s5762_s7 + $0x150] sm:$0xff] }
 0x1cb   : > { %3294 = vmatpush1.bf16.msra.mxu1 %v3293_v60  ;;  %v1534_v60 = vld [vmem:[%s5761_s6 + $0x80] sm:$0xff] }
 0x1cc   : > { %3295 = vmatprep.subr.bf16.mxu1 %v3847_v0  ;;  %v3341_v51 = vpack.c.bf16 %v1535_v46, %v1534_v60  ;;  %v1909_v60 = vld [vmem:[%s5762_s7 + $0x60] sm:$0xff]  ;;  %v1911_v46 = vld [vmem:[%s5762_s7 + $0x70] sm:$0xff] }
 0x1cf   : > { %3297 = vmatpush1.bf16.msra.mxu1 %v3296_v38  ;;  %v1536_v38 = vld [vmem:[%s5761_s6 + $0x90] sm:$0xff] }
 0x1d0   : > { %3298 = vmatprep.subr.bf16.mxu1 %v3847_v0  ;;  %v3344_v53 = vpack.c.bf16 %v1537_v52, %v1536_v38  ;;  %v1916_v38 = vld [vmem:[%s5762_s7 + $0x98] sm:$0xff]  ;;  %v3360_v52 = vpack.c.bf16 %v1911_v46, %v1909_v60 }
 0x1d1   : > { %v1948_v60 = vld [vmem:[%s5762_s7 + $0x198] sm:$0xff] }
 0x1d3   : > { %3300 = vmatpush1.bf16.msra.mxu1 %v3299_v54  ;;  %v1538_v54 = vld [vmem:[%s5761_s6 + $0xa0] sm:$0xff] }
 0x1d4   : > { %3301 = vmatprep.subr.bf16.mxu1 %v3847_v0 }
 0x1d7   : > { %3303 = vmatpush1.bf16.msra.mxu1 %v3302_v16 }
 0x1d8   : > { %3304 = vmatprep.subr.bf16.mxu1 %v3847_v0 }
 0x1db   : > { %3306 = vmatpush1.bf16.msra.mxu1 %v3305_v57 }
 0x1dc   : > { %3307 = vmatprep.subr.bf16.mxu1 %v3847_v0 }
 0x1df   : > { %3309 = vmatpush1.bf16.msra.mxu1 %v3308_v62 }
 0x1e0   : > { %3310 = vmatprep.subr.bf16.mxu1 %v3847_v0 }
 0x1e3   : > { %3312 = vmatpush1.bf16.msra.mxu1 %v3311_v4 }
 0x1e4   : > { %3313 = vmatprep.subr.bf16.mxu1 %v3847_v0 }
 0x1e7   : > { %3315 = vmatpush1.bf16.msra.mxu1 %v3314_v8 }
 0x1e8   : > { %1483 = vmatprep.subr.mxu1 %v3846_v63 }
 0x1eb   : > { %1484 = vmatpush1.msra.mxu1 %v1435_v9 }
 0x1ec   : > { %3316 = vmatprep.subr.bf16.mxu1 %v3847_v0 }
 0x28d   : > { %v1315_v45 = vpop.f32.mrb[0].mxu1 }
 0x28e   : > { %v1317_v55 = vpop.f32.mrb[1].mxu1 }
 0x291   : > { %v1321_v10 = vpop.f32.mrb[2].mxu1 }
 0x292   : > { %v1323_v11 = vpop.f32.mrb[3].mxu1 }
 0x295   : > { %v1400_v30 = vpop.f32.mrb[4].mxu1 }
 0x296   : > { %v1411_v15 = vmax.f32 %v1315_v45, %v1400_v30  ;;  %v1402_v17 = vpop.f32.mrb[5].mxu1 }
 0x297   : > { %v1412_v7 = vmax.f32 %v1317_v55, %v1402_v17 }
 0x299   : > { %v1406_v25 = vpop.f32.mrb[6].mxu1  ;;  %2990 = vmatprep.mubr.msk.f32.mxu1 %vm1436_vm10, %v1412_v7 }
 0x29a   : > { %v1413_v22 = vmax.f32 %v1321_v10, %v1406_v25  ;;  %v1408_v26 = vpop.f32.mrb[7].mxu1  ;;  %1508 = vmatmul.mubr.f32.vlgmr.msra.gmra.mrb[8].mxu1 %v1411_v15 }
 0x29b   : > { %v1414_v27 = vmax.f32 %v1323_v11, %v1408_v26  ;;  %3318 = vmatpush1.bf16.msra.mxu1 %v3317_v48  ;;  %v1900_v26 = vld [vmem:[%s5762_s7 + $0x18] sm:$0xff] }
 0x29c   : > { %3319 = vmatprep.subr.bf16.mxu1 %v3847_v0 }
 0x29d   : > { %2991 = vmatprep.mubr.msk.f32.mxu1 %vm1436_vm10, %v1414_v27 }
 0x29e   : > { %1513 = vmatmul.mubr.f32.gmra.mrb[10].mxu1 %v1413_v22 }
 0x29f   : > { %3321 = vmatpush1.bf16.msra.mxu1 %v3320_v28  ;;  %2992 = vmatprep.mubr.msk.f32.mxu1 %vm1436_vm10, %v1412_v7 }
 0x2a0   : > { %3322 = vmatprep.subr.bf16.mxu1 %v3847_v0 }
 0x2a3   : > { %3324 = vmatpush1.bf16.msra.mxu1 %v3323_v32 }
 0x2a4   : > { %3325 = vmatprep.subr.bf16.mxu1 %v3847_v0 }
 0x2a7   : > { %3327 = vmatpush1.bf16.msra.mxu1 %v3326_v35  ;;  %v1901_v35 = vld [vmem:[%s5762_s7 + $0x20] sm:$0xff] }
 0x2a8   : > { %3328 = vmatprep.subr.bf16.mxu1 %v3847_v0 }
 0x2ab   : > { %3330 = vmatpush1.bf16.msra.mxu1 %v3329_v34  ;;  %v3352_v34 = vpack.c.bf16 %v1903_v24, %v1901_v35  ;;  %v1938_v35 = vld [vmem:[%s5762_s7 + $0x148] sm:$0xff]  ;;  %v3384_v24 = vpack.c.bf16 %v1935_v37, %v1933_v36 }
 0x2ac   : > { %3331 = vmatprep.subr.bf16.mxu1 %v3847_v0 }
 0x2af   : > { %3333 = vmatpush1.bf16.msra.mxu1 %v3332_v23  ;;  %v1905_v23 = vld [vmem:[%s5762_s7 + $0x40] sm:$0xff] }
 0x2b0   : > { %3334 = vmatprep.subr.bf16.mxu1 %v3847_v0  ;;  %v3356_v49 = vpack.c.bf16 %v1907_v43, %v1905_v23  ;;  %v1942_v23 = vld [vmem:[%s5762_s7 + $0x168] sm:$0xff]  ;;  %v3388_v43 = vpack.c.bf16 %v1939_v40, %v1937_v41 }
 0x2b3   : > { %3336 = vmatpush1.bf16.msra.mxu1 %v3335_v44  ;;  %v1910_v44 = vld [vmem:[%s5762_s7 + $0x68] sm:$0xff] }
 0x2b4   : > { %3337 = vmatprep.subr.bf16.mxu1 %v3847_v0 }
 0x2b7   : > { %3339 = vmatpush1.bf16.msra.mxu1 %v3338_v50  ;;  %v3358_v50 = vpack.c.bf16 %v1912_v47, %v1910_v44  ;;  %v1941_v47 = vld [vmem:[%s5762_s7 + $0x160] sm:$0xff] }
 0x2b8   : > { %3340 = vmatprep.subr.bf16.mxu1 %v3847_v0 }
 0x2bb   : > { %3342 = vmatpush1.bf16.msra.mxu1 %v3341_v51  ;;  %v1914_v51 = vld [vmem:[%s5762_s7 + $0x88] sm:$0xff] }
 0x2bc   : > { %3343 = vmatprep.subr.bf16.mxu1 %v3847_v0 }
 0x2bf   : > { %3345 = vmatpush1.bf16.msra.mxu1 %v3344_v53  ;;  %v3362_v53 = vpack.c.bf16 %v1916_v38, %v1914_v51  ;;  %v1945_v38 = vld [vmem:[%s5762_s7 + $0x180] sm:$0xff] }
 0x2c0   : > { %1579 = vmatprep.subr.mxu1 %v3846_v63 }
 0x2c3   : > { %1580 = vmatpush1.msra.mxu1 %v1538_v54  ;;  %v1913_v54 = vld [vmem:[%s5762_s7 + $0x80] sm:$0xff] }
 0x2c4   : > { %1604 = vmatmul.mubr.f32.vlgmr.msra.gmra.mrb[12].mxu1 %v1411_v15 }
 0x2c5   : > { %2993 = vmatprep.mubr.msk.f32.mxu1 %vm1436_vm10, %v1414_v27  ;;  %v1897_v27 = vld [vmem:[%s5762_s7] sm:$0xff] }
 0x2c6   : > { %v3348_v31 = vpack.c.bf16 %v1899_v29, %v1897_v27  ;;  %v1934_v27 = vld [vmem:[%s5762_s7 + $0x128] sm:$0xff] }
 0x2c8   : > { %1609 = vmatmul.mubr.f32.gmra.mrb[14].mxu1 %v1413_v22  ;;  %v1898_v22 = vld [vmem:[%s5762_s7 + $0x8] sm:$0xff] }
 0x2c9   : > { %v3346_v28 = vpack.c.bf16 %v1900_v26, %v1898_v22  ;;  %v1929_v22 = vld [vmem:[%s5762_s7 + $0x100] sm:$0xff]  ;;  %v1931_v26 = vld [vmem:[%s5762_s7 + $0x110] sm:$0xff] }
 0x2ca   : > { %v3380_v29 = vpack.c.bf16 %v1931_v26, %v1929_v22 }
 0x2cb   : > { %3347 = vmatprep.subr.bf16.mxu1 %v3346_v28  ;;  %v1936_v28 = vld [vmem:[%s5762_s7 + $0x138] sm:$0xff] }
 0x2cc   : > { %3349 = vmatpush1.bf16.msra.mxu1 %v3348_v31  ;;  %v3382_v31 = vpack.c.bf16 %v1936_v28, %v1934_v27 }
 0x2cd   : > { %3351 = vmatprep.subr.bf16.mxu1 %v3350_v39  ;;  %v1940_v39 = vld [vmem:[%s5762_s7 + $0x158] sm:$0xff] }
 0x2d0   : > { %3353 = vmatpush1.bf16.msra.mxu1 %v3352_v34  ;;  %v3386_v34 = vpack.c.bf16 %v1940_v39, %v1938_v35 }
 0x2d1   : > { %3355 = vmatprep.subr.bf16.mxu1 %v3354_v42  ;;  %v1944_v42 = vld [vmem:[%s5762_s7 + $0x178] sm:$0xff] }
 0x2d2   : > { %v3390_v44 = vpack.c.bf16 %v1944_v42, %v1942_v23 }
 0x2d4   : > { %3357 = vmatpush1.bf16.msra.mxu1 %v3356_v49  ;;  %v1943_v49 = vld [vmem:[%s5762_s7 + $0x170] sm:$0xff] }
 0x2d5   : > { %3359 = vmatprep.subr.bf16.mxu1 %v3358_v50  ;;  %v1946_v50 = vld [vmem:[%s5762_s7 + $0x188] sm:$0xff]  ;;  %v3392_v46 = vpack.c.bf16 %v1943_v49, %v1941_v47 }
 0x2d6   : > { %v3394_v51 = vpack.c.bf16 %v1948_v60, %v1946_v50 }
 0x2d8   : > { %3361 = vmatpush1.bf16.msra.mxu1 %v3360_v52  ;;  %v1947_v52 = vld [vmem:[%s5762_s7 + $0x190] sm:$0xff] }
 0x2d9   : > { %3363 = vmatprep.subr.bf16.mxu1 %v3362_v53  ;;  %v1950_v53 = vld [vmem:[%s5762_s7 + $0x1a8] sm:$0xff] }
 0x36d   : > { %v1509_v56 = vpop.f32.mrb[8].mxu1 }
 0x36e   : > { %v1511_v61 = vpop.f32.mrb[9].mxu1 }
 0x36f   : > { %v1918_v61 = vld [vmem:[%s5762_s7 + $0xa8] sm:$0xff] }
 0x371   : > { %v1514_v16 = vpop.f32.mrb[10].mxu1 }
 0x372   : > { %v1516_v33 = vpop.f32.mrb[11].mxu1 }
 0x397   : > { %v1605_v20 = vpop.f32.mrb[12].mxu1 }
 0x398   : > { %v4789_v57 = vmax.f32 %v1509_v56, %v1605_v20  ;;  %v1607_v58 = vpop.f32.mrb[13].mxu1  ;;  %v1915_v56 = vld [vmem:[%s5762_s7 + $0x90] sm:$0xff] }
 0x399   : > { %v3364_v33 = vpack.c.bf16 %v1915_v56, %v1913_v54  ;;  %v1917_v58 = vld [vmem:[%s5762_s7 + $0xa0] sm:$0xff]  ;;  %v1952_v54 = vld [vmem:[%s5762_s7 + $0x1b8] sm:$0xff]  ;;  %v3396_v56 = vpack.c.bf16 %v1947_v52, %v1945_v38 }
 0x39a   : > { %v1627_v21 = vrot.slane %v4789_v57, 2  ;;  %v1618_v4 = vrot.slane %v4789_v57, 1  ;;  %v1636_v12 = vrot.slane %v4789_v57, 3  ;;  %v4823_v15 = vrot.slane %v4789_v57, 7 }
 0x39b   : > { %v1610_v59 = vpop.f32.mrb[14].mxu1  ;;  %v1645_v18 = vrot.slane %v4789_v57, 4  ;;  %3365 = vmatpush1.bf16.msra.mxu1 %v3364_v33  ;;  %v1951_v33 = vld [vmem:[%s5762_s7 + $0x1b0] sm:$0xff] }
 0x39c   : > { %v4791_v62 = vmax.f32 %v1514_v16, %v1610_v59  ;;  %v1612_v2 = vpop.f32.mrb[15].mxu1  ;;  %v1920_v16 = vld [vmem:[%s5762_s7 + $0xb8] sm:$0xff]  ;;  %v1919_v59 = vld [vmem:[%s5762_s7 + $0xb0] sm:$0xff] }
 0x39d   : > { %v3366_v20 = vpack.c.bf16 %v1920_v16, %v1918_v61  ;;  %v1922_v2 = vld [vmem:[%s5762_s7 + $0xc8] sm:$0xff]  ;;  %v3398_v61 = vpack.c.bf16 %v1952_v54, %v1950_v53  ;;  %v1949_v16 = vld [vmem:[%s5762_s7 + $0x1a0] sm:$0xff] }
 0x39e   : > { %v3775_v5 = vpack.i.bf16 %v4791_v62, %v4789_v57  ;;  %v4798_v6 = vrot.slane %v4791_v62, 2  ;;  %v4801_v8 = vrot.slane %v4791_v62, 1  ;;  %v4811_v11 = vrot.slane %v4791_v62, 3 }
 0x39f   : > { %v1785_v17 = vrot.slane %v4791_v62, 7  ;;  %v1646_v48 = vrot.slane %v4791_v62, 4  ;;  %3367 = vmatprep.subr.bf16.mxu1 %v3366_v20  ;;  %v1954_v20 = vld [vmem:[%s5762_s7 + $0x1c8] sm:$0xff] }
 0x3a0   : > { %3776 = vrot.lane.b32.xlu0 %v3775_v5, %s3849_s21  ;;  %3771 = vrot.lane.b32.xlu1 %v3775_v5, %s3850_s25  ;;  %v1629_v9 = vsel %vm637_vm1, %v1627_v21, %v4798_v6  ;;  %v1620_v45 = vsel %vm617_vm0, %v1618_v4, %v4801_v8  ;;  %v4816_v13 = vsel %vm657_vm2, %v1636_v12, %v4811_v11  ;;  %s5791_s25 = smov 98   ;;  %v1924_v21 = vld [vmem:[%s5762_s7 + $0xd8] sm:$0xff]  ;;  %vm1734_vm1 = vcmask 687104  }
 0x3a1   : > { %v3785_v55 = vpack.i.bf16 %v4798_v6, %v1629_v9  ;;  %v3780_v10 = vpack.i.bf16 %v4801_v8, %v1620_v45  ;;  %v3800_v30 = vpack.i.bf16 %v4811_v11, %v4816_v13  ;;  %v4830_v7 = vsel %vm1783_vm11, %v4823_v15, %v1785_v17  ;;  %v1927_v17 = vld [vmem:[%s5762_s7 + $0xf0] sm:$0xff] }
 0x3a2   : > { %v1647_v19 = vsel %vm677_vm3, %v1645_v18, %v1646_v48  ;;  %v4882_v32 = vpack.i.bf16 %v4791_v62, %v1646_v48  ;;  %v3368_v4 = vpack.c.bf16 %v1919_v59, %v1917_v58  ;;  %v3370_v5 = vpack.c.bf16 %v1924_v21, %v1922_v2  ;;  %v1930_v48 = vld [vmem:[%s5762_s7 + $0x108] sm:$0xff]  ;;  %v1932_v18 = vld [vmem:[%s5762_s7 + $0x118] sm:$0xff]  ;;  %v1953_v21 = vld [vmem:[%s5762_s7 + $0x1c0] sm:$0xff] }
 0x3a3   : > { %v3805_v25 = vpack.i.bf16 %v4789_v57, %v1647_v19  ;;  %v1956_v58 = vld [vmem:[%s5762_s7 + $0x1d8] sm:$0xff]  ;;  %v3400_v59 = vpack.c.bf16 %v1951_v33, %v1949_v16  ;;  %vm1737_vm2 = vcmask 801792   ;;  %vm1740_vm3 = vcmask 916480  }
 0x3a4   : > { %3786 = vrot.lane.b32.xlu1 %v3785_v55, %s3851_s26  ;;  %3781 = vrot.lane.b32.xlu0 %v3780_v10, %s3852_s22  ;;  %s5786_s26 = smov 112   ;;  %s5783_s22 = smov 126   ;;  %v3402_v2 = vpack.c.bf16 %v1956_v58, %v1954_v20  ;;  %vm1746_vm11 = vcmask 97280  }
 0x3a5   : > { %3369 = vmatpush1.bf16.msra.mxu1 %v3368_v4  ;;  %v1955_v4 = vld [vmem:[%s5762_s7 + $0x1d0] sm:$0xff] }
 0x3a6   : > { %3371 = vmatprep.subr.bf16.mxu1 %v3370_v5  ;;  %v1958_v5 = vld [vmem:[%s5762_s7 + $0x1e8] sm:$0xff] }
 0x3a8   : > { %3791 = vrot.lane.b32.xlu1 %v3780_v10, %s5781_s2  ;;  %3796 = vrot.lane.b32.xlu0 %v3785_v55, %s5782_s23  ;;  %v1928_v55 = vld [vmem:[%s5762_s7 + $0xf8] sm:$0xff] }
 0x3ac   : > { %3801 = vrot.lane.b32.xlu1 %v3800_v30, %s5784_s29  ;;  %1813 = vrot.lane.b32.xlu0 %v4823_v15, %s5784_s29  ;;  %v1925_v30 = vld [vmem:[%s5762_s7 + $0xe0] sm:$0xff] }
 0x3ad   : > { %v3376_v19 = vpack.c.bf16 %v1927_v17, %v1925_v30 }
 0x3b0   : > { %1815 = vrot.lane.b32.xlu1 %v4830_v7, %s5784_s29  ;;  %1819 = vrot.lane.b32.xlu0 %v4789_v57, %s5792_s27 }
 0x3b4   : > { %1821 = vrot.lane.b32.xlu1 %v4791_v62, %s5792_s27  ;;  %1825 = vrot.lane.b32.xlu0 %v1620_v45, %s5790_s28 }
 0x3b8   : > { %1827 = vrot.lane.b32.xlu1 %v4801_v8, %s5790_s28  ;;  %1831 = vrot.lane.b32.xlu0 %v1629_v9, %s5791_s25 }
 0x3bc   : > { %1833 = vrot.lane.b32.xlu1 %v4798_v6, %s5791_s25  ;;  %1837 = vrot.lane.b32.xlu0 %v4816_v13, %s5786_s26 }
 0x3c0   : > { %1839 = vrot.lane.b32.xlu1 %v4811_v11, %s5786_s26  ;;  %1621 = vrot.lane.b32.xlu0 %v1620_v45, %s3849_s21 }
 0x3c4   : > { %1630 = vrot.lane.b32.xlu1 %v1629_v9, %s5781_s2  ;;  %3806 = vrot.lane.b32.xlu0 %v3805_v25, %s5786_s26  ;;  %s5789_s2 = smov 40   ;;  %s5814_s26 = smov 26  }
 0x3c8   : > { %1639 = vrot.lane.b32.xlu1 %v4816_v13, %s5782_s23  ;;  %1690 = vrot.lane.b32.xlu0 %v1620_v45, %s5783_s22  ;;  %s5805_s22 = smov 112   ;;  %s5808_s23 = smov 70  }
 0x3cc   : > { %3811 = vrot.lane.b32.xlu1 %v3805_v25, %s5784_s29  ;;  %1696 = vrot.lane.b32.xlu0 %v1629_v9, %s5785_s24  ;;  %s5806_s29 = smov 126   ;;  %s5807_s24 = smov 12  }
 0x3d0   : > { %1702 = vrot.lane.b32.xlu1 %v4816_v13, %s5788_s3  ;;  %1660 = vrot.lane.b32.xlu0 %v1620_v45, %s5792_s27  ;;  %v1926_v45 = vld [vmem:[%s5762_s7 + $0xe8] sm:$0xff]  ;;  %s5813_s3 = smov 56  }
 0x3d1   : > { %v3374_v12 = vpack.c.bf16 %v1928_v55, %v1926_v45  ;;  %v3404_v55 = vpack.c.bf16 %v1955_v4, %v1953_v21 }
 0x3d4   : > { %3816 = vrot.lane.b32.xlu1 %v3805_v25, %s5789_s2  ;;  %1666 = vrot.lane.b32.xlu0 %v1629_v9, %s5790_s28  ;;  %s5809_s28 = smov 84   ;;  %v1923_v9 = vld [vmem:[%s5762_s7 + $0xd0] sm:$0xff]  ;;  %v3378_v25 = vpack.c.bf16 %v1932_v18, %v1930_v48  ;;  %s5816_s2 = smov 98  }
 0x3d8   : > { %1672 = vrot.lane.b32.xlu1 %v4816_v13, %s5791_s25 }
 0x3dc   : > { %1623 = vrot.lane.b32.xlu1 %v4801_v8, %s3849_s21  ;;  %s5815_s21 = smov 40  }
 0x3e0   : > { %3821 = vrot.lane.b32.xlu1 %v4882_v32, %s5805_s22 }
 0x3e4   : > { %1692 = vrot.lane.b32.xlu1 %v4801_v8, %s5806_s29  ;;  %s5812_s29 = smov 42  }
 0x3e8   : > { %1698 = vrot.lane.b32.xlu1 %v4798_v6, %s5807_s24  ;;  %s5811_s24 = smov 28  }
 0x3ec   : > { %1662 = vrot.lane.b32.xlu1 %v4801_v8, %s5808_s23  ;;  %v1921_v8 = vld [vmem:[%s5762_s7 + $0xc0] sm:$0xff]  ;;  %s5810_s23 = smov 96  }
 0x3ed   : > { %v3372_v10 = vpack.c.bf16 %v1923_v9, %v1921_v8  ;;  %v1960_v8 = vld [vmem:[%s5762_s7 + $0x1f8] sm:$0xff] }
 0x3ee   : > { %v3406_v30 = vpack.c.bf16 %v1960_v8, %v1958_v5 }
 0x3ef   : > { %3373 = vmatpush1.bf16.msra.mxu1 %v3372_v10  ;;  %v1957_v10 = vld [vmem:[%s5762_s7 + $0x1e0] sm:$0xff] }
 0x3f0   : > { %1668 = vrot.lane.b32.xlu1 %v4798_v6, %s5809_s28  ;;  %3375 = vmatprep.subr.bf16.mxu1 %v3374_v12  ;;  %v1959_v12 = vld [vmem:[%s5762_s7 + $0x1f0] sm:$0xff] }
 0x3f3   : > { %3377 = vmatpush1.bf16.msra.mxu1 %v3376_v19 }
 0x3f4   : > { %3379 = vmatprep.subr.bf16.mxu1 %v3378_v25  ;;  %v3408_v25 = vpack.c.bf16 %v1959_v12, %v1957_v10 }
 0x3f7   : > { %3381 = vmatpush1.bf16.msra.mxu1 %v3380_v29 }
 0x3f8   : > { %3383 = vmatprep.subr.bf16.mxu1 %v3382_v31 }
 0x3fb   : > { %3385 = vmatpush1.bf16.msra.mxu1 %v3384_v24 }
 0x3fc   : > { %3387 = vmatprep.subr.bf16.mxu1 %v3386_v34 }
 0x3ff   : > { %3389 = vmatpush1.bf16.msra.mxu1 %v3388_v43  ;;  %v1962_v43 = vld [vmem:[%s5762_s7 + $0x208] sm:$0xff] }
 0x400   : > { %3391 = vmatprep.subr.bf16.mxu1 %v3390_v44  ;;  %v1964_v44 = vld [vmem:[%s5762_s7 + $0x218] sm:$0xff] }
 0x403   : > { %3393 = vmatpush1.bf16.msra.mxu1 %v3392_v46 }
 0x404   : > { %3395 = vmatprep.subr.bf16.mxu1 %v3394_v51  ;;  %v3410_v51 = vpack.c.bf16 %v1964_v44, %v1962_v43 }
 0x407   : > { %3397 = vmatpush1.bf16.msra.mxu1 %v3396_v56 }
 0x408   : > { %3399 = vmatprep.subr.bf16.mxu1 %v3398_v61 }
 0x40b   : > { %3401 = vmatpush1.bf16.msra.mxu1 %v3400_v59 }
 0x40c   : > { %3403 = vmatprep.subr.bf16.mxu1 %v3402_v2 }
 0x40f   : > { %3405 = vmatpush1.bf16.msra.mxu1 %v3404_v55 }
 0x410   : > { %3407 = vmatprep.subr.bf16.mxu1 %v3406_v30 }
 0x412   : > { %v3777_v9 = vpop.permute.xlu0 %3776  ;;  %v3772_v45 = vpop.permute.xlu1 %3771 }
 0x413   : > { %v3774_v17 = vunpack.i.h.bf16 %v3772_v45  ;;  %v3773_v48 = vunpack.i.l.bf16 %v3772_v45  ;;  %v3779_v36 = vunpack.i.h.bf16 %v3777_v9  ;;  %v3778_v37 = vunpack.i.l.bf16 %v3777_v9  ;;  %3409 = vmatpush1.bf16.msra.mxu1 %v3408_v25 }
 0x414   : > { %3411 = vmatprep.subr.bf16.mxu1 %v3410_v51 }
 0x416   : > { %v3787_v18 = vpop.permute.xlu1 %3786  ;;  %v3782_v19 = vpop.permute.xlu0 %3781 }
 0x417   : > { %v3789_v22 = vunpack.i.h.bf16 %v3787_v18  ;;  %v3788_v26 = vunpack.i.l.bf16 %v3787_v18  ;;  %v3784_v27 = vunpack.i.h.bf16 %v3782_v19  ;;  %v3783_v28 = vunpack.i.l.bf16 %v3782_v19 }
 0x419   : > { %v1844_v29 = vsel %vm1720_vm12, %v3774_v17, %v3784_v27  ;;  %v1843_v31 = vsel %vm1720_vm12, %v3773_v48, %v3783_v28 }
 0x41a   : > { %v1846_v35 = vsel %vm1236_vm9, %v1844_v29, %v3789_v22  ;;  %v1845_v39 = vsel %vm1236_vm9, %v1843_v31, %v3788_v26  ;;  %v3792_v24 = vpop.permute.xlu1 %3791  ;;  %v3797_v34 = vpop.permute.xlu0 %3796 }
 0x41b   : > { %v1848_v41 = vsel %vm1725_vm13, %v1846_v35, %v4811_v11  ;;  %v1847_v40 = vsel %vm1725_vm13, %v1845_v39, %v4816_v13  ;;  %v3794_v23 = vunpack.i.h.bf16 %v3792_v24  ;;  %v3793_v42 = vunpack.i.l.bf16 %v3792_v24 }
 0x41c   : > { %v1849_v47 = vsel %vm1728_vm14, %v1847_v40, %v4823_v15  ;;  %v1850_v49 = vsel %vm1728_vm14, %v1848_v41, %v4830_v7  ;;  %v3799_v50 = vunpack.i.h.bf16 %v3797_v34  ;;  %v3798_v46 = vunpack.i.l.bf16 %v3797_v34 }
 0x41d   : > { %v1851_v13 = vsel %vm1731_vm15, %v1849_v47, %v3778_v37  ;;  %v1852_v60 = vsel %vm1731_vm15, %v1850_v49, %v3779_v36 }
 0x41e   : > { %v1853_v38 = vsel %vm1734_vm1, %v1851_v13, %v3793_v42  ;;  %v1854_v52 = vsel %vm1734_vm1, %v1852_v60, %v3794_v23  ;;  %v3802_v53 = vpop.permute.xlu1 %3801  ;;  %v1814_v54 = vpop.permute.xlu0 %1813 }
 0x41f   : > { %v3804_v15 = vunpack.i.h.bf16 %v3802_v53  ;;  %v3803_v56 = vunpack.i.l.bf16 %v3802_v53  ;;  %v1855_v7 = vsel %vm1737_vm2, %v1853_v38, %v3798_v46  ;;  %v1856_v61 = vsel %vm1737_vm2, %v1854_v52, %v3799_v50 }
 0x421   : > { %v1857_v16 = vsel %vm1740_vm3, %v1855_v7, %v3803_v56  ;;  %v1858_v33 = vsel %vm1740_vm3, %v1856_v61, %v3804_v15 }
 0x422   : > { %v1859_v20 = vsel %vm1743_vm8, %v1857_v16, %v1814_v54  ;;  %v1816_v58 = vpop.permute.xlu1 %1815  ;;  %v1820_v59 = vpop.permute.xlu0 %1819 }
 0x423   : > { %v1875_v2 = vrot.slane %v1859_v20, 1  ;;  %v1860_v21 = vsel %vm1743_vm8, %v1858_v33, %v1816_v58  ;;  %v1861_v28 = vsel %vm1746_vm11, %v1814_v54, %v1820_v59 }
 0x424   : > { %v1876_v4 = vrot.slane %v1860_v21, 1 }
 0x426   : > { %v1822_v5 = vpop.permute.xlu1 %1821  ;;  %v1826_v8 = vpop.permute.xlu0 %1825  ;;  %1885 = vrot.lane.b32.xlu1 %v1876_v4, %s5810_s23  ;;  %v1877_v9 = vsel %vm617_vm0, %v1875_v2, %v1876_v4  ;;  %v1961_v4 = vld [vmem:[%s5762_s7 + $0x200] sm:$0xff] }
 0x427   : > { %1881 = vrot.lane.b32.xlu0 %v1877_v9, %s5810_s23  ;;  %v1862_v30 = vsel %vm1746_vm11, %v1816_v58, %v1822_v5  ;;  %v1863_v36 = vsel %vm1749_vm5, %v1861_v28, %v1826_v8  ;;  %v1963_v5 = vld [vmem:[%s5762_s7 + $0x210] sm:$0xff]  ;;  %v1966_v9 = vld [vmem:[%s5762_s7 + $0x228] sm:$0xff] }
 0x42a   : > { %v1828_v45 = vpop.permute.xlu1 %1827  ;;  %v1832_v55 = vpop.permute.xlu0 %1831 }
 0x42b   : > { %1632 = vrot.lane.b32.xlu0 %v4798_v6, %s5811_s24  ;;  %v1864_v17 = vsel %vm1749_vm5, %v1862_v30, %v1828_v45  ;;  %v1865_v37 = vsel %vm1436_vm10, %v1863_v36, %v1832_v55  ;;  %v1968_v45 = vld [vmem:[%s5762_s7 + $0x238] sm:$0xff]  ;;  %v3412_v30 = vpack.c.bf16 %v1963_v5, %v1961_v4  ;;  %v1974_v36 = vld [vmem:[%s5762_s7 + $0x268] sm:$0xff] }
 0x42e   : > { %v1834_v10 = vpop.permute.xlu1 %1833  ;;  %v1838_v12 = vpop.permute.xlu0 %1837 }
 0x42f   : > { %1641 = vrot.lane.b32.xlu0 %v4811_v11, %s5812_s29  ;;  %v1866_v48 = vsel %vm1436_vm10, %v1864_v17, %v1834_v10  ;;  %v1867_v39 = vsel %vm1754_vm4, %v1865_v37, %v1838_v12  ;;  %v1976_v37 = vld [vmem:[%s5762_s7 + $0x278] sm:$0xff] }
 0x430   : > { %v1869_v40 = vsel %vm1757_vm7, %v1867_v39, 0.0 }
 0x431   : > { %v1878_v42 = vrot.slane %v1869_v40, 1  ;;  %v1975_v40 = vld [vmem:[%s5762_s7 + $0x270] sm:$0xff] }
 0x432   : > { %v1840_v18 = vpop.permute.xlu1 %1839  ;;  %v1622_v19 = vpop.permute.xlu0 %1621 }
 0x433   : > { %v1868_v25 = vsel %vm1754_vm4, %v1866_v48, %v1840_v18  ;;  %3826 = vrot.lane.b32.xlu0 %v4882_v32, %s5813_s3  ;;  %v1721_v53 = vsel %vm1720_vm12, %v4789_v57, %v1622_v19  ;;  %v3414_v48 = vpack.c.bf16 %v1968_v45, %v1966_v9  ;;  %v1965_v18 = vld [vmem:[%s5762_s7 + $0x220] sm:$0xff]  ;;  %v1967_v19 = vld [vmem:[%s5762_s7 + $0x230] sm:$0xff] }
 0x434   : > { %v1870_v6 = vsel %vm1757_vm7, %v1868_v25, 0.0 }
 0x435   : > { %v1879_v22 = vrot.slane %v1870_v6, 1  ;;  %v1970_v6 = vld [vmem:[%s5762_s7 + $0x248] sm:$0xff] }
 0x436   : > { %v1631_v26 = vpop.permute.xlu1 %1630  ;;  %v3807_v27 = vpop.permute.xlu0 %3806 }
 0x437   : > { %v3809_v29 = vunpack.i.h.bf16 %v3807_v27  ;;  %v3808_v31 = vunpack.i.l.bf16 %v3807_v27  ;;  %1887 = vrot.lane.b32.xlu1 %v1879_v22, %s5810_s23  ;;  %1704 = vrot.lane.b32.xlu0 %v4811_v11, %s5814_s26  ;;  %v1880_v44 = vsel %vm617_vm0, %v1878_v42, %v1879_v22  ;;  %v1723_v54 = vsel %vm1236_vm9, %v1721_v53, %v1631_v26  ;;  %v1972_v22 = vld [vmem:[%s5762_s7 + $0x258] sm:$0xff]  ;;  %s5820_s26 = smov 32  }
 0x438   : > { %vm1760_vm0 = vcmask 670720   ;;  %v3416_v27 = vpack.c.bf16 %v1967_v19, %v1965_v18  ;;  %v3418_v28 = vpack.c.bf16 %v1972_v22, %v1970_v6  ;;  %v1980_v42 = vld [vmem:[%s5762_s7 + $0x298] sm:$0xff] }
 0x439   : > { %v1747_v35 = vsel %vm1746_vm11, %v3808_v31, %v3809_v29  ;;  %v1969_v29 = vld [vmem:[%s5762_s7 + $0x240] sm:$0xff] }
 0x43a   : > { %v1640_v24 = vpop.permute.xlu1 %1639  ;;  %v1691_v34 = vpop.permute.xlu0 %1690 }
 0x43b   : > { %v1750_v41 = vsel %vm1749_vm5, %v1747_v35, %v1691_v34  ;;  %3831 = vrot.lane.b32.xlu0 %v4882_v32, %s5815_s21  ;;  %v1726_v56 = vsel %vm1725_vm13, %v1723_v54, %v1640_v24  ;;  %v3422_v34 = vpack.c.bf16 %v1976_v37, %v1974_v36  ;;  %v1984_v54 = vld [vmem:[%s5762_s7 + $0x2b8] sm:$0xff]  ;;  %v1994_v37 = vld [vmem:[%s5762_s7 + $0x308] sm:$0xff]  ;;  %s3864_s21 = smov 80  }
 0x43e   : > { %v3812_v23 = vpop.permute.xlu1 %3811  ;;  %v1697_v38 = vpop.permute.xlu0 %1696 }
 0x43f   : > { %1674 = vrot.lane.b32.xlu0 %v4811_v11, %s5816_s2  ;;  %v3813_v52 = vunpack.i.l.bf16 %v3812_v23  ;;  %v3814_v7 = vunpack.i.h.bf16 %v3812_v23  ;;  %v1752_v20 = vsel %vm1436_vm10, %v1750_v41, %v1697_v38  ;;  %v1973_v41 = vld [vmem:[%s5762_s7 + $0x260] sm:$0xff]  ;;  %v1978_v23 = vld [vmem:[%s5762_s7 + $0x288] sm:$0xff]  ;;  %v1979_v38 = vld [vmem:[%s5762_s7 + $0x290] sm:$0xff]  ;;  %s5821_s2 = smov 64  }
 0x441   : > { %v1729_v61 = vsel %vm1728_vm14, %v1726_v56, %v3813_v52 }
 0x442   : > { %v1703_v43 = vpop.permute.xlu1 %1702  ;;  %v1661_v15 = vpop.permute.xlu0 %1660  ;;  %v1732_v33 = vsel %vm1731_vm15, %v1729_v61, %v3814_v7  ;;  %v1981_v61 = vld [vmem:[%s5762_s7 + $0x2a0] sm:$0xff] }
 0x443   : > { %1883 = vrot.lane.b32.xlu0 %v1880_v44, %s5810_s23  ;;  %v1755_v59 = vsel %vm1754_vm4, %v1752_v20, %v1703_v43  ;;  %v1735_v21 = vsel %vm1734_vm1, %v1732_v33, %v1661_v15  ;;  %v1983_v33 = vld [vmem:[%s5762_s7 + $0x2b0] sm:$0xff]  ;;  %v1986_v20 = vld [vmem:[%s5762_s7 + $0x2c8] sm:$0xff] }
 0x446   : > { %v3817_v47 = vpop.permute.xlu1 %3816  ;;  %v1667_v58 = vpop.permute.xlu0 %1666 }
 0x447   : > { %v3818_v16 = vunpack.i.l.bf16 %v3817_v47  ;;  %v3819_v2 = vunpack.i.h.bf16 %v3817_v47  ;;  %v1738_v8 = vsel %vm1737_vm2, %v1735_v21, %v1667_v58  ;;  %v3424_v47 = vpack.c.bf16 %v1975_v40, %v1973_v41  ;;  %v1988_v58 = vld [vmem:[%s5762_s7 + $0x2d8] sm:$0xff]  ;;  %v1998_v41 = vld [vmem:[%s5762_s7 + $0x328] sm:$0xff] }
 0x448   : > { %v3434_v4 = vpack.c.bf16 %v1988_v58, %v1986_v20  ;;  %v2000_v40 = vld [vmem:[%s5762_s7 + $0x338] sm:$0xff]  ;;  %v2345_v20 = vld [vmem:[%s5766_s11 + $0x40] sm:$0xff]  ;;  %v2346_v58 = vld [vmem:[%s5766_s11 + $0x48] sm:$0xff] }
 0x449   : > { %v1758_v57 = vsel %vm1757_vm7, %v1755_v59, %v3818_v16 }
 0x44a   : > { %v1673_v49 = vpop.permute.xlu1 %1672  ;;  %v1761_v12 = vsel %vm1760_vm0, %v1758_v57, %v3819_v2  ;;  %v3432_v57 = vpack.c.bf16 %v1983_v33, %v1981_v61  ;;  %v2343_v61 = vld [vmem:[%s5766_s11 + $0x30] sm:$0xff] }
 0x44b   : > { %v1741_v55 = vsel %vm1740_vm3, %v1738_v8, %v1673_v49 }
 0x44c   : > { %v1744_v25 = vsel %vm1743_vm8, %v1741_v55, %v3808_v31  ;;  %v1971_v31 = vld [vmem:[%s5762_s7 + $0x250] sm:$0xff]  ;;  %v1985_v55 = vld [vmem:[%s5762_s7 + $0x2c0] sm:$0xff] }
 0x44d   : > { %v3420_v24 = vpack.c.bf16 %v1971_v31, %v1969_v29  ;;  %v1989_v29 = vld [vmem:[%s5762_s7 + $0x2e0] sm:$0xff]  ;;  %v1991_v31 = vld [vmem:[%s5762_s7 + $0x2f0] sm:$0xff] }
 0x44e   : > { %v1624_v50 = vpop.permute.xlu1 %1623 }
 0x44f   : > { %v1722_v43 = vsel %vm1720_vm12, %v4791_v62, %v1624_v50  ;;  %v1982_v50 = vld [vmem:[%s5762_s7 + $0x2a8] sm:$0xff]  ;;  %vm2594_vm12 = vcmask 130048  }
 0x450   : > { %v3430_v16 = vpack.c.bf16 %v1984_v54, %v1982_v50  ;;  %v2340_v50 = vld [vmem:[%s5766_s11 + $0x18] sm:$0xff] }
 0x452   : > { %v5132_v13 = vpop.permute.xlu1 %3821 }
 0x453   : > { %v3824_v60 = vunpack.i.h.bf16 %v5132_v13  ;;  %v3823_v32 = vunpack.i.l.bf16 %v5132_v13  ;;  %v1993_v13 = vld [vmem:[%s5762_s7 + $0x300] sm:$0xff] }
 0x455   : > { %v1748_v46 = vsel %vm1746_vm11, %v3823_v32, %v3824_v60 }
 0x456   : > { %v1693_v11 = vpop.permute.xlu1 %1692 }
 0x457   : > { %v5140_v51 = vsel %vm1749_vm5, %v1748_v46, %v1693_v11  ;;  %v3426_v46 = vpack.c.bf16 %v1980_v42, %v1978_v23  ;;  %v1977_v11 = vld [vmem:[%s5762_s7 + $0x280] sm:$0xff]  ;;  %v3446_v42 = vpack.c.bf16 %v2000_v40, %v1998_v41  ;;  %vm5817_vm5 = vmmov 1  }
 0x458   : > { %v3428_v7 = vpack.c.bf16 %v1979_v38, %v1977_v11 }
 0x45a   : > { %v1699_v35 = vpop.permute.xlu1 %1698 }
 0x45b   : > { %v1753_v5 = vsel %vm1436_vm10, %v5140_v51, %v1699_v35  ;;  %v1992_v51 = vld [vmem:[%s5762_s7 + $0x2f8] sm:$0xff] }
 0x45c   : > { %v1996_v35 = vld [vmem:[%s5762_s7 + $0x318] sm:$0xff] }
 0x45e   : > { %v1663_v52 = vpop.permute.xlu1 %1662 }
 0x462   : > { %v1669_v2 = vpop.permute.xlu1 %1668 }
 0x498   : > { %v1886_v18 = vpop.permute.xlu1 %1885 }
 0x499   : > { %v5166_v10 = vpop.permute.xlu0 %1881 }
 0x49a   : > { %v1895_v17 = vsel %vm867_vm6, %v1761_v12, %v5166_v10  ;;  %v1987_v12 = vld [vmem:[%s5762_s7 + $0x2d0] sm:$0xff] }
 0x49b   : > { %2083 = vmatprep.mubr.f32.mxu1 %v1895_v17  ;;  %v1990_v17 = vld [vmem:[%s5762_s7 + $0x2e8] sm:$0xff]  ;;  %v3436_v22 = vpack.c.bf16 %v1987_v12, %v1985_v55  ;;  %v2353_v12 = vld [vmem:[%s5766_s11 + $0x80] sm:$0xff] }
 0x49c   : > { %2084 = vmatmul.mubr.f32.vlgmr.msra.gmra.mrb[16].mxu1 %v1744_v25 }
 0x49d   : > { %3413 = vmatpush1.bf16.msra.mxu1 %v3412_v30  ;;  %v1633_v26 = vpop.permute.xlu0 %1632 }
 0x49e   : > { %3415 = vmatprep.subr.bf16.mxu1 %v3414_v48  ;;  %v1724_v49 = vsel %vm1236_vm9, %v1722_v43, %v1633_v26  ;;  %v1997_v43 = vld [vmem:[%s5762_s7 + $0x320] sm:$0xff]  ;;  %vm5818_vm9 = vcmask 261120  }
 0x4a1   : > { %3417 = vmatpush1.bf16.msra.mxu1 %v3416_v27  ;;  %v1642_v39 = vpop.permute.xlu0 %1641 }
 0x4a2   : > { %3419 = vmatprep.subr.bf16.mxu1 %v3418_v28  ;;  %v1727_v53 = vsel %vm1725_vm13, %v1724_v49, %v1642_v39  ;;  %v3438_v28 = vpack.c.bf16 %v1992_v51, %v1990_v17  ;;  %v2002_v49 = vld [vmem:[%s5762_s7 + $0x348] sm:$0xff]  ;;  %v2003_v51 = vld [vmem:[%s5763_s8] sm:$0x3]  ;;  %vm2538_vm13 = vcmask 654336  }
 0x4a5   : > { %3421 = vmatpush1.bf16.msra.mxu1 %v3420_v24  ;;  %v3827_v44 = vpop.permute.xlu0 %3826  ;;  %v3440_v24 = vpack.c.bf16 %v1991_v31, %v1989_v29 }
 0x4a6   : > { %v3828_v60 = vunpack.i.l.bf16 %v3827_v44  ;;  %3423 = vmatprep.subr.bf16.mxu1 %v3422_v34  ;;  %v3829_v62 = vunpack.i.h.bf16 %v3827_v44  ;;  %v3442_v34 = vpack.c.bf16 %v1996_v35, %v1994_v37  ;;  %v1999_v44 = vld [vmem:[%s5762_s7 + $0x330] sm:$0xff] }
 0x4a8   : > { %v1730_v15 = vsel %vm1728_vm14, %v1727_v53, %v3828_v60  ;;  %v2001_v60 = vld [vmem:[%s5762_s7 + $0x340] sm:$0xff]  ;;  %v2338_v53 = vld [vmem:[%s5766_s11 + $0x8] sm:$0xff]  ;;  %vm5822_vm14 = vmmov %vm5818_vm9 }
 0x4a9   : > { %3425 = vmatpush1.bf16.msra.mxu1 %v3424_v47  ;;  %v1705_v56 = vpop.permute.xlu0 %1704  ;;  %v1733_v59 = vsel %vm1731_vm15, %v1730_v15, %v3829_v62  ;;  %v3448_v47 = vpack.c.bf16 %v1999_v44, %v1997_v43  ;;  %v1888_v11 = vpop.permute.xlu1 %1887  ;;  %v2341_v15 = vld [vmem:[%s5766_s11 + $0x20] sm:$0xff]  ;;  %vm5823_vm15 = vcmask 523264  }
 0x4aa   : > { %3427 = vmatprep.subr.bf16.mxu1 %v3426_v46  ;;  %v1736_v45 = vsel %vm1734_vm1, %v1733_v59, %v1663_v52  ;;  %v1756_v30 = vsel %vm1754_vm4, %v1753_v5, %v1705_v56  ;;  %v1890_v38 = vsel %vm867_vm6, %v1886_v18, %v1888_v11  ;;  %v2337_v52 = vld [vmem:[%s5766_s11] sm:$0xff]  ;;  %v2342_v56 = vld [vmem:[%s5766_s11 + $0x28] sm:$0xff]  ;;  %v3475_v59 = vpack.c.bf16 %v2346_v58, %v2345_v20 }
 0x4ab   : > { %v1739_v25 = vsel %vm1737_vm2, %v1736_v45, %v1669_v2  ;;  %v3463_v62 = vpack.c.bf16 %v2338_v53, %v2337_v52  ;;  %v2347_v2 = vld [vmem:[%s5766_s11 + $0x50] sm:$0xff]  ;;  %v2350_v5 = vld [vmem:[%s5766_s11 + $0x68] sm:$0xff]  ;;  %v2352_v45 = vld [vmem:[%s5766_s11 + $0x78] sm:$0xff]  ;;  %vm2182_vm4 = vcmask 1041408   ;;  %vm3865_vm1 = vmmov 0  }
 0x4ac   : > { %v2434_v52 = vld [vmem:[%s5767_s12 + $0x20] sm:$0xff]  ;;  %v2435_v53 = vld [vmem:[%s5767_s12 + $0x28] sm:$0xff] }
 0x4ad   : > { %3429 = vmatpush1.bf16.msra.mxu1 %v3428_v7  ;;  %v3832_v21 = vpop.permute.xlu0 %3831  ;;  %3464 = vmatpush1.bf16.msra.mxu0 %v3463_v62  ;;  %v3469_v7 = vpack.c.bf16 %v2342_v56, %v2341_v15  ;;  %v2436_v62 = vld [vmem:[%s5767_s12 + $0x30] sm:$0xff]  ;;  %v2438_v15 = vld [vmem:[%s5767_s12 + $0x40] sm:$0xff]  ;;  %v2439_v56 = vld [vmem:[%s5767_s12 + $0x48] sm:$0xff] }
 0x4ae   : > { %v3834_v8 = vunpack.i.h.bf16 %v3832_v21  ;;  %v3833_v9 = vunpack.i.l.bf16 %v3832_v21  ;;  %3431 = vmatprep.subr.bf16.mxu1 %v3430_v16  ;;  %3465 = vmatprep.subr.bf16.mxu0 %v3847_v0  ;;  %v2344_v16 = vld [vmem:[%s5766_s11 + $0x38] sm:$0xff]  ;;  %v2442_v20 = vld [vmem:[%s5767_s12 + $0x60] sm:$0xff]  ;;  %v2443_v58 = vld [vmem:[%s5767_s12 + $0x68] sm:$0xff] }
 0x4af   : > { %v3472_v33 = vpack.c.bf16 %v2344_v16, %v2343_v61  ;;  %v2348_v21 = vld [vmem:[%s5766_s11 + $0x58] sm:$0xff]  ;;  %v2440_v61 = vld [vmem:[%s5767_s12 + $0x50] sm:$0xff] }
 0x4b0   : > { %v1759_v48 = vsel %vm1757_vm7, %v1756_v30, %v3833_v9  ;;  %v2351_v9 = vld [vmem:[%s5766_s11 + $0x70] sm:$0xff]  ;;  %v2354_v30 = vld [vmem:[%s5766_s11 + $0x88] sm:$0xff]  ;;  %vm2178_vm7 = vcmask 80896   ;;  %v2441_v16 = vld [vmem:[%s5767_s12 + $0x58] sm:$0xff] }
 0x4b1   : > { %3433 = vmatpush1.bf16.msra.mxu1 %v3432_v57  ;;  %v1675_v19 = vpop.permute.xlu0 %1674  ;;  %v1762_v6 = vsel %vm1760_vm0, %v1759_v48, %v3834_v8  ;;  %v3478_v57 = vpack.c.bf16 %v2348_v21, %v2347_v2  ;;  %v3484_v55 = vpack.c.bf16 %v2352_v45, %v2351_v9  ;;  %v3487_v17 = vpack.c.bf16 %v2354_v30, %v2353_v12  ;;  %v2444_v2 = vld [vmem:[%s5767_s12 + $0x70] sm:$0xff]  ;;  %v2445_v21 = vld [vmem:[%s5767_s12 + $0x78] sm:$0xff]  ;;  %v2575_v12 = vld [vmem:[%s5768_s13 + $0x100] sm:$0xff] }
 0x4b2   : > { %v1742_v26 = vsel %vm1740_vm3, %v1739_v25, %v1675_v19  ;;  %v1896_v27 = vsel %vm867_vm6, %v1762_v6, %v1886_v18  ;;  %3435 = vmatprep.subr.bf16.mxu1 %v3434_v4  ;;  %v2349_v4 = vld [vmem:[%s5766_s11 + $0x60] sm:$0xff]  ;;  %v2008_v48 = vrot.slane %v2003_v51, %v4607_v1  ;;  %v2012_v19 = vrot.slane %v2003_v51, %v1032_v3  ;;  %v2448_v9 = vld [vmem:[%s5767_s12 + $0x90] sm:$0xff]  ;;  %v2449_v45 = vld [vmem:[%s5767_s12 + $0x98] sm:$0xff] }
 0x4b3   : > { %2089 = vmatprep.mubr.f32.mxu1 %v1896_v27  ;;  %v1745_v36 = vsel %vm1743_vm8, %v1742_v26, %v3823_v32  ;;  %v1995_v32 = vld [vmem:[%s5762_s7 + $0x310] sm:$0xff]  ;;  %v3481_v8 = vpack.c.bf16 %v2350_v5, %v2349_v4  ;;  %v2260_v3 = vld [vmem:[%s5765_s10] sm:$0x1f]  ;;  %v2447_v5 = vld [vmem:[%s5767_s12 + $0x88] sm:$0xff] }
 0x4b4   : > { %2090 = vmatmul.mubr.f32.gmra.mrb[18].mxu1 %v1745_v36  ;;  %v3444_v23 = vpack.c.bf16 %v1995_v32, %v1993_v13  ;;  %v2356_v13 = vld [vmem:[%s5766_s11 + $0x98] sm:$0xff]  ;;  %v2446_v4 = vld [vmem:[%s5767_s12 + $0x80] sm:$0xff]  ;;  %v2576_v30 = vld [vmem:[%s5768_s13 + $0x108] sm:$0xff] }
 0x4b5   : > { %3437 = vmatpush1.bf16.msra.mxu1 %v3436_v22  ;;  %v1884_v39 = vpop.permute.xlu0 %1883  ;;  %v3555_v51 = vpack.c.bf16 %v2576_v30, %v2575_v12  ;;  %v2589_v30 = vld [vmem:[%s5768_s13 + $0x170] sm:$0xff] }
 0x4b6   : > { %2994 = vmatprep.mubr.msk.f32.mxu1 %vm1436_vm10, %v1884_v39  ;;  %3439 = vmatprep.subr.bf16.mxu1 %v3438_v28  ;;  %v1889_v46 = vsel %vm867_vm6, %v5166_v10, %v1884_v39  ;;  %v2339_v10 = vld [vmem:[%s5766_s11 + $0x10] sm:$0xff]  ;;  %vm3451_vm6 = vmpackc.low %vm2182_vm4, %vm5817_vm5 }
 0x4b7   : > { %v3466_v54 = vpack.c.bf16 %v2340_v50, %v2339_v10  ;;  %v3499_v10 = vpack.c.bf16 %v2435_v53, %v2434_v52  ;;  %v2437_v50 = vld [vmem:[%s5767_s12 + $0x38] sm:$0xff]  ;;  %v2583_v52 = vld [vmem:[%s5768_s13 + $0x140] sm:$0xff]  ;;  %v2584_v53 = vld [vmem:[%s5768_s13 + $0x148] sm:$0xff] }
 0x4b9   : > { %3441 = vmatpush1.bf16.msra.mxu1 %v3440_v24  ;;  %3467 = vmatpush1.bf16.msra.mxu0 %v3466_v54  ;;  %v3502_v54 = vpack.c.bf16 %v2437_v50, %v2436_v62  ;;  %v2551_v50 = vld [vmem:[%s5768_s13 + $0x40] sm:$0xff] }
 0x4ba   : > { %3443 = vmatprep.subr.bf16.mxu1 %v3442_v34  ;;  %3468 = vmatprep.subr.bf16.mxu0 %v3847_v0  ;;  %v2355_v34 = vld [vmem:[%s5766_s11 + $0x90] sm:$0xff] }
 0x4bb   : > { %v3490_v32 = vpack.c.bf16 %v2356_v13, %v2355_v34  ;;  %v2547_v13 = vld [vmem:[%s5768_s13 + $0x20] sm:$0xff] }
 0x4bd   : > { %3445 = vmatpush1.bf16.msra.mxu1 %v3444_v23  ;;  %3470 = vmatpush1.bf16.msra.mxu0 %v3469_v7  ;;  %v2430_v23 = vld [vmem:[%s5767_s12] sm:$0xff]  ;;  %v3505_v7 = vpack.c.bf16 %v2439_v56, %v2438_v15  ;;  %v3567_v15 = vpack.c.bf16 %v2584_v53, %v2583_v52  ;;  %v2569_v56 = vld [vmem:[%s5768_s13 + $0xd0] sm:$0xff]  ;;  %v2743_v53 = vld [vmem:[%s5770_s15 + $0x28] sm:$0xff] }
 0x4be   : > { %3447 = vmatprep.subr.bf16.mxu1 %v3446_v42  ;;  %3471 = vmatprep.subr.bf16.mxu0 %v3847_v0  ;;  %v2431_v42 = vld [vmem:[%s5767_s12 + $0x8] sm:$0xff]  ;;  %v2742_v52 = vld [vmem:[%s5770_s15 + $0x20] sm:$0xff] }
 0x4c1   : > { %3449 = vmatpush1.bf16.msra.mxu1 %v3448_v47  ;;  %3473 = vmatpush1.bf16.msra.mxu0 %v3472_v33  ;;  %v3508_v33 = vpack.c.bf16 %v2441_v16, %v2440_v61  ;;  %v2585_v61 = vld [vmem:[%s5768_s13 + $0x150] sm:$0xff]  ;;  %v2586_v16 = vld [vmem:[%s5768_s13 + $0x158] sm:$0xff] }
 0x4c2   : > { %2136 = vmatprep.subr.mxu1 %v2002_v49  ;;  %3474 = vmatprep.subr.bf16.mxu0 %v3847_v0 }
 0x4c5   : > { %2137 = vmatpush1.msra.mxu1 %v2001_v60  ;;  %3476 = vmatpush1.bf16.msra.mxu0 %v3475_v59  ;;  %v3493_v60 = vpack.c.bf16 %v2431_v42, %v2430_v23  ;;  %v3511_v59 = vpack.c.bf16 %v2443_v58, %v2442_v20  ;;  %v2566_v23 = vld [vmem:[%s5768_s13 + $0xb8] sm:$0xff]  ;;  %v2581_v42 = vld [vmem:[%s5768_s13 + $0x130] sm:$0xff] }
 0x4c6   : > { %2161 = vmatmul.mubr.f32.vlgmr.msra.gmra.mrb[16].mxu1 %v1889_v46  ;;  %3477 = vmatprep.subr.bf16.mxu0 %v3847_v0  ;;  %v2432_v46 = vld [vmem:[%s5767_s12 + $0x10] sm:$0xff] }
 0x4c7   : > { %2995 = vmatprep.mubr.msk.f32.mxu1 %vm1436_vm10, %v1888_v11  ;;  %v2433_v11 = vld [vmem:[%s5767_s12 + $0x18] sm:$0xff]  ;;  %vm5819_vm10 = vmmov %vm5818_vm9  ;;  %v2553_v58 = vld [vmem:[%s5768_s13 + $0x50] sm:$0xff] }
 0x4c9   : > { %3479 = vmatpush1.bf16.msra.mxu0 %v3478_v57  ;;  %v3514_v57 = vpack.c.bf16 %v2445_v21, %v2444_v2  ;;  %v3570_v2 = vpack.c.bf16 %v2586_v16, %v2585_v61  ;;  %v2571_v21 = vld [vmem:[%s5768_s13 + $0xe0] sm:$0xff]  ;;  %v2748_v61 = vld [vmem:[%s5770_s15 + $0x50] sm:$0xff]  ;;  %v2749_v16 = vld [vmem:[%s5770_s15 + $0x58] sm:$0xff] }
 0x4ca   : > { %2167 = vmatmul.mubr.f32.gmra.mrb[18].mxu1 %v1890_v38  ;;  %3480 = vmatprep.subr.bf16.mxu0 %v3847_v0  ;;  %v3496_v38 = vpack.c.bf16 %v2433_v11, %v2432_v46  ;;  %v2567_v11 = vld [vmem:[%s5768_s13 + $0xc0] sm:$0xff] }
 0x4cb   : > { %2253 = vmatprep.mubr.f32.mxu1 %v3846_v63 }
 0x4cd   : > { %3482 = vmatpush1.bf16.msra.mxu0 %v3481_v8  ;;  %v3517_v8 = vpack.c.bf16 %v2447_v5, %v2446_v4  ;;  %v2587_v4 = vld [vmem:[%s5768_s13 + $0x160] sm:$0xff]  ;;  %v2588_v5 = vld [vmem:[%s5768_s13 + $0x168] sm:$0xff] }
 0x4ce   : > { %3483 = vmatprep.subr.bf16.mxu0 %v3847_v0  ;;  %v3573_v12 = vpack.c.bf16 %v2588_v5, %v2587_v4  ;;  %v2826_v4 = vld [vmem:[%s5772_s17] sm:$0xff]  ;;  %v2827_v5 = vld [vmem:[%s5772_s17 + $0x8] sm:$0xff] }
 0x4d1   : > { %3485 = vmatpush1.bf16.msra.mxu0 %v3484_v55  ;;  %v3520_v55 = vpack.c.bf16 %v2449_v45, %v2448_v9  ;;  %v2555_v45 = vld [vmem:[%s5768_s13 + $0x60] sm:$0xff] }
 0x4d2   : > { %3486 = vmatprep.subr.bf16.mxu0 %v3847_v0 }
 0x4d5   : > { %3488 = vmatpush1.bf16.msra.mxu0 %v3487_v17  ;;  %v2559_v17 = vld [vmem:[%s5768_s13 + $0x80] sm:$0xff] }
 0x4d6   : > { %3489 = vmatprep.subr.bf16.mxu0 %v3847_v0 }
 0x4d9   : > { %3491 = vmatpush1.bf16.msra.mxu0 %v3490_v32  ;;  %v2548_v32 = vld [vmem:[%s5768_s13 + $0x28] sm:$0xff] }
 0x4da   : > { %3492 = vmatprep.subr.bf16.mxu0 %v3847_v0 }
 0x599   : > { %v2162_v18 = vpop.f32.mrb[16].mxu1 }
 0x59a   : > { %v2164_v25 = vpop.f32.mrb[17].mxu1  ;;  %v3637_v6 = vadd.f32 %v2162_v18, %v2008_v48  ;;  %v2577_v18 = vld [vmem:[%s5768_s13 + $0x110] sm:$0xff] }
 0x59b   : > { %v3638_v22 = vadd.f32 %v2164_v25, %v2012_v19 }
 0x59c   : > { %v2173_v31 = vmax.f32 %v3637_v6, 0.0  ;;  %v2543_v6 = vld [vmem:[%s5768_s13] sm:$0xff] }
 0x59d   : > { %v2168_v26 = vpop.f32.mrb[18].mxu1  ;;  %v2174_v37 = vmax.f32 %v3638_v22, 0.0  ;;  %v2544_v22 = vld [vmem:[%s5768_s13 + $0x8] sm:$0xff] }
 0x59e   : > { %v3639_v27 = vadd.f32 %v2168_v26, %v2008_v48  ;;  %v2170_v28 = vpop.f32.mrb[19].mxu1  ;;  %v2560_v48 = vld [vmem:[%s5768_s13 + $0x88] sm:$0xff]  ;;  %v2561_v26 = vld [vmem:[%s5768_s13 + $0x90] sm:$0xff] }
 0x59f   : > { %v3640_v29 = vadd.f32 %v2170_v28, %v2012_v19  ;;  %v2578_v19 = vld [vmem:[%s5768_s13 + $0x118] sm:$0xff]  ;;  %v3522_v25 = vpack.c.bf16 %v2560_v48, %v2559_v17  ;;  %v3524_v28 = vpack.c.bf16 %v2544_v22, %v2543_v6  ;;  %v2591_v22 = vld [vmem:[%s5768_s13 + $0x180] sm:$0xff] }
 0x5a0   : > { %v2175_v36 = vmax.f32 %v3639_v27, 0.0  ;;  %v3558_v27 = vpack.c.bf16 %v2578_v19, %v2577_v18  ;;  %v2590_v17 = vld [vmem:[%s5768_s13 + $0x178] sm:$0xff] }
 0x5a1   : > { %v2176_v35 = vmax.f32 %v3640_v29, 0.0  ;;  %v2562_v29 = vld [vmem:[%s5768_s13 + $0x98] sm:$0xff]  ;;  %v3576_v48 = vpack.c.bf16 %v2590_v17, %v2589_v30  ;;  %v2831_v30 = vld [vmem:[%s5772_s17 + $0x28] sm:$0xff] }
 0x5a2   : > { %v3453_v39 = vpack.c.bf16 %v2175_v36, %v2173_v31  ;;  %v2579_v31 = vld [vmem:[%s5768_s13 + $0x120] sm:$0xff]  ;;  %v2580_v36 = vld [vmem:[%s5768_s13 + $0x128] sm:$0xff]  ;;  %v2574_v6 = vld [vmem:[%s5768_s13 + $0xf8] sm:$0xff] }
 0x5a3   : > { %v3450_v24 = vpack.c.bf16 %v2176_v35, %v2174_v37  ;;  %v3526_v37 = vpack.c.bf16 %v2562_v29, %v2561_v26  ;;  %v2545_v35 = vld [vmem:[%s5768_s13 + $0x10] sm:$0xff]  ;;  %v2558_v29 = vld [vmem:[%s5768_s13 + $0x78] sm:$0xff] }
 0x5a5   : > { %3452 = vmatprep.subr.msk.bf16.mxu1 %vm3451_vm6, %v3450_v24 }
 0x5a6   : > { %3455 = vmatpush1.bf16.msk.msra.mxu1 %vm3451_vm6, %v3453_v39 }
 0x5a7   : > { %3458 = vmatprep.subr.msk.bf16.mxu1 %vm3451_vm6, %v3450_v24  ;;  %v2563_v24 = vld [vmem:[%s5768_s13 + $0xa0] sm:$0xff] }
 0x5a9   : > { %2998 = vmatmul.mubr.msk.f32.vlgmr.msra.gmra.mrb[20].mxu1 %vm2178_vm7, %v2177_v14 }
 0x5aa   : > { %3461 = vmatpush1.bf16.msk.msra.mxu1 %vm3451_vm6, %v3453_v39  ;;  %2328 = vmatprep.mubr.f32.mxu1 %v3846_v63  ;;  %v2546_v39 = vld [vmem:[%s5768_s13 + $0x18] sm:$0xff] }
 0x5ab   : > { %3523 = vmatprep.subr.bf16.mxu1 %v3522_v25  ;;  %v3528_v14 = vpack.c.bf16 %v2546_v39, %v2545_v35  ;;  %v2573_v25 = vld [vmem:[%s5768_s13 + $0xf0] sm:$0xff] }
 0x5ac   : > { %v3550_v26 = vpack.c.bf16 %v2574_v6, %v2573_v25  ;;  %v2836_v6 = vld [vmem:[%s5772_s17 + $0x50] sm:$0xff] }
 0x5ad   : > { %3001 = vmatmul.mubr.msk.f32.vlgmr.msra.gmra.mrb[22].mxu1 %vm2178_vm7, %v2260_v3  ;;  %v2564_v3 = vld [vmem:[%s5768_s13 + $0xa8] sm:$0xff] }
 0x5ae   : > { %3525 = vmatpush3.bf16.msra.mxu1 %v3524_v28  ;;  %v3530_v34 = vpack.c.bf16 %v2564_v3, %v2563_v24  ;;  %v2557_v28 = vld [vmem:[%s5768_s13 + $0x70] sm:$0xff] }
 0x5af   : > { %3527 = vmatprep.subr.bf16.mxu1 %v3526_v37 }
 0x5b2   : > { %3529 = vmatpush3.bf16.msra.mxu1 %v3528_v14 }
 0x5b3   : > { %3531 = vmatprep.subr.bf16.mxu1 %v3530_v34 }
 0x67c   : > { %v2255_v41 = vpop.f32.mrb[20].mxu1 }
 0x67d   : > { %v2257_v40 = vpop.f32.mrb[21].mxu1 }
 0x680   : > { %v2330_v43 = vpop.f32.mrb[22].mxu1 }
 0x681   : > { %v2335_v44 = vmax.f32 %v2255_v41, %v2330_v43  ;;  %v2332_v47 = vpop.f32.mrb[23].mxu1  ;;  %v3561_v41 = vpack.c.bf16 %v2580_v36, %v2579_v31  ;;  %v2582_v43 = vld [vmem:[%s5768_s13 + $0x138] sm:$0xff]  ;;  %v3552_v36 = vpack.c.bf16 %v2558_v29, %v2557_v28  ;;  %v2839_v28 = vld [vmem:[%s5772_s17 + $0x68] sm:$0xff] }
 0x682   : > { %v2336_v49 = vmax.f32 %v2257_v40, %v2332_v47  ;;  %v2565_v40 = vld [vmem:[%s5768_s13 + $0xb0] sm:$0xff]  ;;  %v3564_v46 = vpack.c.bf16 %v2582_v43, %v2581_v42 }
 0x683   : > { %v3534_v47 = vpack.c.bf16 %v2566_v23, %v2565_v40  ;;  %v2739_v40 = vld [vmem:[%s5770_s15 + $0x8] sm:$0xff] }
 0x684   : > { %3002 = vmatprep.mubr.msk.f32.mxu0 %vm5818_vm9, %v2336_v49 }
 0x685   : > { %2425 = vmatmul.mubr.f32.vlgmr.msra.gmra.mrb[8].mxu0 %v2335_v44 }
 0x686   : > { %3494 = vmatpush1.bf16.msra.mxu0 %v3493_v60  ;;  %3003 = vmatprep.mubr.msk.f32.mxu0 %vm5819_vm10, %v2336_v49  ;;  %v2549_v49 = vld [vmem:[%s5768_s13 + $0x30] sm:$0xff]  ;;  %v2550_v60 = vld [vmem:[%s5768_s13 + $0x38] sm:$0xff] }
 0x687   : > { %3495 = vmatprep.subr.bf16.mxu0 %v3847_v0 }
 0x68a   : > { %3497 = vmatpush1.bf16.msra.mxu0 %v3496_v38  ;;  %v2568_v38 = vld [vmem:[%s5768_s13 + $0xc8] sm:$0xff] }
 0x68b   : > { %3498 = vmatprep.subr.bf16.mxu0 %v3847_v0  ;;  %v3538_v62 = vpack.c.bf16 %v2568_v38, %v2567_v11 }
 0x68e   : > { %3500 = vmatpush1.bf16.msra.mxu0 %v3499_v10  ;;  %v3536_v10 = vpack.c.bf16 %v2550_v60, %v2549_v49  ;;  %v2740_v60 = vld [vmem:[%s5770_s15 + $0x10] sm:$0xff] }
 0x68f   : > { %3501 = vmatprep.subr.bf16.mxu0 %v3847_v0 }
 0x692   : > { %3503 = vmatpush1.bf16.msra.mxu0 %v3502_v54  ;;  %v2552_v54 = vld [vmem:[%s5768_s13 + $0x48] sm:$0xff] }
 0x693   : > { %3504 = vmatprep.subr.bf16.mxu0 %v3847_v0 }
 0x696   : > { %3506 = vmatpush1.bf16.msra.mxu0 %v3505_v7  ;;  %v2570_v7 = vld [vmem:[%s5768_s13 + $0xd8] sm:$0xff] }
 0x697   : > { %3507 = vmatprep.subr.bf16.mxu0 %v3847_v0  ;;  %v3542_v20 = vpack.c.bf16 %v2570_v7, %v2569_v56  ;;  %v2747_v56 = vld [vmem:[%s5770_s15 + $0x48] sm:$0xff] }
 0x69a   : > { %3509 = vmatpush1.bf16.msra.mxu0 %v3508_v33  ;;  %v3540_v33 = vpack.c.bf16 %v2552_v54, %v2551_v50  ;;  %v2745_v50 = vld [vmem:[%s5770_s15 + $0x38] sm:$0xff] }
 0x69b   : > { %3510 = vmatprep.subr.bf16.mxu0 %v3847_v0 }
 0x69e   : > { %3512 = vmatpush1.bf16.msra.mxu0 %v3511_v59  ;;  %v2554_v59 = vld [vmem:[%s5768_s13 + $0x58] sm:$0xff] }
 0x69f   : > { %3513 = vmatprep.subr.bf16.mxu0 %v3847_v0 }
 0x6a2   : > { %3515 = vmatpush1.bf16.msra.mxu0 %v3514_v57  ;;  %v2572_v57 = vld [vmem:[%s5768_s13 + $0xe8] sm:$0xff] }
 0x6a3   : > { %3516 = vmatprep.subr.bf16.mxu0 %v3847_v0  ;;  %v3546_v9 = vpack.c.bf16 %v2572_v57, %v2571_v21  ;;  %v2753_v21 = vld [vmem:[%s5770_s15 + $0x78] sm:$0xff] }
 0x6a6   : > { %3518 = vmatpush1.bf16.msra.mxu0 %v3517_v8  ;;  %v3544_v8 = vpack.c.bf16 %v2554_v59, %v2553_v58  ;;  %v2751_v58 = vld [vmem:[%s5770_s15 + $0x68] sm:$0xff] }
 0x6a7   : > { %3519 = vmatprep.subr.bf16.mxu0 %v3847_v0 }
 0x6aa   : > { %3521 = vmatpush1.bf16.msra.mxu0 %v3520_v55  ;;  %v2556_v55 = vld [vmem:[%s5768_s13 + $0x68] sm:$0xff] }
 0x6ab   : > { %3554 = vmatprep.subr.bf16.mxu0 %v3847_v0 }
 0x6ad   : > { %2515 = vmatmul.mubr.f32.vlgmr.msra.gmra.mrb[10].mxu0 %v2335_v44  ;;  %v3532_v44 = vpack.c.bf16 %v2548_v32, %v2547_v13 }
 0x6ae   : > { %3556 = vmatpush1.bf16.msra.mxu0 %v3555_v51  ;;  %v3548_v51 = vpack.c.bf16 %v2556_v55, %v2555_v45  ;;  %v2829_v45 = vld [vmem:[%s5772_s17 + $0x18] sm:$0xff] }
 0x6af   : > { %3557 = vmatprep.subr.bf16.mxu0 %v3847_v0  ;;  %3533 = vmatpush3.bf16.msra.mxu1 %v3532_v44 }
 0x6b0   : > { %3535 = vmatprep.subr.bf16.mxu1 %v3534_v47 }
 0x6b2   : > { %3559 = vmatpush1.bf16.msra.mxu0 %v3558_v27  ;;  %v2592_v27 = vld [vmem:[%s5768_s13 + $0x188] sm:$0xff] }
 0x6b3   : > { %3560 = vmatprep.subr.bf16.mxu0 %v3847_v0  ;;  %3537 = vmatpush3.bf16.msra.mxu1 %v3536_v10  ;;  %v3579_v31 = vpack.c.bf16 %v2592_v27, %v2591_v22  ;;  %v3588_v10 = vpack.c.bf16 %v2743_v53, %v2742_v52  ;;  %v2837_v22 = vld [vmem:[%s5772_s17 + $0x58] sm:$0xff]  ;;  %v2838_v27 = vld [vmem:[%s5772_s17 + $0x60] sm:$0xff] }
 0x6b4   : > { %3539 = vmatprep.subr.bf16.mxu1 %v3538_v62  ;;  %v2744_v62 = vld [vmem:[%s5770_s15 + $0x30] sm:$0xff]  ;;  %v3624_v29 = vpack.c.bf16 %v2839_v28, %v2838_v27 }
 0x6b5   : > { %v3591_v54 = vpack.c.bf16 %v2745_v50, %v2744_v62 }
 0x6b6   : > { %3562 = vmatpush1.bf16.msra.mxu0 %v3561_v41  ;;  %v2738_v41 = vld [vmem:[%s5770_s15] sm:$0xff] }
 0x6b7   : > { %3563 = vmatprep.subr.bf16.mxu0 %v3847_v0  ;;  %3541 = vmatpush3.bf16.msra.mxu1 %v3540_v33  ;;  %v3582_v44 = vpack.c.bf16 %v2739_v40, %v2738_v41  ;;  %v3597_v33 = vpack.c.bf16 %v2749_v16, %v2748_v61  ;;  %v2754_v41 = vld [vmem:[%s5771_s16] sm:$0x1] }
 0x6b8   : > { %3543 = vmatprep.subr.bf16.mxu1 %v3542_v20  ;;  %v2750_v20 = vld [vmem:[%s5770_s15 + $0x60] sm:$0xff] }
 0x6b9   : > { %v3600_v59 = vpack.c.bf16 %v2751_v58, %v2750_v20 }
 0x6ba   : > { %3565 = vmatpush1.bf16.msra.mxu0 %v3564_v46  ;;  %v2741_v46 = vld [vmem:[%s5770_s15 + $0x18] sm:$0xff] }
 0x6bb   : > { %3566 = vmatprep.subr.bf16.mxu0 %v3847_v0  ;;  %3545 = vmatpush3.bf16.msra.mxu1 %v3544_v8  ;;  %v3585_v38 = vpack.c.bf16 %v2741_v46, %v2740_v60  ;;  %v2828_v8 = vld [vmem:[%s5772_s17 + $0x10] sm:$0xff] }
 0x6bc   : > { %3547 = vmatprep.subr.bf16.mxu1 %v3546_v9  ;;  %v3606_v9 = vpack.c.bf16 %v2827_v5, %v2826_v4  ;;  %v3609_v55 = vpack.c.bf16 %v2829_v45, %v2828_v8 }
 0x6be   : > { %3568 = vmatpush1.bf16.msra.mxu0 %v3567_v15  ;;  %v2746_v15 = vld [vmem:[%s5770_s15 + $0x40] sm:$0xff] }
 0x6bf   : > { %3569 = vmatprep.subr.bf16.mxu0 %v3847_v0  ;;  %3549 = vmatpush3.bf16.msra.mxu1 %v3548_v51  ;;  %v3594_v7 = vpack.c.bf16 %v2747_v56, %v2746_v15  ;;  %v2833_v51 = vld [vmem:[%s5772_s17 + $0x38] sm:$0xff] }
 0x6c0   : > { %3551 = vmatprep.subr.bf16.mxu1 %v3550_v26  ;;  %v3621_v26 = vpack.c.bf16 %v2837_v22, %v2836_v6 }
 0x6c2   : > { %3571 = vmatpush1.bf16.msra.mxu0 %v3570_v2  ;;  %v2752_v2 = vld [vmem:[%s5770_s15 + $0x70] sm:$0xff] }
 0x6c3   : > { %3572 = vmatprep.subr.bf16.mxu0 %v3847_v0  ;;  %3553 = vmatpush3.bf16.msra.mxu1 %v3552_v36  ;;  %v3603_v57 = vpack.c.bf16 %v2753_v21, %v2752_v2 }
 0x6c4   : > { %3581 = vmatprep.subr.bf16.mxu1 %v3847_v0 }
 0x6c6   : > { %3574 = vmatpush1.bf16.msra.mxu0 %v3573_v12  ;;  %v2830_v12 = vld [vmem:[%s5772_s17 + $0x20] sm:$0xff] }
 0x6c7   : > { %3575 = vmatprep.subr.bf16.mxu0 %v3847_v0  ;;  %v3612_v17 = vpack.c.bf16 %v2831_v30, %v2830_v12 }
 0x6ca   : > { %3577 = vmatpush1.bf16.msra.mxu0 %v3576_v48 }
 0x6cb   : > { %3578 = vmatprep.subr.bf16.mxu0 %v3847_v0 }
 0x6ce   : > { %3580 = vmatpush1.bf16.msra.mxu0 %v3579_v31 }
 0x6cf   : > { %3605 = vmatprep.subr.bf16.mxu0 %v3847_v0 }
 0x758   : > { %v2426_v18 = vpop.f32.mrb[8].mxu0 }
 0x759   : > { %v2428_v19 = vpop.f32.mrb[9].mxu0 }
 0x75a   : > { %v2835_v19 = vld [vmem:[%s5772_s17 + $0x48] sm:$0xff] }
 0x780   : > { %v2516_v37 = vpop.f32.mrb[10].mxu0 }
 0x781   : > { %v2520_v35 = vmax.f32 %v2426_v18, %v2516_v37  ;;  %v2518_v39 = vpop.f32.mrb[11].mxu0  ;;  %v2834_v18 = vld [vmem:[%s5772_s17 + $0x40] sm:$0xff] }
 0x782   : > { %v3618_v25 = vpack.c.bf16 %v2835_v19, %v2834_v18 }
 0x783   : > { %v2526_v24 = vrot.slane %v2520_v35, 2  ;;  %v2522_v14 = vrot.slane %v2520_v35, 1  ;;  %v2534_v3 = vrot.slane %v2520_v35, 4  ;;  %v2530_v34 = vrot.slane %v2520_v35, 3 }
 0x785   : > { %2527 = vrot.lane.b32.xlu1 %v2526_v24, %s5820_s26  ;;  %2523 = vrot.lane.b32.xlu0 %v2522_v14, %s3864_s21  ;;  %s2977_s21 = sshll.u32 %s5825_s30, 3 }
 0x786   : > { %s600_s25 = scalar_lea.vmem %s5774_s19, %s2977_s21 }
 0x789   : > { %2535 = vrot.lane.b32.xlu1 %v2534_v3, %s5821_s2  ;;  %2531 = vrot.lane.b32.xlu0 %v2530_v34, %s5805_s22 }
 0x7f7   : > { %v2528_v13 = vpop.permute.xlu1 %2527  ;;  %v2524_v32 = vpop.permute.xlu0 %2523 }
 0x7f8   : > { %v2540_v23 = vsel %vm5822_vm14, %v2524_v32, %v2528_v13  ;;  %v2539_v11 = vsel %vm2538_vm13, %v2520_v35, %v2524_v32  ;;  %v2593_v35 = vld [vmem:[%s5769_s14] sm:$0x1]  ;;  %v2840_v13 = vld [vmem:[%s5772_s17 + $0x70] sm:$0xff] }
 0x7fb   : > { %v2536_v42 = vpop.permute.xlu1 %2535  ;;  %v2532_v43 = vpop.permute.xlu0 %2531 }
 0x7fc   : > { %v2542_v47 = vsel %vm5823_vm15, %v2532_v43, %v2536_v42  ;;  %3004 = vmatprep.mubr.msk.f32.mxu0 %vm2594_vm12, %v2536_v42  ;;  %v2541_v49 = vsel %vm1740_vm3, %v2540_v23, %v2532_v43 }
 0x7fd   : > { %2661 = vmatprep.mubr.f32.mxu1 %v2541_v49  ;;  %2732 = vmatmul.mubr.f32.vlgmr.msra.gmra.mrb[12].mxu0 %v2542_v47 }
 0x7fe   : > { %2662 = vmatmul.mubr.f32.vlgmr.msra.gmra.mrb[24].mxu1 %v2539_v11  ;;  %3143 = vmatprep.mubr.msk.f32.mxu0 %vm3865_vm1, %v3846_v63 }
 0x7ff   : > { %3583 = vmatpush3.bf16.msra.mxu1 %v3582_v44  ;;  %3108 = vmatprep.mubr.msk.f32.mxu1 %vm3865_vm1, %v3846_v63  ;;  %v2832_v63 = vld [vmem:[%s5772_s17 + $0x30] sm:$0xff]  ;;  %v2842_v44 = vld [vmem:[%s5773_s18] sm:$0x1] }
 0x800   : > { %3584 = vmatprep.subr.bf16.mxu1 %v3847_v0  ;;  %3607 = vmatpush3.bf16.msra.mxu0 %v3606_v9  ;;  %v3615_v48 = vpack.c.bf16 %v2833_v51, %v2832_v63 }
 0x801   : > { %3608 = vmatprep.subr.bf16.mxu0 %v3847_v0 }
 0x803   : > { %3586 = vmatpush3.bf16.msra.mxu1 %v3585_v38 }
 0x804   : > { %3587 = vmatprep.subr.bf16.mxu1 %v3847_v0  ;;  %3610 = vmatpush3.bf16.msra.mxu0 %v3609_v55 }
 0x805   : > { %3611 = vmatprep.subr.bf16.mxu0 %v3847_v0 }
 0x807   : > { %3589 = vmatpush3.bf16.msra.mxu1 %v3588_v10 }
 0x808   : > { %3590 = vmatprep.subr.bf16.mxu1 %v3847_v0  ;;  %3613 = vmatpush3.bf16.msra.mxu0 %v3612_v17 }
 0x809   : > { %3614 = vmatprep.subr.bf16.mxu0 %v3847_v0 }
 0x80b   : > { %3592 = vmatpush3.bf16.msra.mxu1 %v3591_v54 }
 0x80c   : > { %3593 = vmatprep.subr.bf16.mxu1 %v3847_v0  ;;  %3616 = vmatpush3.bf16.msra.mxu0 %v3615_v48 }
 0x80d   : > { %3617 = vmatprep.subr.bf16.mxu0 %v3847_v0 }
 0x80f   : > { %3595 = vmatpush3.bf16.msra.mxu1 %v3594_v7 }
 0x810   : > { %3596 = vmatprep.subr.bf16.mxu1 %v3847_v0  ;;  %3619 = vmatpush3.bf16.msra.mxu0 %v3618_v25 }
 0x811   : > { %3620 = vmatprep.subr.bf16.mxu0 %v3847_v0 }
 0x813   : > { %3598 = vmatpush3.bf16.msra.mxu1 %v3597_v33 }
 0x814   : > { %3599 = vmatprep.subr.bf16.mxu1 %v3847_v0  ;;  %3622 = vmatpush3.bf16.msra.mxu0 %v3621_v26 }
 0x815   : > { %3623 = vmatprep.subr.bf16.mxu0 %v3847_v0 }
 0x817   : > { %3601 = vmatpush3.bf16.msra.mxu1 %v3600_v59 }
 0x818   : > { %3602 = vmatprep.subr.bf16.mxu1 %v3847_v0  ;;  %3625 = vmatpush3.bf16.msra.mxu0 %v3624_v29 }
 0x819   : > { %3626 = vmatprep.subr.bf16.mxu0 %v3847_v0  ;;  %v2841_v0 = vld [vmem:[%s5772_s17 + $0x78] sm:$0xff] }
 0x81a   : > { %v3627_v32 = vpack.c.bf16 %v2841_v0, %v2840_v13 }
 0x81b   : > { %3604 = vmatpush3.bf16.msra.mxu1 %v3603_v57 }
 0x81c   : > { %3628 = vmatpush3.bf16.msra.mxu0 %v3627_v32 }
 0x8d0   : > { %v2733_v31 = vpop.f32.mrb[12].mxu0 }
 0x8d1   : > { %v3039_v36 = vpop.f32.mrb[24].mxu1  ;;  %v2735_v37 = vpop.f32.mrb[13].mxu0 }
 0x8d2   : > { %v3040_v39 = vpop.f32.mrb[25].mxu1 }
 0x8d3   : > { %v3041_v24 = vadd.f32 %v3040_v39, %v3039_v36 }
 0x8d5   : > { %v2664_v14 = vadd.f32 %v3041_v24, %v2593_v35 }
 0x8d7   : > { %v2734_v3 = vadd.f32 %v2733_v31, %v2664_v14 }
 0x8d9   : > { %v2737_v34 = vmax.f32 %v2734_v3, 0.0 }
 0x8db   : > { %3109 = vmatmul.mubr.f32.vlgmr.msra.gmra.mrb[26].mxu1 %v2737_v34 }
 0x9ae   : > { %v2821_v40 = vpop.f32.mrb[26].mxu1 }
 0x9af   : > { %v2822_v23 = vadd.f32 %v2821_v40, %v2754_v41  ;;  %v3110_v42 = vpop.f32.mrb[27].mxu1 }
 0x9b1   : > { %v2825_v43 = vmax.f32 %v2822_v23, 0.0 }
 0x9b3   : > { %3144 = vmatmul.mubr.f32.vlgmr.msra.gmra.mrb[14].mxu0 %v2825_v43 }
 0xa86   : > { %v2909_v47 = vpop.f32.mrb[14].mxu0 }
 0xa87   : > { %v2910_v49 = vadd.f32 %v2909_v47, %v2842_v44  ;;  %v3145_v60 = vpop.f32.mrb[15].mxu0 }
 0xa89   : > { %v2916_v46 = vrot.slane %v2910_v49, %v4607_v1 }
 0xa8b   : > { %2917 = vst [vmem:[%s600_s25] sm:$0xff] %v2916_v46 }
 0xa8c PF: > { %s29_s0 = sadd.s32 1, %s3841_s0  }
 0xa8d   : > { %p26_p4 = scmp.ge.s32.totalorder %s29_s0, 4  }
 0xa8f   :  { %28 = sbr.rel (!%p26_p4) target bundleno = 5 (0x5), region = 126 }

</bundles_post_ra>
